<compile_context>
chip_gen: v7x
topology: tpu7x:2x2x1
jax: 0.10.0
libtpu: 0.0.40
codegen_flags: <defaults>
</compile_context>

<pallas_src>
import jax
import jax.numpy as jnp
import numpy as np
from jax.experimental import pallas as pl
from jax.experimental.pallas import tpu as pltpu


# ----------------------------------------------------------------------------
# Constant 0/1 selection matrices (built once, in numpy) used to compact the
# shift-max pooling results inside kernel A.
# ----------------------------------------------------------------------------

def _pool1_selection():
    """(272, 755): row 16*y' + x' picks the pooled conv1 value for (y'-1, x'-1).

    After the two shifted maxima in the kernel, the pooled value for output (i, j)
    lives at row 56*i + 2*j of the 755-row tensor.  Border rows (y' or x' in {0, 15})
    and rows >= 240 stay all-zero -> this matmul also realises conv2's zero padding.
    """
    s = np.zeros((272, 755), np.float32)
    for yp in range(1, 15):          # padded-grid y' = i + 1
        for xp in range(1, 15):      # padded-grid x' = j + 1
            s[16 * yp + xp, 56 * (yp - 1) + 2 * (xp - 1)] = 1.0
    return jnp.asarray(s)


def _pool2_selection():
    """(49, 205): row ii*7 + jj picks the pooled conv2 value at row 32*ii + 2*jj."""
    s = np.zeros((49, 205), np.float32)
    for ii in range(7):
        for jj in range(7):
            s[ii * 7 + jj, 32 * ii + 2 * jj] = 1.0
    return jnp.asarray(s)


# ----------------------------------------------------------------------------
# Kernel A: conv1 + ReLU + pool1 + conv2 + ReLU + pool2  (one image per grid step)
# ----------------------------------------------------------------------------

def _conv_pool_kernel(cols1_ref, w1_ref, b1_ref, s1_ref, w2_ref, b2_ref, s2_ref,
                      out_ref, p1_ref):
    f32 = jnp.float32

    # conv1 (Cin=1 -> 32) as one MXU matmul over the 9-tap patches, + bias + ReLU.
    # Rows of h1 are flat 28x28 spatial positions m = y*28 + x.
    h1 = jnp.dot(cols1_ref[0], w1_ref[...], preferred_element_type=f32)      # (784, 32)
    h1 = jnp.maximum(h1 + b1_ref[...], 0.0)

    # 2x2 / stride-2 max pool as two shifted maxima.  The pooled value for output
    # (i, j) ends up at row 56*i + 2*j; all other rows are junk never read below.
    hx = jnp.maximum(h1[0:783], h1[1:784])            # max over the two x positions
    hy = jnp.maximum(hx[0:755], hx[28:783])           # max over the two y positions (755, 32)

    # Scatter the 14x14 pooled map onto a zero-padded flat 16x16 grid (row = 16*y' + x').
    # The all-zero border rows of s1 realise conv2's zero padding.
    p1_ref[...] = jnp.dot(s1_ref[...], hy, preferred_element_type=f32)       # (272, 32)

    # conv2 (32 -> 64): 9 shifted matmuls over the padded grid, accumulated in f32.
    # Output rows are r = 16*i + j  (columns j = 14, 15 are junk, never used downstream).
    acc = jnp.zeros((224, 64), f32)
    for dy in range(3):
        for dx in range(3):
            off = dy * 16 + dx
            acc = acc + jnp.dot(p1_ref[off:off + 224, :], w2_ref[dy * 3 + dx],
                                preferred_element_type=f32)
    h2 = jnp.maximum(acc + b2_ref[...], 0.0)                                 # (224, 64)

    # Second 2x2 max pool; valid pooled values end up at rows 32*ii + 2*jj.
    gx = jnp.maximum(h2[0:223], h2[1:224])
    gy = jnp.maximum(gx[0:205], gx[16:221])                                  # (205, 64)

    # Compact the 49 valid rows into NHWC-flat order (row = ii*7 + jj).
    out_ref[0] = jnp.dot(s2_ref[...], gy, preferred_element_type=f32)        # (49, 64)


# ----------------------------------------------------------------------------
# Kernel B: fc1 + ReLU + fc2 (output padded to 128 lanes -> unmasked stores)
# ----------------------------------------------------------------------------

def _fc_kernel(x_ref, w1_ref, b1_ref, w2_ref, b2_ref, o_ref):
    f32 = jnp.float32
    z = jnp.dot(x_ref[...], w1_ref[...], preferred_element_type=f32) + b1_ref[...]
    z = jnp.maximum(z, 0.0)
    o_ref[...] = jnp.dot(z, w2_ref[...], preferred_element_type=f32) + b2_ref[...]


# ----------------------------------------------------------------------------
# Parameters
# ----------------------------------------------------------------------------

def init_params(key):
    """Deterministic PyTorch-shaped parameters (uniform +/- 1/sqrt(fan_in))."""
    ks = jax.random.split(key, 8)

    def u(k, shape, fan_in):
        bound = 1.0 / (fan_in ** 0.5)
        return jax.random.uniform(k, shape, jnp.float32, -bound, bound)

    return {
        "conv1_w": u(ks[0], (32, 1, 3, 3), 1 * 9),
        "conv1_b": u(ks[1], (32,), 1 * 9),
        "conv2_w": u(ks[2], (64, 32, 3, 3), 32 * 9),
        "conv2_b": u(ks[3], (64,), 32 * 9),
        "fc1_w":   u(ks[4], (128, 64 * 7 * 7), 64 * 7 * 7),
        "fc1_b":   u(ks[5], (128,), 64 * 7 * 7),
        "fc2_w":   u(ks[6], (10, 128), 128),
        "fc2_b":   u(ks[7], (10,), 128),
    }


def prepare_params(p):
    """One-time re-layout of the PyTorch-shaped parameters into kernel layout."""
    # conv weights: (Cout, Cin, 3, 3) -> (tap = dy*3+dx, Cin, Cout)
    w1 = jnp.transpose(p["conv1_w"], (2, 3, 1, 0)).reshape(9, 32)
    w2 = jnp.transpose(p["conv2_w"], (2, 3, 1, 0)).reshape(9, 32, 64)
    # fc1: fold the PyTorch NCHW flatten (c*49 + h*7 + w) into an NHWC-flat weight,
    # pre-transposed to (K, N).
    fc1_w = jnp.transpose(p["fc1_w"].reshape(128, 64, 7, 7), (0, 2, 3, 1))
    fc1_w = fc1_w.reshape(128, 64 * 7 * 7).T                      # (3136, 128)
    # fc2: pre-transpose and pad N from 10 to 128 for a lane-dense output store.
    fc2_w = jnp.pad(p["fc2_w"].T, ((0, 0), (0, 118)))             # (128, 128)
    fc2_b = jnp.pad(p["fc2_b"], (0, 118)).reshape(1, 128)
    return {
        "w1": w1, "b1": p["conv1_b"].reshape(1, 32),
        "w2": w2, "b2": p["conv2_b"].reshape(1, 64),
        "fc1_w": fc1_w, "fc1_b": p["fc1_b"].reshape(1, 128),
        "fc2_w": fc2_w, "fc2_b": fc2_b,
        "s1": _pool1_selection(), "s2": _pool2_selection(),
    }


# ----------------------------------------------------------------------------
# Forward pass
# ----------------------------------------------------------------------------

@jax.jit
def cnn_forward(kp, x_nchw):
    B = x_nchw.shape[0]

    # Tiny fused XLA glue: 3x3/stride-1/pad-1 patch extraction for conv1's 6 KB input.
    # Rows ordered m = y*28 + x, taps ordered t = dy*3 + dx.
    x = x_nchw.reshape(B, 28, 28)
    xp = jnp.pad(x, ((0, 0), (1, 1), (1, 1)))
    cols1 = jnp.stack([xp[:, dy:dy + 28, dx:dx + 28]
                       for dy in range(3) for dx in range(3)], axis=-1)
    cols1 = cols1.reshape(B, 28 * 28, 9)

    # Kernel A: conv/pool stack, one image per grid step ("parallel" for v7x megacore).
    # Weight / selection blocks have constant index maps -> stay resident across steps.
    p2 = pl.pallas_call(
        _conv_pool_kernel,
        out_shape=jax.ShapeDtypeStruct((B, 49, 64), jnp.float32),
        grid=(B,),
        in_specs=[
            pl.BlockSpec((1, 784, 9), lambda b: (b, 0, 0)),
            pl.BlockSpec((9, 32), lambda b: (0, 0)),
            pl.BlockSpec((1, 32), lambda b: (0, 0)),
            pl.BlockSpec((272, 755), lambda b: (0, 0)),
            pl.BlockSpec((9, 32, 64), lambda b: (0, 0, 0)),
            pl.BlockSpec((1, 64), lambda b: (0, 0)),
            pl.BlockSpec((49, 205), lambda b: (0, 0)),
        ],
        out_specs=pl.BlockSpec((1, 49, 64), lambda b: (b, 0, 0)),
        scratch_shapes=[pltpu.VMEM((272, 32), jnp.float32)],
        compiler_params=pltpu.CompilerParams(
            dimension_semantics=("parallel",)),
    )(cols1, kp["w1"], kp["b1"], kp["s1"], kp["w2"], kp["b2"], kp["s2"])

    # Free reshape: (B, 49, 64) row-major == NHWC flatten (ii*448 + jj*64 + c), which the
    # pre-permuted fc1 weight expects.
    feat = p2.reshape(B, 49 * 64)

    # Kernel B: fc1 + ReLU + fc2, output padded to 128 lanes.
    out = pl.pallas_call(
        _fc_kernel,
        out_shape=jax.ShapeDtypeStruct((B, 128), jnp.float32),
        grid=(1,),
        in_specs=[
            pl.BlockSpec((B, 3136), lambda i: (0, 0)),
            pl.BlockSpec((3136, 128), lambda i: (0, 0)),
            pl.BlockSpec((1, 128), lambda i: (0, 0)),
            pl.BlockSpec((128, 128), lambda i: (0, 0)),
            pl.BlockSpec((1, 128), lambda i: (0, 0)),
        ],
        out_specs=pl.BlockSpec((B, 128), lambda i: (0, 0)),
        compiler_params=pltpu.CompilerParams(
            dimension_semantics=("arbitrary",)),
    )(feat, kp["fc1_w"], kp["fc1_b"], kp["fc2_w"], kp["fc2_b"])

    return out[:, :10]


# ----------------------------------------------------------------------------
# Pure-JAX reference (mirrors the PyTorch module) for a correctness check.
# ----------------------------------------------------------------------------

def _reference_forward(p, x):
    hi = jax.lax.Precision.HIGHEST

    def conv(inp, w, b):
        y = jax.lax.conv_general_dilated(
            inp, w, window_strides=(1, 1), padding=((1, 1), (1, 1)),
            dimension_numbers=("NCHW", "OIHW", "NCHW"), precision=hi)
        return y + b[None, :, None, None]

    def pool(t):
        return jax.lax.reduce_window(t, -jnp.inf, jax.lax.max,
                                     (1, 1, 2, 2), (1, 1, 2, 2), "VALID")

    h = pool(jax.nn.relu(conv(x, p["conv1_w"], p["conv1_b"])))
    h = pool(jax.nn.relu(conv(h, p["conv2_w"], p["conv2_b"])))
    h = h.reshape(h.shape[0], -1)
    h = jax.nn.relu(jnp.dot(h, p["fc1_w"].T, precision=hi) + p["fc1_b"])
    return jnp.dot(h, p["fc2_w"].T, precision=hi) + p["fc2_b"]


if __name__ == "__main__":
    key = jax.random.PRNGKey(0)
    pkey, xkey = jax.random.split(key)
    params = init_params(pkey)
    kparams = prepare_params(params)            # one-time weight re-layout
    x = jax.random.normal(xkey, (2, 1, 28, 28), jnp.float32)  # MNIST-sized NCHW input

    out = cnn_forward(kparams, x)
    out = jax.block_until_ready(out)
    assert out.shape == (2, 10) and out.dtype == jnp.float32

    ref = _reference_forward(params, x)
    assert bool(jnp.allclose(out, ref, rtol=5e-3, atol=5e-3)), "mismatch vs. reference"

    print("KERNEL_OK")
</pallas_src>

<mosaic_0001>
module attributes {stable_mosaic.version = 11 : i64} {
  func.func @_conv_pool_kernel(%arg0: i32, %arg1: memref<1x784x9xf32, #tpu.memory_space<vmem>>, %arg2: memref<9x32xf32, #tpu.memory_space<vmem>>, %arg3: memref<1x32xf32, #tpu.memory_space<vmem>>, %arg4: memref<272x755xf32, #tpu.memory_space<vmem>>, %arg5: memref<9x32x64xf32, #tpu.memory_space<vmem>>, %arg6: memref<1x64xf32, #tpu.memory_space<vmem>>, %arg7: memref<49x205xf32, #tpu.memory_space<vmem>>, %arg8: memref<1x49x64xf32, #tpu.memory_space<vmem>>, %arg9: memref<272x32xf32, #tpu.memory_space<vmem>>) attributes {dimension_semantics = [#tpu.dimension_semantics<parallel>], iteration_bounds = array<i64: 2>, scalar_prefetch = 0 : i64, scratch_operands = 1 : i64, tpu.core_type = #tpu.core_type<tc>, window_params = [{transform_indices = @transform_0, window_bounds = array<i64: 1, 784, 9>}, {pipeline_mode = #tpu.pipeline_mode<synchronous>, transform_indices = @transform_1, window_bounds = array<i64: 9, 32>}, {pipeline_mode = #tpu.pipeline_mode<synchronous>, transform_indices = @transform_2, window_bounds = array<i64: 1, 32>}, {pipeline_mode = #tpu.pipeline_mode<synchronous>, transform_indices = @transform_3, window_bounds = array<i64: 272, 755>}, {pipeline_mode = #tpu.pipeline_mode<synchronous>, transform_indices = @transform_4, window_bounds = array<i64: 9, 32, 64>}, {pipeline_mode = #tpu.pipeline_mode<synchronous>, transform_indices = @transform_5, window_bounds = array<i64: 1, 64>}, {pipeline_mode = #tpu.pipeline_mode<synchronous>, transform_indices = @transform_6, window_bounds = array<i64: 49, 205>}, {transform_indices = @transform_7, window_bounds = array<i64: 1, 49, 64>}]} {
    %c0 = arith.constant 0 : index
    %c0_0 = arith.constant 0 : index
    %c0_1 = arith.constant 0 : index
    %0 = vector.load %arg1[%c0, %c0_0, %c0_1] : memref<1x784x9xf32, #tpu.memory_space<vmem>>, vector<1x784x9xf32>
    %1 = vector.shape_cast %0 : vector<1x784x9xf32> to vector<784x9xf32>
    %c0_2 = arith.constant 0 : index
    %c0_3 = arith.constant 0 : index
    %2 = vector.load %arg2[%c0_2, %c0_3] : memref<9x32xf32, #tpu.memory_space<vmem>>, vector<9x32xf32>
    %cst = arith.constant dense<0.000000e+00> : vector<784x32xf32>
    %3 = tpu.matmul %1, %2, %cst {dimension_numbers = #tpu.dot_dimension_numbers<[1], [0], [0], [1], [0, 0, 1, 1], [], []>} : vector<784x9xf32>, vector<9x32xf32>, vector<784x32xf32> -> vector<784x32xf32>
    %c0_4 = arith.constant 0 : index
    %c0_5 = arith.constant 0 : index
    %4 = vector.load %arg3[%c0_4, %c0_5] : memref<1x32xf32, #tpu.memory_space<vmem>>, vector<1x32xf32>
    %5 = vector.broadcast %4 : vector<1x32xf32> to vector<784x32xf32>
    %6 = arith.addf %3, %5 : vector<784x32xf32>
    %cst_6 = arith.constant 0.000000e+00 : f32
    %7 = vector.broadcast %cst_6 : f32 to vector<784x32xf32>
    %8 = arith.maximumf %6, %7 : vector<784x32xf32>
    %9 = vector.extract_strided_slice %8 {offsets = [0, 0], sizes = [783, 32], strides = [1, 1]} : vector<784x32xf32> to vector<783x32xf32>
    %10 = vector.extract_strided_slice %8 {offsets = [1, 0], sizes = [783, 32], strides = [1, 1]} : vector<784x32xf32> to vector<783x32xf32>
    %11 = arith.maximumf %9, %10 : vector<783x32xf32>
    %12 = vector.extract_strided_slice %11 {offsets = [0, 0], sizes = [755, 32], strides = [1, 1]} : vector<783x32xf32> to vector<755x32xf32>
    %13 = vector.extract_strided_slice %11 {offsets = [28, 0], sizes = [755, 32], strides = [1, 1]} : vector<783x32xf32> to vector<755x32xf32>
    %14 = arith.maximumf %12, %13 : vector<755x32xf32>
    %c0_7 = arith.constant 0 : index
    %c0_8 = arith.constant 0 : index
    %15 = vector.load %arg4[%c0_7, %c0_8] : memref<272x755xf32, #tpu.memory_space<vmem>>, vector<272x755xf32>
    %cst_9 = arith.constant dense<0.000000e+00> : vector<272x32xf32>
    %16 = tpu.matmul %15, %14, %cst_9 {dimension_numbers = #tpu.dot_dimension_numbers<[1], [0], [0], [1], [0, 0, 1, 1], [], []>} : vector<272x755xf32>, vector<755x32xf32>, vector<272x32xf32> -> vector<272x32xf32>
    %c0_10 = arith.constant 0 : index
    %c0_11 = arith.constant 0 : index
    %17 = vector.load %arg9[%c0_10, %c0_11] : memref<272x32xf32, #tpu.memory_space<vmem>>, vector<272x32xf32>
    tpu.vector_store %arg9[%c0_10, %c0_11], %16 {strides = array<i32>} : memref<272x32xf32, #tpu.memory_space<vmem>>, vector<272x32xf32>,
    %cst_12 = arith.constant 0.000000e+00 : f32
    %18 = vector.broadcast %cst_12 : f32 to vector<224x64xf32>
    %c0_13 = arith.constant 0 : index
    %c0_14 = arith.constant 0 : index
    %19 = vector.load %arg9[%c0_13, %c0_14] : memref<272x32xf32, #tpu.memory_space<vmem>>, vector<224x32xf32>
    %c0_15 = arith.constant 0 : index
    %c0_16 = arith.constant 0 : index
    %c0_17 = arith.constant 0 : index
    %20 = vector.load %arg5[%c0_15, %c0_16, %c0_17] : memref<9x32x64xf32, #tpu.memory_space<vmem>>, vector<1x32x64xf32>
    %21 = vector.shape_cast %20 : vector<1x32x64xf32> to vector<32x64xf32>
    %cst_18 = arith.constant dense<0.000000e+00> : vector<224x64xf32>
    %22 = tpu.matmul %19, %21, %cst_18 {dimension_numbers = #tpu.dot_dimension_numbers<[1], [0], [0], [1], [0, 0, 1, 1], [], []>} : vector<224x32xf32>, vector<32x64xf32>, vector<224x64xf32> -> vector<224x64xf32>
    %23 = arith.addf %18, %22 : vector<224x64xf32>
    %c1 = arith.constant 1 : index
    %c0_19 = arith.constant 0 : index
    %24 = vector.load %arg9[%c1, %c0_19] : memref<272x32xf32, #tpu.memory_space<vmem>>, vector<224x32xf32>
    %c1_20 = arith.constant 1 : index
    %c0_21 = arith.constant 0 : index
    %c0_22 = arith.constant 0 : index
    %25 = vector.load %arg5[%c1_20, %c0_21, %c0_22] : memref<9x32x64xf32, #tpu.memory_space<vmem>>, vector<1x32x64xf32>
    %26 = vector.shape_cast %25 : vector<1x32x64xf32> to vector<32x64xf32>
    %cst_23 = arith.constant dense<0.000000e+00> : vector<224x64xf32>
    %27 = tpu.matmul %24, %26, %cst_23 {dimension_numbers = #tpu.dot_dimension_numbers<[1], [0], [0], [1], [0, 0, 1, 1], [], []>} : vector<224x32xf32>, vector<32x64xf32>, vector<224x64xf32> -> vector<224x64xf32>
    %28 = arith.addf %23, %27 : vector<224x64xf32>
    %c2 = arith.constant 2 : index
    %c0_24 = arith.constant 0 : index
    %29 = vector.load %arg9[%c2, %c0_24] : memref<272x32xf32, #tpu.memory_space<vmem>>, vector<224x32xf32>
    %c2_25 = arith.constant 2 : index
    %c0_26 = arith.constant 0 : index
    %c0_27 = arith.constant 0 : index
    %30 = vector.load %arg5[%c2_25, %c0_26, %c0_27] : memref<9x32x64xf32, #tpu.memory_space<vmem>>, vector<1x32x64xf32>
    %31 = vector.shape_cast %30 : vector<1x32x64xf32> to vector<32x64xf32>
    %cst_28 = arith.constant dense<0.000000e+00> : vector<224x64xf32>
    %32 = tpu.matmul %29, %31, %cst_28 {dimension_numbers = #tpu.dot_dimension_numbers<[1], [0], [0], [1], [0, 0, 1, 1], [], []>} : vector<224x32xf32>, vector<32x64xf32>, vector<224x64xf32> -> vector<224x64xf32>
    %33 = arith.addf %28, %32 : vector<224x64xf32>
    %c16 = arith.constant 16 : index
    %c0_29 = arith.constant 0 : index
    %34 = vector.load %arg9[%c16, %c0_29] : memref<272x32xf32, #tpu.memory_space<vmem>>, vector<224x32xf32>
    %c3 = arith.constant 3 : index
    %c0_30 = arith.constant 0 : index
    %c0_31 = arith.constant 0 : index
    %35 = vector.load %arg5[%c3, %c0_30, %c0_31] : memref<9x32x64xf32, #tpu.memory_space<vmem>>, vector<1x32x64xf32>
    %36 = vector.shape_cast %35 : vector<1x32x64xf32> to vector<32x64xf32>
    %cst_32 = arith.constant dense<0.000000e+00> : vector<224x64xf32>
    %37 = tpu.matmul %34, %36, %cst_32 {dimension_numbers = #tpu.dot_dimension_numbers<[1], [0], [0], [1], [0, 0, 1, 1], [], []>} : vector<224x32xf32>, vector<32x64xf32>, vector<224x64xf32> -> vector<224x64xf32>
    %38 = arith.addf %33, %37 : vector<224x64xf32>
    %c17 = arith.constant 17 : index
    %c0_33 = arith.constant 0 : index
    %39 = vector.load %arg9[%c17, %c0_33] : memref<272x32xf32, #tpu.memory_space<vmem>>, vector<224x32xf32>
    %c4 = arith.constant 4 : index
    %c0_34 = arith.constant 0 : index
    %c0_35 = arith.constant 0 : index
    %40 = vector.load %arg5[%c4, %c0_34, %c0_35] : memref<9x32x64xf32, #tpu.memory_space<vmem>>, vector<1x32x64xf32>
    %41 = vector.shape_cast %40 : vector<1x32x64xf32> to vector<32x64xf32>
    %cst_36 = arith.constant dense<0.000000e+00> : vector<224x64xf32>
    %42 = tpu.matmul %39, %41, %cst_36 {dimension_numbers = #tpu.dot_dimension_numbers<[1], [0], [0], [1], [0, 0, 1, 1], [], []>} : vector<224x32xf32>, vector<32x64xf32>, vector<224x64xf32> -> vector<224x64xf32>
    %43 = arith.addf %38, %42 : vector<224x64xf32>
    %c18 = arith.constant 18 : index
    %c0_37 = arith.constant 0 : index
    %44 = vector.load %arg9[%c18, %c0_37] : memref<272x32xf32, #tpu.memory_space<vmem>>, vector<224x32xf32>
    %c5 = arith.constant 5 : index
    %c0_38 = arith.constant 0 : index
    %c0_39 = arith.constant 0 : index
    %45 = vector.load %arg5[%c5, %c0_38, %c0_39] : memref<9x32x64xf32, #tpu.memory_space<vmem>>, vector<1x32x64xf32>
    %46 = vector.shape_cast %45 : vector<1x32x64xf32> to vector<32x64xf32>
    %cst_40 = arith.constant dense<0.000000e+00> : vector<224x64xf32>
    %47 = tpu.matmul %44, %46, %cst_40 {dimension_numbers = #tpu.dot_dimension_numbers<[1], [0], [0], [1], [0, 0, 1, 1], [], []>} : vector<224x32xf32>, vector<32x64xf32>, vector<224x64xf32> -> vector<224x64xf32>
    %48 = arith.addf %43, %47 : vector<224x64xf32>
    %c32 = arith.constant 32 : index
    %c0_41 = arith.constant 0 : index
    %49 = vector.load %arg9[%c32, %c0_41] : memref<272x32xf32, #tpu.memory_space<vmem>>, vector<224x32xf32>
    %c6 = arith.constant 6 : index
    %c0_42 = arith.constant 0 : index
    %c0_43 = arith.constant 0 : index
    %50 = vector.load %arg5[%c6, %c0_42, %c0_43] : memref<9x32x64xf32, #tpu.memory_space<vmem>>, vector<1x32x64xf32>
    %51 = vector.shape_cast %50 : vector<1x32x64xf32> to vector<32x64xf32>
    %cst_44 = arith.constant dense<0.000000e+00> : vector<224x64xf32>
    %52 = tpu.matmul %49, %51, %cst_44 {dimension_numbers = #tpu.dot_dimension_numbers<[1], [0], [0], [1], [0, 0, 1, 1], [], []>} : vector<224x32xf32>, vector<32x64xf32>, vector<224x64xf32> -> vector<224x64xf32>
    %53 = arith.addf %48, %52 : vector<224x64xf32>
    %c33 = arith.constant 33 : index
    %c0_45 = arith.constant 0 : index
    %54 = vector.load %arg9[%c33, %c0_45] : memref<272x32xf32, #tpu.memory_space<vmem>>, vector<224x32xf32>
    %c7 = arith.constant 7 : index
    %c0_46 = arith.constant 0 : index
    %c0_47 = arith.constant 0 : index
    %55 = vector.load %arg5[%c7, %c0_46, %c0_47] : memref<9x32x64xf32, #tpu.memory_space<vmem>>, vector<1x32x64xf32>
    %56 = vector.shape_cast %55 : vector<1x32x64xf32> to vector<32x64xf32>
    %cst_48 = arith.constant dense<0.000000e+00> : vector<224x64xf32>
    %57 = tpu.matmul %54, %56, %cst_48 {dimension_numbers = #tpu.dot_dimension_numbers<[1], [0], [0], [1], [0, 0, 1, 1], [], []>} : vector<224x32xf32>, vector<32x64xf32>, vector<224x64xf32> -> vector<224x64xf32>
    %58 = arith.addf %53, %57 : vector<224x64xf32>
    %c34 = arith.constant 34 : index
    %c0_49 = arith.constant 0 : index
    %59 = vector.load %arg9[%c34, %c0_49] : memref<272x32xf32, #tpu.memory_space<vmem>>, vector<224x32xf32>
    %c8 = arith.constant 8 : index
    %c0_50 = arith.constant 0 : index
    %c0_51 = arith.constant 0 : index
    %60 = vector.load %arg5[%c8, %c0_50, %c0_51] : memref<9x32x64xf32, #tpu.memory_space<vmem>>, vector<1x32x64xf32>
    %61 = vector.shape_cast %60 : vector<1x32x64xf32> to vector<32x64xf32>
    %cst_52 = arith.constant dense<0.000000e+00> : vector<224x64xf32>
    %62 = tpu.matmul %59, %61, %cst_52 {dimension_numbers = #tpu.dot_dimension_numbers<[1], [0], [0], [1], [0, 0, 1, 1], [], []>} : vector<224x32xf32>, vector<32x64xf32>, vector<224x64xf32> -> vector<224x64xf32>
    %63 = arith.addf %58, %62 : vector<224x64xf32>
    %c0_53 = arith.constant 0 : index
    %c0_54 = arith.constant 0 : index
    %64 = vector.load %arg6[%c0_53, %c0_54] : memref<1x64xf32, #tpu.memory_space<vmem>>, vector<1x64xf32>
    %65 = vector.broadcast %64 : vector<1x64xf32> to vector<224x64xf32>
    %66 = arith.addf %63, %65 : vector<224x64xf32>
    %cst_55 = arith.constant 0.000000e+00 : f32
    %67 = vector.broadcast %cst_55 : f32 to vector<224x64xf32>
    %68 = arith.maximumf %66, %67 : vector<224x64xf32>
    %69 = vector.extract_strided_slice %68 {offsets = [0, 0], sizes = [223, 64], strides = [1, 1]} : vector<224x64xf32> to vector<223x64xf32>
    %70 = vector.extract_strided_slice %68 {offsets = [1, 0], sizes = [223, 64], strides = [1, 1]} : vector<224x64xf32> to vector<223x64xf32>
    %71 = arith.maximumf %69, %70 : vector<223x64xf32>
    %72 = vector.extract_strided_slice %71 {offsets = [0, 0], sizes = [205, 64], strides = [1, 1]} : vector<223x64xf32> to vector<205x64xf32>
    %73 = vector.extract_strided_slice %71 {offsets = [16, 0], sizes = [205, 64], strides = [1, 1]} : vector<223x64xf32> to vector<205x64xf32>
    %74 = arith.maximumf %72, %73 : vector<205x64xf32>
    %c0_56 = arith.constant 0 : index
    %c0_57 = arith.constant 0 : index
    %75 = vector.load %arg7[%c0_56, %c0_57] : memref<49x205xf32, #tpu.memory_space<vmem>>, vector<49x205xf32>
    %cst_58 = arith.constant dense<0.000000e+00> : vector<49x64xf32>
    %76 = tpu.matmul %75, %74, %cst_58 {dimension_numbers = #tpu.dot_dimension_numbers<[1], [0], [0], [1], [0, 0, 1, 1], [], []>} : vector<49x205xf32>, vector<205x64xf32>, vector<49x64xf32> -> vector<49x64xf32>
    %c0_59 = arith.constant 0 : index
    %c0_60 = arith.constant 0 : index
    %c0_61 = arith.constant 0 : index
    %77 = vector.load %arg8[%c0_59, %c0_60, %c0_61] : memref<1x49x64xf32, #tpu.memory_space<vmem>>, vector<1x49x64xf32>
    %78 = vector.shape_cast %77 : vector<1x49x64xf32> to vector<49x64xf32>
    %79 = vector.shape_cast %76 : vector<49x64xf32> to vector<1x49x64xf32>
    tpu.vector_store %arg8[%c0_59, %c0_60, %c0_61], %79 {strides = array<i32>} : memref<1x49x64xf32, #tpu.memory_space<vmem>>, vector<1x49x64xf32>,
    return
  }
  func.func @transform_0(%arg0: i32) -> (i32, i32, i32) {
    %c0_i32 = arith.constant 0 : i32
    %c0_i32_0 = arith.constant 0 : i32
    %c0_i32_1 = arith.constant 0 : i32
    return %arg0, %c0_i32, %c0_i32_0 : i32, i32, i32
  }
  func.func @transform_1(%arg0: i32) -> (i32, i32) {
    %c0_i32 = arith.constant 0 : i32
    %c0_i32_0 = arith.constant 0 : i32
    %c0_i32_1 = arith.constant 0 : i32
    return %c0_i32, %c0_i32_0 : i32, i32
  }
  func.func @transform_2(%arg0: i32) -> (i32, i32) {
    %c0_i32 = arith.constant 0 : i32
    %c0_i32_0 = arith.constant 0 : i32
    %c0_i32_1 = arith.constant 0 : i32
    return %c0_i32, %c0_i32_0 : i32, i32
  }
  func.func @transform_3(%arg0: i32) -> (i32, i32) {
    %c0_i32 = arith.constant 0 : i32
    %c0_i32_0 = arith.constant 0 : i32
    %c0_i32_1 = arith.constant 0 : i32
    return %c0_i32, %c0_i32_0 : i32, i32
  }
  func.func @transform_4(%arg0: i32) -> (i32, i32, i32) {
    %c0_i32 = arith.constant 0 : i32
    %c0_i32_0 = arith.constant 0 : i32
    %c0_i32_1 = arith.constant 0 : i32
    %c0_i32_2 = arith.constant 0 : i32
    return %c0_i32, %c0_i32_0, %c0_i32_1 : i32, i32, i32
  }
  func.func @transform_5(%arg0: i32) -> (i32, i32) {
    %c0_i32 = arith.constant 0 : i32
    %c0_i32_0 = arith.constant 0 : i32
    %c0_i32_1 = arith.constant 0 : i32
    return %c0_i32, %c0_i32_0 : i32, i32
  }
  func.func @transform_6(%arg0: i32) -> (i32, i32) {
    %c0_i32 = arith.constant 0 : i32
    %c0_i32_0 = arith.constant 0 : i32
    %c0_i32_1 = arith.constant 0 : i32
    return %c0_i32, %c0_i32_0 : i32, i32
  }
  func.func @transform_7(%arg0: i32) -> (i32, i32, i32) {
    %c0_i32 = arith.constant 0 : i32
    %c0_i32_0 = arith.constant 0 : i32
    %c0_i32_1 = arith.constant 0 : i32
    return %arg0, %c0_i32, %c0_i32_0 : i32, i32, i32
  }
}

module attributes {stable_mosaic.version = 11 : i64} {
  func.func @_fc_kernel(%arg0: i32, %arg1: memref<2x3136xf32, #tpu.memory_space<vmem>>, %arg2: memref<3136x128xf32, #tpu.memory_space<vmem>>, %arg3: memref<1x128xf32, #tpu.memory_space<vmem>>, %arg4: memref<128x128xf32, #tpu.memory_space<vmem>>, %arg5: memref<1x128xf32, #tpu.memory_space<vmem>>, %arg6: memref<2x128xf32, #tpu.memory_space<vmem>>) attributes {dimension_semantics = [#tpu.dimension_semantics<arbitrary>], iteration_bounds = array<i64: 1>, scalar_prefetch = 0 : i64, scratch_operands = 0 : i64, tpu.core_type = #tpu.core_type<tc>, window_params = [{pipeline_mode = #tpu.pipeline_mode<synchronous>, transform_indices = @transform_0, window_bounds = array<i64: 2, 3136>}, {pipeline_mode = #tpu.pipeline_mode<synchronous>, transform_indices = @transform_1, window_bounds = array<i64: 3136, 128>}, {pipeline_mode = #tpu.pipeline_mode<synchronous>, transform_indices = @transform_2, window_bounds = array<i64: 1, 128>}, {pipeline_mode = #tpu.pipeline_mode<synchronous>, transform_indices = @transform_3, window_bounds = array<i64: 128, 128>}, {pipeline_mode = #tpu.pipeline_mode<synchronous>, transform_indices = @transform_4, window_bounds = array<i64: 1, 128>}, {pipeline_mode = #tpu.pipeline_mode<synchronous>, transform_indices = @transform_5, window_bounds = array<i64: 2, 128>}]} {
    %c0 = arith.constant 0 : index
    %c0_0 = arith.constant 0 : index
    %0 = vector.load %arg1[%c0, %c0_0] : memref<2x3136xf32, #tpu.memory_space<vmem>>, vector<2x3136xf32>
    %c0_1 = arith.constant 0 : index
    %c0_2 = arith.constant 0 : index
    %1 = vector.load %arg2[%c0_1, %c0_2] : memref<3136x128xf32, #tpu.memory_space<vmem>>, vector<3136x128xf32>
    %cst = arith.constant dense<0.000000e+00> : vector<2x128xf32>
    %2 = tpu.matmul %0, %1, %cst {dimension_numbers = #tpu.dot_dimension_numbers<[1], [0], [0], [1], [0, 0, 1, 1], [], []>} : vector<2x3136xf32>, vector<3136x128xf32>, vector<2x128xf32> -> vector<2x128xf32>
    %c0_3 = arith.constant 0 : index
    %c0_4 = arith.constant 0 : index
    %3 = vector.load %arg3[%c0_3, %c0_4] : memref<1x128xf32, #tpu.memory_space<vmem>>, vector<1x128xf32>
    %4 = vector.broadcast %3 : vector<1x128xf32> to vector<2x128xf32>
    %5 = arith.addf %2, %4 : vector<2x128xf32>
    %cst_5 = arith.constant 0.000000e+00 : f32
    %6 = vector.broadcast %cst_5 : f32 to vector<2x128xf32>
    %7 = arith.maximumf %5, %6 : vector<2x128xf32>
    %c0_6 = arith.constant 0 : index
    %c0_7 = arith.constant 0 : index
    %8 = vector.load %arg4[%c0_6, %c0_7] : memref<128x128xf32, #tpu.memory_space<vmem>>, vector<128x128xf32>
    %cst_8 = arith.constant dense<0.000000e+00> : vector<2x128xf32>
    %9 = tpu.matmul %7, %8, %cst_8 {dimension_numbers = #tpu.dot_dimension_numbers<[1], [0], [0], [1], [0, 0, 1, 1], [], []>} : vector<2x128xf32>, vector<128x128xf32>, vector<2x128xf32> -> vector<2x128xf32>
    %c0_9 = arith.constant 0 : index
    %c0_10 = arith.constant 0 : index
    %10 = vector.load %arg5[%c0_9, %c0_10] : memref<1x128xf32, #tpu.memory_space<vmem>>, vector<1x128xf32>
    %11 = vector.broadcast %10 : vector<1x128xf32> to vector<2x128xf32>
    %12 = arith.addf %9, %11 : vector<2x128xf32>
    %c0_11 = arith.constant 0 : index
    %c0_12 = arith.constant 0 : index
    %13 = vector.load %arg6[%c0_11, %c0_12] : memref<2x128xf32, #tpu.memory_space<vmem>>, vector<2x128xf32>
    tpu.vector_store %arg6[%c0_11, %c0_12], %12 {strides = array<i32>} : memref<2x128xf32, #tpu.memory_space<vmem>>, vector<2x128xf32>,
    return
  }
  func.func @transform_0(%arg0: i32) -> (i32, i32) {
    %c0_i32 = arith.constant 0 : i32
    %c0_i32_0 = arith.constant 0 : i32
    %c0_i32_1 = arith.constant 0 : i32
    return %c0_i32, %c0_i32_0 : i32, i32
  }
  func.func @transform_1(%arg0: i32) -> (i32, i32) {
    %c0_i32 = arith.constant 0 : i32
    %c0_i32_0 = arith.constant 0 : i32
    %c0_i32_1 = arith.constant 0 : i32
    return %c0_i32, %c0_i32_0 : i32, i32
  }
  func.func @transform_2(%arg0: i32) -> (i32, i32) {
    %c0_i32 = arith.constant 0 : i32
    %c0_i32_0 = arith.constant 0 : i32
    %c0_i32_1 = arith.constant 0 : i32
    return %c0_i32, %c0_i32_0 : i32, i32
  }
  func.func @transform_3(%arg0: i32) -> (i32, i32) {
    %c0_i32 = arith.constant 0 : i32
    %c0_i32_0 = arith.constant 0 : i32
    %c0_i32_1 = arith.constant 0 : i32
    return %c0_i32, %c0_i32_0 : i32, i32
  }
  func.func @transform_4(%arg0: i32) -> (i32, i32) {
    %c0_i32 = arith.constant 0 : i32
    %c0_i32_0 = arith.constant 0 : i32
    %c0_i32_1 = arith.constant 0 : i32
    return %c0_i32, %c0_i32_0 : i32, i32
  }
  func.func @transform_5(%arg0: i32) -> (i32, i32) {
    %c0_i32 = arith.constant 0 : i32
    %c0_i32_0 = arith.constant 0 : i32
    %c0_i32_1 = arith.constant 0 : i32
    return %c0_i32, %c0_i32_0 : i32, i32
  }
}

</mosaic_0001>

<bundles_post_ra>
// kernel: cnn_forward.3
= control target key start
LH: loop header
LB: loop body
LE: loop exit
PB: predicated region body
PF: predicated region fallthrough
CT: control target
= control target key end

     0   :  { %v2548_v43 = vmov 1983009808   ;;  %v438_v45 = vlaneseq  ;;  %s3922_s0 = inlined_call_operand.vmem [shape: f32[2,3136], index: 0, kind: input, shape index: {}]   ;;  %s3923_s1 = inlined_call_operand.vmem [shape: f32[3136,128], index: 1, kind: input, shape index: {}]   ;;  %s3924_s2 = inlined_call_operand.vmem [shape: f32[1,128], index: 2, kind: input, shape index: {}]   ;;  %s3925_s3 = inlined_call_operand.vmem [shape: f32[128,128], index: 3, kind: input, shape index: {}]   ;;  %s3926_s4 = inlined_call_operand.vmem [shape: f32[1,128], index: 4, kind: input, shape index: {}]   ;;  %s3927_s5 = inlined_call_operand.hbm [shape: f32[2,128], index: 5, kind: output, shape index: {}]  }
   0x1   :  { %v44_v0 = vld [vmem:[%s3923_s1 + $0x80] sm:$0xff]  ;;  %v45_v1 = vld [vmem:[%s3923_s1 + $0x88] sm:$0xff]  ;;  %v46_v11 = vld [vmem:[%s3923_s1 + $0x90] sm:$0xff]  ;;  %v436_v44 = vunpack.c.l.s4 %v2548_v43 }
   0x2   :  { %v28_v2 = vld [vmem:[%s3923_s1] sm:$0xff]  ;;  %v2093_v3 = vpack.c.bf16 %v45_v1, %v44_v0  ;;  %v29_v4 = vld [vmem:[%s3923_s1 + $0x8] sm:$0xff]  ;;  %v47_v13 = vld [vmem:[%s3923_s1 + $0x98] sm:$0xff]  ;;  %v439_v60 = vshrl.u32 %v438_v45, 7 }
   0x3   :  { %v76_v5 = vld [vmem:[%s3923_s1 + $0x180] sm:$0xff]  ;;  %v77_v6 = vld [vmem:[%s3923_s1 + $0x188] sm:$0xff]  ;;  %v2095_v7 = vpack.c.bf16 %v29_v4, %v28_v2  ;;  %v30_v14 = vld [vmem:[%s3923_s1 + $0x10] sm:$0xff]  ;;  %v2097_v16 = vpack.c.bf16 %v47_v13, %v46_v11  ;;  %v437_v59 = vunpack.c.0.s8 %v436_v44 }
   0x4   :  { %v2125_v8 = vpack.c.bf16 %v77_v6, %v76_v5  ;;  %v60_v9 = vld [vmem:[%s3923_s1 + $0x100] sm:$0xff]  ;;  %v61_v10 = vld [vmem:[%s3923_s1 + $0x108] sm:$0xff]  ;;  %2094 = vmatprep.subr.bf16.mxu0 %v2093_v3  ;;  %v31_v15 = vld [vmem:[%s3923_s1 + $0x18] sm:$0xff] }
   0x5   :  { %v2127_v12 = vpack.c.bf16 %v61_v10, %v60_v9  ;;  %2096 = vmatpush3.bf16.msra.mxu0 %v2095_v7  ;;  %v2099_v17 = vpack.c.bf16 %v31_v15, %v30_v14  ;;  %v78_v18 = vld [vmem:[%s3923_s1 + $0x190] sm:$0xff]  ;;  %v79_v19 = vld [vmem:[%s3923_s1 + $0x198] sm:$0xff]  ;;  %v48_v23 = vld [vmem:[%s3923_s1 + $0xa0] sm:$0xff]  ;;  %v2727_v10 = vsub.s32 %v437_v59, %v439_v60 }
   0x6   :  { %2126 = vmatprep.subr.bf16.mxu1 %v2125_v8  ;;  %v62_v20 = vld [vmem:[%s3923_s1 + $0x110] sm:$0xff]  ;;  %v2129_v21 = vpack.c.bf16 %v79_v19, %v78_v18  ;;  %v63_v22 = vld [vmem:[%s3923_s1 + $0x118] sm:$0xff]  ;;  %v49_v24 = vld [vmem:[%s3923_s1 + $0xa8] sm:$0xff]  ;;  %2098 = vmatprep.subr.bf16.mxu0 %v2097_v16 }
   0x7   :  { %2128 = vmatpush3.bf16.msra.mxu1 %v2127_v12  ;;  %v2131_v25 = vpack.c.bf16 %v63_v22, %v62_v20  ;;  %v2101_v26 = vpack.c.bf16 %v49_v24, %v48_v23  ;;  %v32_v27 = vld [vmem:[%s3923_s1 + $0x20] sm:$0xff]  ;;  %v33_v28 = vld [vmem:[%s3923_s1 + $0x28] sm:$0xff]  ;;  %v50_v35 = vld [vmem:[%s3923_s1 + $0xb0] sm:$0xff] }
   0x8   :  { %v80_v29 = vld [vmem:[%s3923_s1 + $0x1a0] sm:$0xff]  ;;  %2130 = vmatprep.subr.bf16.mxu1 %v2129_v21  ;;  %v81_v30 = vld [vmem:[%s3923_s1 + $0x1a8] sm:$0xff]  ;;  %v2103_v33 = vpack.c.bf16 %v33_v28, %v32_v27  ;;  %v51_v36 = vld [vmem:[%s3923_s1 + $0xb8] sm:$0xff] }
   0x9   :  { %v64_v31 = vld [vmem:[%s3923_s1 + $0x120] sm:$0xff]  ;;  %v65_v32 = vld [vmem:[%s3923_s1 + $0x128] sm:$0xff]  ;;  %2100 = vmatpush3.bf16.msra.mxu0 %v2099_v17  ;;  %v2133_v34 = vpack.c.bf16 %v81_v30, %v80_v29  ;;  %v34_v37 = vld [vmem:[%s3923_s1 + $0x30] sm:$0xff]  ;;  %v2105_v39 = vpack.c.bf16 %v51_v36, %v50_v35 }
   0xa   :  { %2102 = vmatprep.subr.bf16.mxu0 %v2101_v26  ;;  %v2135_v38 = vpack.c.bf16 %v65_v32, %v64_v31  ;;  %v35_v40 = vld [vmem:[%s3923_s1 + $0x38] sm:$0xff]  ;;  %v82_v41 = vld [vmem:[%s3923_s1 + $0x1b0] sm:$0xff]  ;;  %v52_v49 = vld [vmem:[%s3923_s1 + $0xc0] sm:$0xff] }
   0xb   :  { %2132 = vmatpush3.bf16.msra.mxu1 %v2131_v25  ;;  %v83_v42 = vld [vmem:[%s3923_s1 + $0x1b8] sm:$0xff]  ;;  %v66_v47 = vld [vmem:[%s3923_s1 + $0x130] sm:$0xff]  ;;  %v53_v50 = vld [vmem:[%s3923_s1 + $0xc8] sm:$0xff]  ;;  %v2107_v51 = vpack.c.bf16 %v35_v40, %v34_v37 }
   0xc   :  { %2134 = vmatprep.subr.bf16.mxu1 %v2133_v34  ;;  %v2137_v46 = vpack.c.bf16 %v83_v42, %v82_v41  ;;  %v67_v48 = vld [vmem:[%s3923_s1 + $0x138] sm:$0xff]  ;;  %v84_v52 = vld [vmem:[%s3923_s1 + $0x1c0] sm:$0xff]  ;;  %v85_v53 = vld [vmem:[%s3923_s1 + $0x1c8] sm:$0xff]  ;;  %v2109_v55 = vpack.c.bf16 %v53_v50, %v52_v49 }
   0xd   :  { %2104 = vmatpush3.bf16.msra.mxu0 %v2103_v33  ;;  %v2139_v54 = vpack.c.bf16 %v67_v48, %v66_v47  ;;  %v36_v56 = vld [vmem:[%s3923_s1 + $0x40] sm:$0xff]  ;;  %v37_v57 = vld [vmem:[%s3923_s1 + $0x48] sm:$0xff]  ;;  %v2141_v61 = vpack.c.bf16 %v85_v53, %v84_v52  ;;  %v54_v63 = vld [vmem:[%s3923_s1 + $0xd0] sm:$0xff] }
   0xe   :  { %2106 = vmatprep.subr.bf16.mxu0 %v2105_v39  ;;  %v68_v58 = vld [vmem:[%s3923_s1 + $0x140] sm:$0xff]  ;;  %v69_v62 = vld [vmem:[%s3923_s1 + $0x148] sm:$0xff]  ;;  %v55_v0 = vld [vmem:[%s3923_s1 + $0xd8] sm:$0xff]  ;;  %v2111_v3 = vpack.c.bf16 %v37_v57, %v36_v56 }
   0xf   :  { %2136 = vmatpush3.bf16.msra.mxu1 %v2135_v38  ;;  %v86_v1 = vld [vmem:[%s3923_s1 + $0x1d0] sm:$0xff]  ;;  %v87_v2 = vld [vmem:[%s3923_s1 + $0x1d8] sm:$0xff]  ;;  %v2143_v5 = vpack.c.bf16 %v69_v62, %v68_v58  ;;  %v2113_v6 = vpack.c.bf16 %v55_v0, %v54_v63  ;;  %v56_v12 = vld [vmem:[%s3923_s1 + $0xe0] sm:$0xff] }
  0x10   :  { %2138 = vmatprep.subr.bf16.mxu1 %v2137_v46  ;;  %v38_v4 = vld [vmem:[%s3923_s1 + $0x50] sm:$0xff]  ;;  %v39_v7 = vld [vmem:[%s3923_s1 + $0x58] sm:$0xff]  ;;  %v2145_v11 = vpack.c.bf16 %v87_v2, %v86_v1  ;;  %v57_v13 = vld [vmem:[%s3923_s1 + $0xe8] sm:$0xff] }
  0x11   :  { %2108 = vmatpush3.bf16.msra.mxu0 %v2107_v51  ;;  %v70_v8 = vld [vmem:[%s3923_s1 + $0x150] sm:$0xff]  ;;  %v71_v9 = vld [vmem:[%s3923_s1 + $0x158] sm:$0xff]  ;;  %v88_v14 = vld [vmem:[%s3923_s1 + $0x1e0] sm:$0xff]  ;;  %v2115_v16 = vpack.c.bf16 %v39_v7, %v38_v4  ;;  %v2117_v19 = vpack.c.bf16 %v57_v13, %v56_v12 }
  0x12   :  { %2110 = vmatprep.subr.bf16.mxu0 %v2109_v55  ;;  %v89_v15 = vld [vmem:[%s3923_s1 + $0x1e8] sm:$0xff]  ;;  %v2147_v17 = vpack.c.bf16 %v71_v9, %v70_v8  ;;  %v21_v18 = vld [vmem:[%s3922_s0] sm:$0xff]  ;;  %v58_v27 = vld [vmem:[%s3923_s1 + $0xf0] sm:$0xff] }
  0x13   :  { %2140 = vmatpush3.bf16.msra.mxu1 %v2139_v54  ;;  %v40_v20 = vld [vmem:[%s3923_s1 + $0x60] sm:$0xff]  ;;  %v41_v21 = vld [vmem:[%s3923_s1 + $0x68] sm:$0xff]  ;;  %v441_v23 = vrot.slane %v21_v18, %v2727_v10  ;;  %v434_v24 = vcombine.high %v21_v18, %v21_v18  ;;  %v2149_v25 = vpack.c.bf16 %v89_v15, %v88_v14  ;;  %v59_v28 = vld [vmem:[%s3923_s1 + $0xf8] sm:$0xff] }
  0x14   :  { %2142 = vmatprep.subr.bf16.mxu1 %v2141_v61  ;;  %v72_v22 = vld [vmem:[%s3923_s1 + $0x160] sm:$0xff]  ;;  %v73_v26 = vld [vmem:[%s3923_s1 + $0x168] sm:$0xff]  ;;  %v90_v29 = vld [vmem:[%s3923_s1 + $0x1f0] sm:$0xff]  ;;  %v2119_v33 = vpack.c.bf16 %v41_v21, %v40_v20  ;;  %v2121_v35 = vpack.c.bf16 %v59_v28, %v58_v27 }
  0x15   :  { %2112 = vmatpush3.bf16.msra.mxu0 %v2111_v3  ;;  %v91_v30 = vld [vmem:[%s3923_s1 + $0x1f8] sm:$0xff]  ;;  %v449_v31 = vcombine.high %v441_v23, %v441_v23  ;;  %v448_v32 = vrot.slane %v434_v24, %v2727_v10  ;;  %v2151_v34 = vpack.c.bf16 %v73_v26, %v72_v22  ;;  %v42_v36 = vld [vmem:[%s3923_s1 + $0x70] sm:$0xff]  ;;  %v108_v42 = vld [vmem:[%s3923_s1 + $0x280] sm:$0xff] }
  0x16   :  { %2114 = vmatprep.subr.bf16.mxu0 %v2113_v6  ;;  %v43_v37 = vld [vmem:[%s3923_s1 + $0x78] sm:$0xff]  ;;  %v74_v38 = vld [vmem:[%s3923_s1 + $0x170] sm:$0xff]  ;;  %v2153_v40 = vpack.c.bf16 %v91_v30, %v90_v29  ;;  %v109_v43 = vld [vmem:[%s3923_s1 + $0x288] sm:$0xff] }
  0x17   :  { %2144 = vmatpush3.bf16.msra.mxu1 %v2143_v5  ;;  %v450_v39 = vcombine.high %v448_v32, %v448_v32  ;;  %634 = vmatprep.mubr.f32.mxu0 %v449_v31  ;;  %v75_v41 = vld [vmem:[%s3923_s1 + $0x178] sm:$0xff]  ;;  %v140_v44 = vld [vmem:[%s3923_s1 + $0x380] sm:$0xff]  ;;  %v141_v45 = vld [vmem:[%s3923_s1 + $0x388] sm:$0xff]  ;;  %v2123_v46 = vpack.c.bf16 %v43_v37, %v42_v36  ;;  %v2157_v48 = vpack.c.bf16 %v109_v43, %v108_v42 }
  0x18   :  { %2146 = vmatprep.subr.bf16.mxu1 %v2145_v11  ;;  %v2155_v47 = vpack.c.bf16 %v75_v41, %v74_v38  ;;  %v92_v49 = vld [vmem:[%s3923_s1 + $0x200] sm:$0xff]  ;;  %v93_v50 = vld [vmem:[%s3923_s1 + $0x208] sm:$0xff]  ;;  %v2189_v52 = vpack.c.bf16 %v141_v45, %v140_v44  ;;  %v110_v54 = vld [vmem:[%s3923_s1 + $0x290] sm:$0xff] }
  0x19   :  { %2116 = vmatpush3.bf16.msra.mxu0 %v2115_v16  ;;  %704 = vmatprep.mubr.f32.mxu1 %v450_v39  ;;  %v124_v51 = vld [vmem:[%s3923_s1 + $0x300] sm:$0xff]  ;;  %v125_v53 = vld [vmem:[%s3923_s1 + $0x308] sm:$0xff]  ;;  %v111_v55 = vld [vmem:[%s3923_s1 + $0x298] sm:$0xff]  ;;  %v2159_v58 = vpack.c.bf16 %v93_v50, %v92_v49 }
  0x1a   :  { %2118 = vmatprep.subr.bf16.mxu0 %v2117_v19  ;;  %v142_v56 = vld [vmem:[%s3923_s1 + $0x390] sm:$0xff]  ;;  %v143_v57 = vld [vmem:[%s3923_s1 + $0x398] sm:$0xff]  ;;  %v2191_v59 = vpack.c.bf16 %v125_v53, %v124_v51  ;;  %v2161_v60 = vpack.c.bf16 %v111_v55, %v110_v54  ;;  %v112_v2 = vld [vmem:[%s3923_s1 + $0x2a0] sm:$0xff] }
  0x1b   :  { %2148 = vmatpush3.bf16.msra.mxu1 %v2147_v17  ;;  %v94_v61 = vld [vmem:[%s3923_s1 + $0x210] sm:$0xff]  ;;  %v95_v62 = vld [vmem:[%s3923_s1 + $0x218] sm:$0xff]  ;;  %v2193_v0 = vpack.c.bf16 %v143_v57, %v142_v56  ;;  %v113_v3 = vld [vmem:[%s3923_s1 + $0x2a8] sm:$0xff] }
  0x1c   :  { %2150 = vmatprep.subr.bf16.mxu1 %v2149_v25  ;;  %v126_v63 = vld [vmem:[%s3923_s1 + $0x310] sm:$0xff]  ;;  %v127_v1 = vld [vmem:[%s3923_s1 + $0x318] sm:$0xff]  ;;  %v144_v4 = vld [vmem:[%s3923_s1 + $0x3a0] sm:$0xff]  ;;  %v2163_v6 = vpack.c.bf16 %v95_v62, %v94_v61  ;;  %v2165_v8 = vpack.c.bf16 %v113_v3, %v112_v2 }
  0x1d   :  { %2120 = vmatpush3.bf16.msra.mxu0 %v2119_v33  ;;  %v145_v5 = vld [vmem:[%s3923_s1 + $0x3a8] sm:$0xff]  ;;  %v2195_v7 = vpack.c.bf16 %v127_v1, %v126_v63  ;;  %v96_v9 = vld [vmem:[%s3923_s1 + $0x220] sm:$0xff]  ;;  %v114_v15 = vld [vmem:[%s3923_s1 + $0x2b0] sm:$0xff] }
  0x1e   :  { %2122 = vmatprep.subr.bf16.mxu0 %v2121_v35  ;;  %v97_v11 = vld [vmem:[%s3923_s1 + $0x228] sm:$0xff]  ;;  %v128_v12 = vld [vmem:[%s3923_s1 + $0x320] sm:$0xff]  ;;  %v2197_v13 = vpack.c.bf16 %v145_v5, %v144_v4  ;;  %v115_v16 = vld [vmem:[%s3923_s1 + $0x2b8] sm:$0xff] }
  0x1f   :  { %2152 = vmatpush3.bf16.msra.mxu1 %v2151_v34  ;;  %v129_v14 = vld [vmem:[%s3923_s1 + $0x328] sm:$0xff]  ;;  %v146_v17 = vld [vmem:[%s3923_s1 + $0x3b0] sm:$0xff]  ;;  %v147_v18 = vld [vmem:[%s3923_s1 + $0x3b8] sm:$0xff]  ;;  %v2167_v19 = vpack.c.bf16 %v97_v11, %v96_v9  ;;  %v2169_v22 = vpack.c.bf16 %v115_v16, %v114_v15 }
  0x20   :  { %2154 = vmatprep.subr.bf16.mxu1 %v2153_v40  ;;  %v98_v20 = vld [vmem:[%s3923_s1 + $0x230] sm:$0xff]  ;;  %v2199_v21 = vpack.c.bf16 %v129_v14, %v128_v12  ;;  %v131_v25 = vld [vmem:[%s3923_s1 + $0x338] sm:$0xff]  ;;  %v2201_v26 = vpack.c.bf16 %v147_v18, %v146_v17  ;;  %v116_v27 = vld [vmem:[%s3923_s1 + $0x2c0] sm:$0xff] }
  0x21   :  { %2124 = vmatpush3.bf16.msra.mxu0 %v2123_v46  ;;  %v130_v24 = vld [vmem:[%s3923_s1 + $0x330] sm:$0xff]  ;;  %v117_v28 = vld [vmem:[%s3923_s1 + $0x2c8] sm:$0xff]  ;;  %v148_v30 = vld [vmem:[%s3923_s1 + $0x3c0] sm:$0xff] }
  0x22   :  { %2158 = vmatprep.subr.bf16.mxu0 %v2157_v48  ;;  %v22_v29 = vld [vmem:[%s3922_s0 + $0x8] sm:$0xff]  ;;  %v2203_v35 = vpack.c.bf16 %v131_v25, %v130_v24  ;;  %v2173_v36 = vpack.c.bf16 %v117_v28, %v116_v27  ;;  %v100_v37 = vld [vmem:[%s3923_s1 + $0x240] sm:$0xff]  ;;  %v118_v44 = vld [vmem:[%s3923_s1 + $0x2d0] sm:$0xff] }
  0x23   :  { %2156 = vmatpush3.bf16.msra.mxu1 %v2155_v47  ;;  %v149_v31 = vld [vmem:[%s3923_s1 + $0x3c8] sm:$0xff]  ;;  %v451_v33 = vcombine.high %v22_v29, %v22_v29  ;;  %v132_v39 = vld [vmem:[%s3923_s1 + $0x340] sm:$0xff]  ;;  %v119_v45 = vld [vmem:[%s3923_s1 + $0x2d8] sm:$0xff] }
  0x24   :  { %2190 = vmatprep.subr.bf16.mxu1 %v2189_v52  ;;  %635 = vmatmul.mubr.f32.vlgmr.msra.gmra.mrb[0].mxu0 %v441_v23  ;;  %v99_v23 = vld [vmem:[%s3923_s1 + $0x238] sm:$0xff]  ;;  %v101_v38 = vld [vmem:[%s3923_s1 + $0x248] sm:$0xff]  ;;  %v2205_v42 = vpack.c.bf16 %v149_v31, %v148_v30  ;;  %v150_v46 = vld [vmem:[%s3923_s1 + $0x3d0] sm:$0xff]  ;;  %v2177_v51 = vpack.c.bf16 %v119_v45, %v118_v44 }
  0x25   :  { %2160 = vmatpush3.bf16.msra.mxu0 %v2159_v58  ;;  %v2171_v34 = vpack.c.bf16 %v99_v23, %v98_v20  ;;  %v2908_v41 = vrot.slane %v451_v33, %v2727_v10  ;;  %v133_v43 = vld [vmem:[%s3923_s1 + $0x348] sm:$0xff]  ;;  %v151_v47 = vld [vmem:[%s3923_s1 + $0x3d8] sm:$0xff]  ;;  %v2175_v49 = vpack.c.bf16 %v101_v38, %v100_v37  ;;  %v102_v52 = vld [vmem:[%s3923_s1 + $0x250] sm:$0xff] }
  0x26   :  { %705 = vmatmul.mubr.f32.vlgmr.msra.gmra.mrb[0].mxu1 %v448_v32  ;;  %2162 = vmatprep.subr.bf16.mxu0 %v2161_v60  ;;  %v2894_v32 = vrot.slane %v22_v29, %v2727_v10  ;;  %v2207_v50 = vpack.c.bf16 %v133_v43, %v132_v39  ;;  %v103_v53 = vld [vmem:[%s3923_s1 + $0x258] sm:$0xff]  ;;  %v134_v54 = vld [vmem:[%s3923_s1 + $0x350] sm:$0xff]  ;;  %v2209_v55 = vpack.c.bf16 %v151_v47, %v150_v46  ;;  %v120_v57 = vld [vmem:[%s3923_s1 + $0x2e0] sm:$0xff] }
  0x27   :  { %2192 = vmatpush3.bf16.msra.mxu1 %v2191_v59  ;;  %v467_v48 = vcombine.high %v2908_v41, %v2908_v41  ;;  %v135_v56 = vld [vmem:[%s3923_s1 + $0x358] sm:$0xff]  ;;  %v121_v58 = vld [vmem:[%s3923_s1 + $0x2e8] sm:$0xff]  ;;  %v152_v59 = vld [vmem:[%s3923_s1 + $0x3e0] sm:$0xff]  ;;  %v2179_v61 = vpack.c.bf16 %v103_v53, %v102_v52 }
  0x28   :  { %2194 = vmatprep.subr.bf16.mxu1 %v2193_v0  ;;  %v466_v40 = vcombine.high %v2894_v32, %v2894_v32  ;;  %v153_v60 = vld [vmem:[%s3923_s1 + $0x3e8] sm:$0xff]  ;;  %v2211_v62 = vpack.c.bf16 %v135_v56, %v134_v54  ;;  %v2181_v63 = vpack.c.bf16 %v121_v58, %v120_v57  ;;  %v104_v0 = vld [vmem:[%s3923_s1 + $0x260] sm:$0xff]  ;;  %v122_v5 = vld [vmem:[%s3923_s1 + $0x2f0] sm:$0xff] }
  0x29   :  { %2164 = vmatpush3.bf16.msra.mxu0 %v2163_v6  ;;  %844 = vmatprep.mubr.f32.mxu1 %v467_v48  ;;  %v105_v1 = vld [vmem:[%s3923_s1 + $0x268] sm:$0xff]  ;;  %v136_v2 = vld [vmem:[%s3923_s1 + $0x360] sm:$0xff]  ;;  %v2213_v3 = vpack.c.bf16 %v153_v60, %v152_v59  ;;  %v123_v6 = vld [vmem:[%s3923_s1 + $0x2f8] sm:$0xff] }
  0x2a   :  { %2166 = vmatprep.subr.bf16.mxu0 %v2165_v8  ;;  %774 = vmatprep.mubr.f32.mxu0 %v466_v40  ;;  %v137_v4 = vld [vmem:[%s3923_s1 + $0x368] sm:$0xff]  ;;  %v155_v8 = vld [vmem:[%s3923_s1 + $0x3f8] sm:$0xff]  ;;  %v2183_v9 = vpack.c.bf16 %v105_v1, %v104_v0  ;;  %v2185_v12 = vpack.c.bf16 %v123_v6, %v122_v5  ;;  %v138_v15 = vld [vmem:[%s3923_s1 + $0x370] sm:$0xff] }
  0x2b   :  { %2196 = vmatpush3.bf16.msra.mxu1 %v2195_v7  ;;  %v154_v7 = vld [vmem:[%s3923_s1 + $0x3f0] sm:$0xff]  ;;  %v2215_v11 = vpack.c.bf16 %v137_v4, %v136_v2  ;;  %v107_v14 = vld [vmem:[%s3923_s1 + $0x278] sm:$0xff]  ;;  %v172_v18 = vld [vmem:[%s3923_s1 + $0x480] sm:$0xff] }
  0x2c   :  { %2198 = vmatprep.subr.bf16.mxu1 %v2197_v13  ;;  %v106_v13 = vld [vmem:[%s3923_s1 + $0x270] sm:$0xff]  ;;  %v2217_v16 = vpack.c.bf16 %v155_v8, %v154_v7  ;;  %v139_v17 = vld [vmem:[%s3923_s1 + $0x378] sm:$0xff]  ;;  %v204_v20 = vld [vmem:[%s3923_s1 + $0x580] sm:$0xff] }
  0x2d   :  { %2168 = vmatpush3.bf16.msra.mxu0 %v2167_v19  ;;  %v173_v19 = vld [vmem:[%s3923_s1 + $0x488] sm:$0xff]  ;;  %v156_v23 = vld [vmem:[%s3923_s1 + $0x400] sm:$0xff]  ;;  %v2219_v24 = vpack.c.bf16 %v139_v17, %v138_v15  ;;  %v174_v30 = vld [vmem:[%s3923_s1 + $0x490] sm:$0xff] }
  0x2e   :  { %2170 = vmatprep.subr.bf16.mxu0 %v2169_v22  ;;  %v2187_v22 = vpack.c.bf16 %v107_v14, %v106_v13  ;;  %v2221_v25 = vpack.c.bf16 %v173_v19, %v172_v18  ;;  %v188_v27 = vld [vmem:[%s3923_s1 + $0x500] sm:$0xff]  ;;  %v189_v28 = vld [vmem:[%s3923_s1 + $0x508] sm:$0xff]  ;;  %v175_v31 = vld [vmem:[%s3923_s1 + $0x498] sm:$0xff] }
  0x2f   :  { %2200 = vmatpush3.bf16.msra.mxu1 %v2199_v21  ;;  %v205_v21 = vld [vmem:[%s3923_s1 + $0x588] sm:$0xff]  ;;  %v206_v33 = vld [vmem:[%s3923_s1 + $0x590] sm:$0xff]  ;;  %v2225_v38 = vpack.c.bf16 %v175_v31, %v174_v30  ;;  %v159_v40 = vld [vmem:[%s3923_s1 + $0x418] sm:$0xff] }
  0x30   :  { %2202 = vmatprep.subr.bf16.mxu1 %v2201_v26  ;;  %v157_v26 = vld [vmem:[%s3923_s1 + $0x408] sm:$0xff]  ;;  %v2253_v29 = vpack.c.bf16 %v205_v21, %v204_v20  ;;  %v23_v37 = vld [vmem:[%s3922_s0 + $0x10] sm:$0xff]  ;;  %v191_v46 = vld [vmem:[%s3923_s1 + $0x518] sm:$0xff] }
  0x31   :  { %2172 = vmatpush3.bf16.msra.mxu0 %v2171_v34  ;;  %v207_v34 = vld [vmem:[%s3923_s1 + $0x598] sm:$0xff]  ;;  %v158_v39 = vld [vmem:[%s3923_s1 + $0x410] sm:$0xff]  ;;  %v3036_v43 = vrot.slane %v23_v37, %v2727_v10  ;;  %v468_v44 = vcombine.high %v23_v37, %v23_v37  ;;  %v176_v47 = vld [vmem:[%s3923_s1 + $0x4a0] sm:$0xff] }
  0x32   :  { %2174 = vmatprep.subr.bf16.mxu0 %v2173_v36  ;;  %v2255_v36 = vpack.c.bf16 %v189_v28, %v188_v27  ;;  %v2257_v45 = vpack.c.bf16 %v207_v34, %v206_v33  ;;  %v177_v48 = vld [vmem:[%s3923_s1 + $0x4a8] sm:$0xff]  ;;  %v2227_v53 = vpack.c.bf16 %v159_v40, %v158_v39  ;;  %v192_v57 = vld [vmem:[%s3923_s1 + $0x520] sm:$0xff]  ;;  %v178_v60 = vld [vmem:[%s3923_s1 + $0x4b0] sm:$0xff] }
  0x33   :  { %2204 = vmatpush3.bf16.msra.mxu1 %v2203_v35  ;;  %v2223_v35 = vpack.c.bf16 %v157_v26, %v156_v23  ;;  %v3057_v52 = vrot.slane %v468_v44, %v2727_v10  ;;  %v2229_v54 = vpack.c.bf16 %v177_v48, %v176_v47  ;;  %v161_v56 = vld [vmem:[%s3923_s1 + $0x428] sm:$0xff]  ;;  %v163_v4 = vld [vmem:[%s3923_s1 + $0x438] sm:$0xff]  ;;  %v194_v5 = vld [vmem:[%s3923_s1 + $0x530] sm:$0xff] }
  0x34   :  { %2206 = vmatprep.subr.bf16.mxu1 %v2205_v42  ;;  %v190_v42 = vld [vmem:[%s3923_s1 + $0x510] sm:$0xff]  ;;  %v193_v59 = vld [vmem:[%s3923_s1 + $0x528] sm:$0xff]  ;;  %v195_v7 = vld [vmem:[%s3923_s1 + $0x538] sm:$0xff] }
  0x35   :  { %2176 = vmatpush3.bf16.msra.mxu0 %v2175_v49  ;;  %v208_v49 = vld [vmem:[%s3923_s1 + $0x5a0] sm:$0xff]  ;;  %v2263_v1 = vpack.c.bf16 %v193_v59, %v192_v57  ;;  %v2267_v14 = vpack.c.bf16 %v195_v7, %v194_v5  ;;  %v165_v17 = vld [vmem:[%s3923_s1 + $0x448] sm:$0xff]  ;;  %v182_v21 = vld [vmem:[%s3923_s1 + $0x4d0] sm:$0xff] }
  0x36   :  { %2178 = vmatprep.subr.bf16.mxu0 %v2177_v51  ;;  %v483_v51 = vcombine.high %v3036_v43, %v3036_v43  ;;  %v180_v8 = vld [vmem:[%s3923_s1 + $0x4c0] sm:$0xff]  ;;  %v197_v20 = vld [vmem:[%s3923_s1 + $0x548] sm:$0xff]  ;;  %v214_v23 = vld [vmem:[%s3923_s1 + $0x5d0] sm:$0xff] }
  0x37   :  { %2208 = vmatpush3.bf16.msra.mxu1 %v2207_v50  ;;  %v209_v50 = vld [vmem:[%s3923_s1 + $0x5a8] sm:$0xff]  ;;  %v196_v18 = vld [vmem:[%s3923_s1 + $0x540] sm:$0xff]  ;;  %v166_v28 = vld [vmem:[%s3923_s1 + $0x450] sm:$0xff] }
  0x38   :  { %2210 = vmatprep.subr.bf16.mxu1 %v2209_v55  ;;  %v160_v55 = vld [vmem:[%s3923_s1 + $0x420] sm:$0xff]  ;;  %v2261_v58 = vpack.c.bf16 %v209_v50, %v208_v49  ;;  %v2271_v26 = vpack.c.bf16 %v197_v20, %v196_v18  ;;  %v198_v30 = vld [vmem:[%s3923_s1 + $0x550] sm:$0xff]  ;;  %v199_v33 = vld [vmem:[%s3923_s1 + $0x558] sm:$0xff] }
  0x39   :  { %2180 = vmatpush3.bf16.msra.mxu0 %v2179_v61  ;;  %v179_v61 = vld [vmem:[%s3923_s1 + $0x4b8] sm:$0xff]  ;;  %v2231_v0 = vpack.c.bf16 %v161_v56, %v160_v55  ;;  %v184_v34 = vld [vmem:[%s3923_s1 + $0x4e0] sm:$0xff]  ;;  %v217_v37 = vld [vmem:[%s3923_s1 + $0x5e8] sm:$0xff]  ;;  %v2275_v39 = vpack.c.bf16 %v199_v33, %v198_v30 }
  0x3a   :  { %2182 = vmatprep.subr.bf16.mxu0 %v2181_v63  ;;  %v211_v63 = vld [vmem:[%s3923_s1 + $0x5b8] sm:$0xff]  ;;  %v2233_v2 = vpack.c.bf16 %v179_v61, %v178_v60  ;;  %v169_v44 = vld [vmem:[%s3923_s1 + $0x468] sm:$0xff]  ;;  %v186_v48 = vld [vmem:[%s3923_s1 + $0x4f0] sm:$0xff] }
  0x3b   :  { %2212 = vmatpush3.bf16.msra.mxu1 %v2211_v62  ;;  %v210_v62 = vld [vmem:[%s3923_s1 + $0x5b0] sm:$0xff]  ;;  %v201_v47 = vld [vmem:[%s3923_s1 + $0x568] sm:$0xff]  ;;  %v187_v49 = vld [vmem:[%s3923_s1 + $0x4f8] sm:$0xff] }
  0x3c   :  { %2214 = vmatprep.subr.bf16.mxu1 %v2213_v3  ;;  %v162_v3 = vld [vmem:[%s3923_s1 + $0x430] sm:$0xff]  ;;  %v2265_v6 = vpack.c.bf16 %v211_v63, %v210_v62  ;;  %v2249_v55 = vpack.c.bf16 %v187_v49, %v186_v48  ;;  %v171_v57 = vld [vmem:[%s3923_s1 + $0x478] sm:$0xff]  ;;  %v236_v60 = vld [vmem:[%s3923_s1 + $0x680] sm:$0xff] }
  0x3d   :  { %2184 = vmatpush3.bf16.msra.mxu0 %v2183_v9  ;;  %v181_v9 = vld [vmem:[%s3923_s1 + $0x4c8] sm:$0xff]  ;;  %v2235_v13 = vpack.c.bf16 %v163_v4, %v162_v3  ;;  %v218_v50 = vld [vmem:[%s3923_s1 + $0x5f0] sm:$0xff]  ;;  %v203_v59 = vld [vmem:[%s3923_s1 + $0x578] sm:$0xff] }
  0x3e   :  { %2186 = vmatprep.subr.bf16.mxu0 %v2185_v12  ;;  %v213_v12 = vld [vmem:[%s3923_s1 + $0x5c8] sm:$0xff]  ;;  %v2237_v15 = vpack.c.bf16 %v181_v9, %v180_v8  ;;  %v170_v56 = vld [vmem:[%s3923_s1 + $0x470] sm:$0xff]  ;;  %v268_v62 = vld [vmem:[%s3923_s1 + $0x780] sm:$0xff] }
  0x3f   :  { %2216 = vmatpush3.bf16.msra.mxu1 %v2215_v11  ;;  %v212_v11 = vld [vmem:[%s3923_s1 + $0x5c0] sm:$0xff]  ;;  %v237_v61 = vld [vmem:[%s3923_s1 + $0x688] sm:$0xff]  ;;  %v238_v9 = vld [vmem:[%s3923_s1 + $0x690] sm:$0xff] }
  0x40   :  { %2218 = vmatprep.subr.bf16.mxu1 %v2217_v16  ;;  %v164_v16 = vld [vmem:[%s3923_s1 + $0x440] sm:$0xff]  ;;  %v2269_v19 = vpack.c.bf16 %v213_v12, %v212_v11  ;;  %v269_v63 = vld [vmem:[%s3923_s1 + $0x788] sm:$0xff]  ;;  %v2285_v3 = vpack.c.bf16 %v237_v61, %v236_v60  ;;  %v239_v11 = vld [vmem:[%s3923_s1 + $0x698] sm:$0xff] }
  0x41   :  { %2188 = vmatpush3.bf16.msra.mxu0 %v2187_v22  ;;  %v183_v22 = vld [vmem:[%s3923_s1 + $0x4d8] sm:$0xff]  ;;  %v220_v4 = vld [vmem:[%s3923_s1 + $0x600] sm:$0xff]  ;;  %v221_v5 = vld [vmem:[%s3923_s1 + $0x608] sm:$0xff]  ;;  %v2317_v7 = vpack.c.bf16 %v269_v63, %v268_v62  ;;  %v2289_v18 = vpack.c.bf16 %v239_v11, %v238_v9 }
  0x42   :  { %2222 = vmatprep.subr.bf16.mxu0 %v2221_v25  ;;  %v2239_v25 = vpack.c.bf16 %v165_v17, %v164_v16  ;;  %v2241_v27 = vpack.c.bf16 %v183_v22, %v182_v21  ;;  %v253_v8 = vld [vmem:[%s3923_s1 + $0x708] sm:$0xff]  ;;  %v2287_v16 = vpack.c.bf16 %v221_v5, %v220_v4  ;;  %v223_v20 = vld [vmem:[%s3923_s1 + $0x618] sm:$0xff]  ;;  %v254_v21 = vld [vmem:[%s3923_s1 + $0x710] sm:$0xff] }
  0x43   :  { %2220 = vmatpush3.bf16.msra.mxu1 %v2219_v24  ;;  %v215_v24 = vld [vmem:[%s3923_s1 + $0x5d8] sm:$0xff]  ;;  %v258_v48 = vld [vmem:[%s3923_s1 + $0x730] sm:$0xff]  ;;  %v261_v61 = vld [vmem:[%s3923_s1 + $0x748] sm:$0xff] }
  0x44   :  { %2254 = vmatprep.subr.bf16.mxu1 %v2253_v29  ;;  %775 = vmatmul.mubr.f32.vlgmr.msra.gmra.mrb[2].mxu0 %v2894_v32  ;;  %v2259_v32 = vpack.c.bf16 %v191_v46, %v190_v42  ;;  %v167_v29 = vld [vmem:[%s3923_s1 + $0x458] sm:$0xff]  ;;  %v2273_v31 = vpack.c.bf16 %v215_v24, %v214_v23  ;;  %v168_v42 = vld [vmem:[%s3923_s1 + $0x460] sm:$0xff]  ;;  %v246_v62 = vld [vmem:[%s3923_s1 + $0x6d0] sm:$0xff] }
  0x45   :  { %2224 = vmatpush3.bf16.msra.mxu0 %v2223_v35  ;;  %914 = vmatprep.mubr.f32.mxu0 %v483_v51  ;;  %v185_v35 = vld [vmem:[%s3923_s1 + $0x4e8] sm:$0xff]  ;;  %v219_v51 = vld [vmem:[%s3923_s1 + $0x5f8] sm:$0xff]  ;;  %v240_v24 = vld [vmem:[%s3923_s1 + $0x6a0] sm:$0xff] }
  0x46   :  { %845 = vmatmul.mubr.f32.vlgmr.msra.gmra.mrb[2].mxu1 %v2908_v41  ;;  %2226 = vmatprep.subr.bf16.mxu0 %v2225_v38  ;;  %v484_v41 = vcombine.high %v3057_v52, %v3057_v52  ;;  %v2243_v38 = vpack.c.bf16 %v167_v29, %v166_v28  ;;  %v2245_v40 = vpack.c.bf16 %v185_v35, %v184_v34  ;;  %v255_v23 = vld [vmem:[%s3923_s1 + $0x718] sm:$0xff]  ;;  %v273_v28 = vld [vmem:[%s3923_s1 + $0x7a8] sm:$0xff]  ;;  %v256_v35 = vld [vmem:[%s3923_s1 + $0x720] sm:$0xff] }
  0x47   :  { %2256 = vmatpush3.bf16.msra.mxu1 %v2255_v36  ;;  %v216_v36 = vld [vmem:[%s3923_s1 + $0x5e0] sm:$0xff]  ;;  %v225_v34 = vld [vmem:[%s3923_s1 + $0x628] sm:$0xff]  ;;  %v247_v63 = vld [vmem:[%s3923_s1 + $0x6d8] sm:$0xff] }
  0x48   :  { %2258 = vmatprep.subr.bf16.mxu1 %v2257_v45  ;;  %984 = vmatprep.mubr.f32.mxu1 %v484_v41  ;;  %v200_v45 = vld [vmem:[%s3923_s1 + $0x560] sm:$0xff]  ;;  %v2277_v46 = vpack.c.bf16 %v217_v37, %v216_v36  ;;  %v202_v41 = vld [vmem:[%s3923_s1 + $0x570] sm:$0xff]  ;;  %v2305_v4 = vpack.c.bf16 %v247_v63, %v246_v62  ;;  %v263_v9 = vld [vmem:[%s3923_s1 + $0x758] sm:$0xff] }
  0x49   :  { %2228 = vmatpush3.bf16.msra.mxu0 %v2227_v53  ;;  %v2247_v53 = vpack.c.bf16 %v169_v44, %v168_v42  ;;  %v242_v37 = vld [vmem:[%s3923_s1 + $0x6b0] sm:$0xff]  ;;  %v248_v11 = vld [vmem:[%s3923_s1 + $0x6e0] sm:$0xff] }
  0x4a   :  { %2230 = vmatprep.subr.bf16.mxu0 %v2229_v54  ;;  %v2279_v54 = vpack.c.bf16 %v201_v47, %v200_v45  ;;  %v227_v47 = vld [vmem:[%s3923_s1 + $0x638] sm:$0xff]  ;;  %v230_v5 = vld [vmem:[%s3923_s1 + $0x650] sm:$0xff] }
  0x4b   :  { %2260 = vmatpush3.bf16.msra.mxu1 %v2259_v32  ;;  %v24_v32 = vld [vmem:[%s3922_s0 + $0x18] sm:$0xff]  ;;  %v318_v62 = vld [vmem:[%s3923_s1 + $0x910] sm:$0xff] }
  0x4c   :  { %2262 = vmatprep.subr.bf16.mxu1 %v2261_v58  ;;  %v2281_v58 = vpack.c.bf16 %v219_v51, %v218_v50  ;;  %v3228_v12 = vrot.slane %v24_v32, %v2727_v10  ;;  %v259_v50 = vld [vmem:[%s3923_s1 + $0x738] sm:$0xff]  ;;  %v244_v51 = vld [vmem:[%s3923_s1 + $0x6c0] sm:$0xff] }
  0x4d   :  { %2232 = vmatpush3.bf16.msra.mxu0 %v2231_v0  ;;  %v485_v0 = vcombine.high %v24_v32, %v24_v32  ;;  %v276_v32 = vld [vmem:[%s3923_s1 + $0x7c0] sm:$0xff] }
  0x4e   :  { %2234 = vmatprep.subr.bf16.mxu0 %v2233_v2  ;;  %v2283_v2 = vpack.c.bf16 %v203_v59, %v202_v41  ;;  %v228_v41 = vld [vmem:[%s3923_s1 + $0x640] sm:$0xff] }
  0x4f   :  { %2264 = vmatpush3.bf16.msra.mxu1 %v2263_v1  ;;  %v2251_v1 = vpack.c.bf16 %v171_v57, %v170_v56  ;;  %v2331_v56 = vpack.c.bf16 %v259_v50, %v258_v48  ;;  %v260_v59 = vld [vmem:[%s3923_s1 + $0x740] sm:$0xff]  ;;  %v285_v48 = vld [vmem:[%s3923_s1 + $0x808] sm:$0xff] }
  0x50   :  { %2266 = vmatprep.subr.bf16.mxu1 %v2265_v6  ;;  %v252_v6 = vld [vmem:[%s3923_s1 + $0x700] sm:$0xff] }
  0x51   :  { %2236 = vmatpush3.bf16.msra.mxu0 %v2235_v13  ;;  %v270_v13 = vld [vmem:[%s3923_s1 + $0x790] sm:$0xff]  ;;  %v2319_v17 = vpack.c.bf16 %v253_v8, %v252_v6  ;;  %v231_v6 = vld [vmem:[%s3923_s1 + $0x658] sm:$0xff] }
  0x52   :  { %2238 = vmatprep.subr.bf16.mxu0 %v2237_v15  ;;  %v3237_v15 = vrot.slane %v485_v0, %v2727_v10  ;;  %v278_v0 = vld [vmem:[%s3923_s1 + $0x7d0] sm:$0xff] }
  0x53   :  { %2268 = vmatpush3.bf16.msra.mxu1 %v2267_v14  ;;  %v271_v14 = vld [vmem:[%s3923_s1 + $0x798] sm:$0xff] }
  0x54   :  { %2270 = vmatprep.subr.bf16.mxu1 %v2269_v19  ;;  %v222_v19 = vld [vmem:[%s3923_s1 + $0x610] sm:$0xff]  ;;  %v2321_v22 = vpack.c.bf16 %v271_v14, %v270_v13  ;;  %v501_v29 = vcombine.high %v3237_v15, %v3237_v15  ;;  %v249_v13 = vld [vmem:[%s3923_s1 + $0x6e8] sm:$0xff]  ;;  %v280_v14 = vld [vmem:[%s3923_s1 + $0x7e0] sm:$0xff] }
  0x55   :  { %2240 = vmatpush3.bf16.msra.mxu0 %v2239_v25  ;;  %v241_v25 = vld [vmem:[%s3923_s1 + $0x6a8] sm:$0xff]  ;;  %v2291_v30 = vpack.c.bf16 %v223_v20, %v222_v19  ;;  %v2309_v19 = vpack.c.bf16 %v249_v13, %v248_v11  ;;  %v232_v20 = vld [vmem:[%s3923_s1 + $0x660] sm:$0xff] }
  0x56   :  { %2242 = vmatprep.subr.bf16.mxu0 %v2241_v27  ;;  %v272_v27 = vld [vmem:[%s3923_s1 + $0x7a0] sm:$0xff]  ;;  %v2293_v33 = vpack.c.bf16 %v241_v25, %v240_v24  ;;  %v265_v24 = vld [vmem:[%s3923_s1 + $0x768] sm:$0xff]  ;;  %v250_v25 = vld [vmem:[%s3923_s1 + $0x6f0] sm:$0xff] }
  0x57   :  { %2272 = vmatpush3.bf16.msra.mxu1 %v2271_v26  ;;  %v500_v26 = vcombine.high %v3228_v12, %v3228_v12  ;;  %v2325_v36 = vpack.c.bf16 %v273_v28, %v272_v27  ;;  %v282_v27 = vld [vmem:[%s3923_s1 + $0x7f0] sm:$0xff]  ;;  %v283_v28 = vld [vmem:[%s3923_s1 + $0x7f8] sm:$0xff]  ;;  %v289_v11 = vld [vmem:[%s3923_s1 + $0x828] sm:$0xff] }
  0x58   :  { %2274 = vmatprep.subr.bf16.mxu1 %v2273_v31  ;;  %v2323_v31 = vpack.c.bf16 %v255_v23, %v254_v21  ;;  %v233_v21 = vld [vmem:[%s3923_s1 + $0x668] sm:$0xff]  ;;  %v320_v13 = vld [vmem:[%s3923_s1 + $0x920] sm:$0xff] }
  0x59   :  { %2244 = vmatpush3.bf16.msra.mxu0 %v2243_v38  ;;  %v243_v38 = vld [vmem:[%s3923_s1 + $0x6b8] sm:$0xff] }
  0x5a   :  { %2246 = vmatprep.subr.bf16.mxu0 %v2245_v40  ;;  %v275_v40 = vld [vmem:[%s3923_s1 + $0x7b8] sm:$0xff]  ;;  %v2297_v45 = vpack.c.bf16 %v243_v38, %v242_v37  ;;  %v300_v37 = vld [vmem:[%s3923_s1 + $0x880] sm:$0xff]  ;;  %v301_v38 = vld [vmem:[%s3923_s1 + $0x888] sm:$0xff] }
  0x5b   :  { %2276 = vmatpush3.bf16.msra.mxu1 %v2275_v39  ;;  %v274_v39 = vld [vmem:[%s3923_s1 + $0x7b0] sm:$0xff] }
  0x5c   :  { %2278 = vmatprep.subr.bf16.mxu1 %v2277_v46  ;;  %v226_v46 = vld [vmem:[%s3923_s1 + $0x630] sm:$0xff]  ;;  %v2329_v49 = vpack.c.bf16 %v275_v40, %v274_v39  ;;  %v332_v39 = vld [vmem:[%s3923_s1 + $0x980] sm:$0xff]  ;;  %v333_v40 = vld [vmem:[%s3923_s1 + $0x988] sm:$0xff] }
  0x5d   :  { %2248 = vmatpush3.bf16.msra.mxu0 %v2247_v53  ;;  %v245_v53 = vld [vmem:[%s3923_s1 + $0x6c8] sm:$0xff]  ;;  %v2381_v50 = vpack.c.bf16 %v333_v40, %v332_v39 }
  0x5e   :  { %2250 = vmatprep.subr.bf16.mxu0 %v2249_v55  ;;  %v2299_v55 = vpack.c.bf16 %v227_v47, %v226_v46  ;;  %v2301_v57 = vpack.c.bf16 %v245_v53, %v244_v51  ;;  %v2349_v46 = vpack.c.bf16 %v301_v38, %v300_v37  ;;  %v284_v47 = vld [vmem:[%s3923_s1 + $0x800] sm:$0xff]  ;;  %v317_v51 = vld [vmem:[%s3923_s1 + $0x908] sm:$0xff]  ;;  %v302_v53 = vld [vmem:[%s3923_s1 + $0x890] sm:$0xff] }
  0x5f   :  { %2280 = vmatpush3.bf16.msra.mxu1 %v2279_v54  ;;  %v277_v54 = vld [vmem:[%s3923_s1 + $0x7c8] sm:$0xff] }
  0x60   :  { %2282 = vmatprep.subr.bf16.mxu1 %v2281_v58  ;;  %v229_v58 = vld [vmem:[%s3923_s1 + $0x648] sm:$0xff]  ;;  %v2333_v60 = vpack.c.bf16 %v277_v54, %v276_v32  ;;  %v303_v32 = vld [vmem:[%s3923_s1 + $0x898] sm:$0xff] }
  0x61   :  { %2252 = vmatpush3.bf16.msra.mxu0 %v2251_v1  ;;  %v279_v1 = vld [vmem:[%s3923_s1 + $0x7d8] sm:$0xff] }
  0x62   :  { %2286 = vmatprep.subr.bf16.mxu0 %v2285_v3  ;;  %v2335_v3 = vpack.c.bf16 %v261_v61, %v260_v59  ;;  %v2337_v8 = vpack.c.bf16 %v279_v1, %v278_v0  ;;  %v2353_v59 = vpack.c.bf16 %v303_v32, %v302_v53  ;;  %v287_v61 = vld [vmem:[%s3923_s1 + $0x818] sm:$0xff]  ;;  %v304_v1 = vld [vmem:[%s3923_s1 + $0x8a0] sm:$0xff] }
  0x63   :  { %2284 = vmatpush3.bf16.msra.mxu1 %v2283_v2  ;;  %v2303_v2 = vpack.c.bf16 %v229_v58, %v228_v41  ;;  %v2351_v41 = vpack.c.bf16 %v285_v48, %v284_v47  ;;  %v319_v0 = vld [vmem:[%s3923_s1 + $0x918] sm:$0xff] }
  0x64   :  { %2318 = vmatprep.subr.bf16.mxu1 %v2317_v7  ;;  %915 = vmatmul.mubr.f32.vlgmr.msra.gmra.mrb[4].mxu0 %v3036_v43  ;;  %v224_v43 = vld [vmem:[%s3923_s1 + $0x620] sm:$0xff]  ;;  %v262_v7 = vld [vmem:[%s3923_s1 + $0x750] sm:$0xff] }
  0x65   :  { %2288 = vmatpush3.bf16.msra.mxu0 %v2287_v16  ;;  %1054 = vmatprep.mubr.f32.mxu0 %v500_v26  ;;  %v2295_v42 = vpack.c.bf16 %v225_v34, %v224_v43  ;;  %v281_v16 = vld [vmem:[%s3923_s1 + $0x7e8] sm:$0xff]  ;;  %v251_v26 = vld [vmem:[%s3923_s1 + $0x6f8] sm:$0xff]  ;;  %v234_v43 = vld [vmem:[%s3923_s1 + $0x670] sm:$0xff] }
  0x66   :  { %985 = vmatmul.mubr.f32.vlgmr.msra.gmra.mrb[4].mxu1 %v3057_v52  ;;  %2290 = vmatprep.subr.bf16.mxu0 %v2289_v18  ;;  %v257_v52 = vld [vmem:[%s3923_s1 + $0x728] sm:$0xff]  ;;  %v2339_v18 = vpack.c.bf16 %v263_v9, %v262_v7  ;;  %v2341_v23 = vpack.c.bf16 %v281_v16, %v280_v14  ;;  %v235_v34 = vld [vmem:[%s3923_s1 + $0x678] sm:$0xff] }
  0x67   :  { %2320 = vmatpush3.bf16.msra.mxu1 %v2319_v17  ;;  %1124 = vmatprep.mubr.f32.mxu1 %v501_v29  ;;  %v2327_v44 = vpack.c.bf16 %v257_v52, %v256_v35  ;;  %v2307_v17 = vpack.c.bf16 %v231_v6, %v230_v5  ;;  %v2311_v29 = vpack.c.bf16 %v233_v21, %v232_v20  ;;  %v266_v35 = vld [vmem:[%s3923_s1 + $0x770] sm:$0xff]  ;;  %v267_v52 = vld [vmem:[%s3923_s1 + $0x778] sm:$0xff]  ;;  %v337_v5 = vld [vmem:[%s3923_s1 + $0x9a8] sm:$0xff] }
  0x68   :  { %2322 = vmatprep.subr.bf16.mxu1 %v2321_v22  ;;  %v264_v22 = vld [vmem:[%s3923_s1 + $0x760] sm:$0xff] }
  0x69   :  { %2292 = vmatpush3.bf16.msra.mxu0 %v2291_v30  ;;  %v25_v30 = vld [vmem:[%s3922_s0 + $0x20] sm:$0xff] }
  0x6a   :  { %2294 = vmatprep.subr.bf16.mxu0 %v2293_v33  ;;  %v2313_v33 = vpack.c.bf16 %v251_v26, %v250_v25  ;;  %v3435_v54 = vrot.slane %v25_v30, %v2727_v10 }
  0x6b   :  { %2324 = vmatpush3.bf16.msra.mxu1 %v2323_v31  ;;  %v2343_v31 = vpack.c.bf16 %v265_v24, %v264_v22 }
  0x6c   :  { %2326 = vmatprep.subr.bf16.mxu1 %v2325_v36  ;;  %v2345_v36 = vpack.c.bf16 %v283_v28, %v282_v27 }
  0x6d   :  { %2296 = vmatpush3.bf16.msra.mxu0 %v2295_v42  ;;  %v502_v42 = vcombine.high %v25_v30, %v25_v30 }
  0x6e   :  { %2298 = vmatprep.subr.bf16.mxu0 %v2297_v45  ;;  %v2347_v45 = vpack.c.bf16 %v267_v52, %v266_v35 }
  0x6f   :  { %2328 = vmatpush3.bf16.msra.mxu1 %v2327_v44  ;;  %v2315_v44 = vpack.c.bf16 %v235_v34, %v234_v43 }
  0x70   :  { %2330 = vmatprep.subr.bf16.mxu1 %v2329_v49  ;;  %v316_v49 = vld [vmem:[%s3923_s1 + $0x900] sm:$0xff] }
  0x71   :  { %2300 = vmatpush3.bf16.msra.mxu0 %v2299_v55  ;;  %v334_v55 = vld [vmem:[%s3923_s1 + $0x990] sm:$0xff]  ;;  %v2383_v58 = vpack.c.bf16 %v317_v51, %v316_v49 }
  0x72   :  { %2302 = vmatprep.subr.bf16.mxu0 %v2301_v57  ;;  %v3444_v57 = vrot.slane %v502_v42, %v2727_v10 }
  0x73   :  { %2332 = vmatpush3.bf16.msra.mxu1 %v2331_v56  ;;  %v335_v56 = vld [vmem:[%s3923_s1 + $0x998] sm:$0xff] }
  0x74   :  { %2334 = vmatprep.subr.bf16.mxu1 %v2333_v60  ;;  %v286_v60 = vld [vmem:[%s3923_s1 + $0x810] sm:$0xff]  ;;  %v2385_v63 = vpack.c.bf16 %v335_v56, %v334_v55  ;;  %v518_v6 = vcombine.high %v3444_v57, %v3444_v57 }
  0x75   :  { %2304 = vmatpush3.bf16.msra.mxu0 %v2303_v2  ;;  %v305_v2 = vld [vmem:[%s3923_s1 + $0x8a8] sm:$0xff]  ;;  %v2355_v7 = vpack.c.bf16 %v287_v61, %v286_v60 }
  0x76   :  { %2306 = vmatprep.subr.bf16.mxu0 %v2305_v4  ;;  %v336_v4 = vld [vmem:[%s3923_s1 + $0x9a0] sm:$0xff]  ;;  %v2357_v9 = vpack.c.bf16 %v305_v2, %v304_v1 }
  0x77   :  { %2336 = vmatpush3.bf16.msra.mxu1 %v2335_v3  ;;  %v517_v3 = vcombine.high %v3435_v54, %v3435_v54 }
  0x78   :  { %2338 = vmatprep.subr.bf16.mxu1 %v2337_v8  ;;  %v288_v8 = vld [vmem:[%s3923_s1 + $0x820] sm:$0xff] }
  0x79   :  { %2308 = vmatpush3.bf16.msra.mxu0 %v2307_v17 }
  0x7a   :  { %2310 = vmatprep.subr.bf16.mxu0 %v2309_v19 }
  0x7b   :  { %2340 = vmatpush3.bf16.msra.mxu1 %v2339_v18 }
  0x7c   :  { %2342 = vmatprep.subr.bf16.mxu1 %v2341_v23 }
  0x7d   :  { %2312 = vmatpush3.bf16.msra.mxu0 %v2311_v29 }
  0x7e   :  { %2314 = vmatprep.subr.bf16.mxu0 %v2313_v33 }
  0x7f   :  { %2344 = vmatpush3.bf16.msra.mxu1 %v2343_v31 }
  0x80   :  { %2346 = vmatprep.subr.bf16.mxu1 %v2345_v36 }
  0x81   :  { %2316 = vmatpush3.bf16.msra.mxu0 %v2315_v44 }
  0x82   :  { %2350 = vmatprep.subr.bf16.mxu0 %v2349_v46 }
  0x83   :  { %2348 = vmatpush3.bf16.msra.mxu1 %v2347_v45 }
  0x84   :  { %2382 = vmatprep.subr.bf16.mxu1 %v2381_v50  ;;  %1055 = vmatmul.mubr.f32.vlgmr.msra.gmra.mrb[6].mxu0 %v3228_v12  ;;  %v2387_v12 = vpack.c.bf16 %v319_v0, %v318_v62 }
  0x85   :  { %2352 = vmatpush3.bf16.msra.mxu0 %v2351_v41 }
  0x86   :  { %1125 = vmatmul.mubr.f32.vlgmr.msra.gmra.mrb[6].mxu1 %v3237_v15  ;;  %2354 = vmatprep.subr.bf16.mxu0 %v2353_v59 }
  0x87   :  { %2384 = vmatpush3.bf16.msra.mxu1 %v2383_v58 }
  0x88   :  { %10 = vsyncpa [#allocation3], 0  ;;  %2386 = vmatprep.subr.bf16.mxu1 %v2385_v63  ;;  %v2389_v15 = vpack.c.bf16 %v337_v5, %v336_v4  ;;  %v321_v14 = vld [vmem:[%s3923_s1 + $0x928] sm:$0xff]  ;;  %v306_v16 = vld [vmem:[%s3923_s1 + $0x8b0] sm:$0xff]  ;;  %1194 = vmatprep.mubr.f32.mxu0 %v517_v3  ;;  %v2359_v20 = vpack.c.bf16 %v289_v11, %v288_v8  ;;  %vm2550_vm0 = vmmov 0   ;;  %vm567_vm1 = vcmask 523264  }
  0x89   :  { %v307_v17 = vld [vmem:[%s3923_s1 + $0x8b8] sm:$0xff]  ;;  %v338_v18 = vld [vmem:[%s3923_s1 + $0x9b0] sm:$0xff]  ;;  %1264 = vmatprep.mubr.f32.mxu1 %v518_v6  ;;  %2356 = vmatpush3.bf16.msra.mxu0 %v2355_v7  ;;  %v2391_v21 = vpack.c.bf16 %v321_v14, %v320_v13  ;;  %v308_v28 = vld [vmem:[%s3923_s1 + $0x8c0] sm:$0xff]  ;;  %s2552_s21 = smov [#allocation2]  }
  0x8a   :  { %v339_v19 = vld [vmem:[%s3923_s1 + $0x9b8] sm:$0xff]  ;;  %2358 = vmatprep.subr.bf16.mxu0 %v2357_v9  ;;  %v2361_v22 = vpack.c.bf16 %v307_v17, %v306_v16  ;;  %v290_v23 = vld [vmem:[%s3923_s1 + $0x830] sm:$0xff]  ;;  %v309_v29 = vld [vmem:[%s3923_s1 + $0x8c8] sm:$0xff] }
  0x8b   :  { %2388 = vmatpush3.bf16.msra.mxu1 %v2387_v12  ;;  %v291_v24 = vld [vmem:[%s3923_s1 + $0x838] sm:$0xff]  ;;  %v322_v25 = vld [vmem:[%s3923_s1 + $0x930] sm:$0xff]  ;;  %v2393_v26 = vpack.c.bf16 %v339_v19, %v338_v18  ;;  %v340_v30 = vld [vmem:[%s3923_s1 + $0x9c0] sm:$0xff]  ;;  %v2365_v34 = vpack.c.bf16 %v309_v29, %v308_v28 }
  0x8c   :  { %2390 = vmatprep.subr.bf16.mxu1 %v2389_v15  ;;  %v323_v27 = vld [vmem:[%s3923_s1 + $0x938] sm:$0xff]  ;;  %v341_v31 = vld [vmem:[%s3923_s1 + $0x9c8] sm:$0xff]  ;;  %v2363_v33 = vpack.c.bf16 %v291_v24, %v290_v23  ;;  %v292_v35 = vld [vmem:[%s3923_s1 + $0x840] sm:$0xff] }
  0x8d   :  { %2360 = vmatpush3.bf16.msra.mxu0 %v2359_v20  ;;  %v2395_v43 = vpack.c.bf16 %v323_v27, %v322_v25  ;;  %v293_v36 = vld [vmem:[%s3923_s1 + $0x848] sm:$0xff]  ;;  %v324_v52 = vld [vmem:[%s3923_s1 + $0x940] sm:$0xff]  ;;  %v2397_v37 = vpack.c.bf16 %v341_v31, %v340_v30  ;;  %v310_v39 = vld [vmem:[%s3923_s1 + $0x8d0] sm:$0xff] }
  0x8e   :  { %2362 = vmatprep.subr.bf16.mxu0 %v2361_v22  ;;  %v325_v38 = vld [vmem:[%s3923_s1 + $0x948] sm:$0xff]  ;;  %v311_v40 = vld [vmem:[%s3923_s1 + $0x8d8] sm:$0xff]  ;;  %v342_v42 = vld [vmem:[%s3923_s1 + $0x9d0] sm:$0xff]  ;;  %v2367_v45 = vpack.c.bf16 %v293_v36, %v292_v35 }
  0x8f   :  { %2392 = vmatpush3.bf16.msra.mxu1 %v2391_v21  ;;  %v343_v44 = vld [vmem:[%s3923_s1 + $0x9d8] sm:$0xff]  ;;  %v2399_v46 = vpack.c.bf16 %v325_v38, %v324_v52  ;;  %v2369_v47 = vpack.c.bf16 %v311_v40, %v310_v39  ;;  %v294_v48 = vld [vmem:[%s3923_s1 + $0x850] sm:$0xff]  ;;  %v312_v32 = vld [vmem:[%s3923_s1 + $0x8e0] sm:$0xff] }
  0x90   :  { %2394 = vmatprep.subr.bf16.mxu1 %v2393_v26  ;;  %v295_v49 = vld [vmem:[%s3923_s1 + $0x858] sm:$0xff]  ;;  %v326_v50 = vld [vmem:[%s3923_s1 + $0x950] sm:$0xff]  ;;  %v2401_v51 = vpack.c.bf16 %v343_v44, %v342_v42  ;;  %v313_v55 = vld [vmem:[%s3923_s1 + $0x8e8] sm:$0xff] }
  0x91   :  { %2364 = vmatpush3.bf16.msra.mxu0 %v2363_v33  ;;  %v327_v53 = vld [vmem:[%s3923_s1 + $0x958] sm:$0xff]  ;;  %v344_v56 = vld [vmem:[%s3923_s1 + $0x9e0] sm:$0xff]  ;;  %v345_v41 = vld [vmem:[%s3923_s1 + $0x9e8] sm:$0xff]  ;;  %v2371_v58 = vpack.c.bf16 %v295_v49, %v294_v48  ;;  %v2373_v60 = vpack.c.bf16 %v313_v55, %v312_v32 }
  0x92   :  { %2366 = vmatprep.subr.bf16.mxu0 %v2365_v34  ;;  %v2403_v59 = vpack.c.bf16 %v327_v53, %v326_v50  ;;  %v296_v61 = vld [vmem:[%s3923_s1 + $0x860] sm:$0xff]  ;;  %v297_v62 = vld [vmem:[%s3923_s1 + $0x868] sm:$0xff]  ;;  %v2405_v0 = vpack.c.bf16 %v345_v41, %v344_v56  ;;  %v314_v2 = vld [vmem:[%s3923_s1 + $0x8f0] sm:$0xff] }
  0x93   :  { %2396 = vmatpush3.bf16.msra.mxu1 %v2395_v43  ;;  %v328_v63 = vld [vmem:[%s3923_s1 + $0x960] sm:$0xff]  ;;  %v329_v1 = vld [vmem:[%s3923_s1 + $0x968] sm:$0xff]  ;;  %v315_v3 = vld [vmem:[%s3923_s1 + $0x8f8] sm:$0xff]  ;;  %v2375_v6 = vpack.c.bf16 %v297_v62, %v296_v61 }
  0x94   :  { %2398 = vmatprep.subr.bf16.mxu1 %v2397_v37  ;;  %v346_v4 = vld [vmem:[%s3923_s1 + $0x9f0] sm:$0xff]  ;;  %v347_v5 = vld [vmem:[%s3923_s1 + $0x9f8] sm:$0xff]  ;;  %v26_v7 = vld [vmem:[%s3922_s0 + $0x28] sm:$0xff]  ;;  %v2407_v8 = vpack.c.bf16 %v329_v1, %v328_v63  ;;  %v2377_v12 = vpack.c.bf16 %v315_v3, %v314_v2 }
  0x95   :  { %2368 = vmatpush3.bf16.msra.mxu0 %v2367_v45  ;;  %v298_v9 = vld [vmem:[%s3923_s1 + $0x870] sm:$0xff]  ;;  %v299_v11 = vld [vmem:[%s3923_s1 + $0x878] sm:$0xff]  ;;  %v2409_v15 = vpack.c.bf16 %v347_v5, %v346_v4  ;;  %v364_v16 = vld [vmem:[%s3923_s1 + $0xa80] sm:$0xff]  ;;  %v519_v20 = vcombine.high %v26_v7, %v26_v7  ;;  %v3642_v31 = vrot.slane %v26_v7, %v2727_v10 }
  0x96   :  { %2370 = vmatprep.subr.bf16.mxu0 %v2369_v47  ;;  %v330_v13 = vld [vmem:[%s3923_s1 + $0x970] sm:$0xff]  ;;  %v331_v14 = vld [vmem:[%s3923_s1 + $0x978] sm:$0xff]  ;;  %v365_v17 = vld [vmem:[%s3923_s1 + $0xa88] sm:$0xff]  ;;  %v2379_v21 = vpack.c.bf16 %v299_v11, %v298_v9 }
  0x97   :  { %2400 = vmatpush3.bf16.msra.mxu1 %v2399_v46  ;;  %v396_v18 = vld [vmem:[%s3923_s1 + $0xb80] sm:$0xff]  ;;  %v397_v19 = vld [vmem:[%s3923_s1 + $0xb88] sm:$0xff]  ;;  %v2411_v22 = vpack.c.bf16 %v331_v14, %v330_v13  ;;  %v2413_v23 = vpack.c.bf16 %v365_v17, %v364_v16  ;;  %v366_v29 = vld [vmem:[%s3923_s1 + $0xa90] sm:$0xff]  ;;  %v3651_v34 = vrot.slane %v519_v20, %v2727_v10  ;;  %v534_v45 = vcombine.high %v3642_v31, %v3642_v31 }
  0x98   :  { %2402 = vmatprep.subr.bf16.mxu1 %v2401_v51  ;;  %v348_v24 = vld [vmem:[%s3923_s1 + $0xa00] sm:$0xff]  ;;  %v349_v25 = vld [vmem:[%s3923_s1 + $0xa08] sm:$0xff]  ;;  %v2445_v27 = vpack.c.bf16 %v397_v19, %v396_v18  ;;  %v367_v30 = vld [vmem:[%s3923_s1 + $0xa98] sm:$0xff] }
  0x99   :  { %2372 = vmatpush3.bf16.msra.mxu0 %v2371_v58  ;;  %v380_v26 = vld [vmem:[%s3923_s1 + $0xb00] sm:$0xff]  ;;  %v381_v28 = vld [vmem:[%s3923_s1 + $0xb08] sm:$0xff]  ;;  %v398_v33 = vld [vmem:[%s3923_s1 + $0xb90] sm:$0xff]  ;;  %v2415_v35 = vpack.c.bf16 %v349_v25, %v348_v24  ;;  %v2417_v52 = vpack.c.bf16 %v367_v30, %v366_v29  ;;  %v535_v48 = vcombine.high %v3651_v34, %v3651_v34 }
  0x9a   :  { %2374 = vmatprep.subr.bf16.mxu0 %v2373_v60  ;;  %v399_v43 = vld [vmem:[%s3923_s1 + $0xb98] sm:$0xff]  ;;  %v2447_v36 = vpack.c.bf16 %v381_v28, %v380_v26  ;;  %v350_v37 = vld [vmem:[%s3923_s1 + $0xa10] sm:$0xff]  ;;  %v368_v42 = vld [vmem:[%s3923_s1 + $0xaa0] sm:$0xff] }
  0x9b   :  { %2404 = vmatpush3.bf16.msra.mxu1 %v2403_v59  ;;  %v351_v38 = vld [vmem:[%s3923_s1 + $0xa18] sm:$0xff]  ;;  %v382_v39 = vld [vmem:[%s3923_s1 + $0xb10] sm:$0xff]  ;;  %v2449_v10 = vpack.c.bf16 %v399_v43, %v398_v33  ;;  %v369_v44 = vld [vmem:[%s3923_s1 + $0xaa8] sm:$0xff] }
  0x9c   :  { %2406 = vmatprep.subr.bf16.mxu1 %v2405_v0  ;;  %v383_v40 = vld [vmem:[%s3923_s1 + $0xb18] sm:$0xff]  ;;  %v400_v46 = vld [vmem:[%s3923_s1 + $0xba0] sm:$0xff]  ;;  %v401_v47 = vld [vmem:[%s3923_s1 + $0xba8] sm:$0xff]  ;;  %v2419_v49 = vpack.c.bf16 %v351_v38, %v350_v37  ;;  %v2421_v51 = vpack.c.bf16 %v369_v44, %v368_v42 }
  0x9d   :  { %2376 = vmatpush3.bf16.msra.mxu0 %v2375_v6  ;;  %v2451_v50 = vpack.c.bf16 %v383_v40, %v382_v39  ;;  %v353_v53 = vld [vmem:[%s3923_s1 + $0xa28] sm:$0xff]  ;;  %v384_v32 = vld [vmem:[%s3923_s1 + $0xb20] sm:$0xff]  ;;  %v2453_v55 = vpack.c.bf16 %v401_v47, %v400_v46  ;;  %v370_v56 = vld [vmem:[%s3923_s1 + $0xab0] sm:$0xff] }
  0x9e   :  { %2378 = vmatprep.subr.bf16.mxu0 %v2377_v12  ;;  %v371_v41 = vld [vmem:[%s3923_s1 + $0xab8] sm:$0xff]  ;;  %v402_v58 = vld [vmem:[%s3923_s1 + $0xbb0] sm:$0xff]  ;;  %v372_v4 = vld [vmem:[%s3923_s1 + $0xac0] sm:$0xff] }
  0x9f   :  { %2408 = vmatpush3.bf16.msra.mxu1 %v2407_v8  ;;  %v403_v59 = vld [vmem:[%s3923_s1 + $0xbb8] sm:$0xff]  ;;  %v2425_v62 = vpack.c.bf16 %v371_v41, %v370_v56  ;;  %v354_v63 = vld [vmem:[%s3923_s1 + $0xa30] sm:$0xff]  ;;  %v373_v5 = vld [vmem:[%s3923_s1 + $0xac8] sm:$0xff] }
  0xa0   :  { %2410 = vmatprep.subr.bf16.mxu1 %v2409_v15  ;;  %v355_v0 = vld [vmem:[%s3923_s1 + $0xa38] sm:$0xff]  ;;  %v386_v1 = vld [vmem:[%s3923_s1 + $0xb30] sm:$0xff]  ;;  %v2457_v2 = vpack.c.bf16 %v403_v59, %v402_v58  ;;  %v404_v6 = vld [vmem:[%s3923_s1 + $0xbc0] sm:$0xff]  ;;  %v2429_v9 = vpack.c.bf16 %v373_v5, %v372_v4  ;;  %v2549_v59 = vmov 0.0|0.0  }
  0xa1   :  { %2380 = vmatpush3.bf16.msra.mxu0 %v2379_v21  ;;  %v387_v3 = vld [vmem:[%s3923_s1 + $0xb38] sm:$0xff]  ;;  %v405_v7 = vld [vmem:[%s3923_s1 + $0xbc8] sm:$0xff]  ;;  %v2427_v8 = vpack.c.bf16 %v355_v0, %v354_v63  ;;  %v356_v11 = vld [vmem:[%s3923_s1 + $0xa40] sm:$0xff] }
  0xa2   :  { %2414 = vmatprep.subr.bf16.mxu0 %v2413_v23  ;;  %v2459_v12 = vpack.c.bf16 %v387_v3, %v386_v1  ;;  %v357_v13 = vld [vmem:[%s3923_s1 + $0xa48] sm:$0xff]  ;;  %v388_v15 = vld [vmem:[%s3923_s1 + $0xb40] sm:$0xff]  ;;  %v2461_v14 = vpack.c.bf16 %v405_v7, %v404_v6  ;;  %v374_v17 = vld [vmem:[%s3923_s1 + $0xad0] sm:$0xff]  ;;  %v2551_v1 = vmov 0.0  }
  0xa3   :  { %2412 = vmatpush3.bf16.msra.mxu1 %v2411_v22  ;;  %v389_v16 = vld [vmem:[%s3923_s1 + $0xb48] sm:$0xff]  ;;  %v375_v18 = vld [vmem:[%s3923_s1 + $0xad8] sm:$0xff]  ;;  %v406_v19 = vld [vmem:[%s3923_s1 + $0xbd0] sm:$0xff]  ;;  %v2431_v21 = vpack.c.bf16 %v357_v13, %v356_v11 }
  0xa4   :  { %2446 = vmatprep.subr.bf16.mxu1 %v2445_v27  ;;  %1195 = vmatmul.mubr.f32.vlgmr.msra.gmra.mrb[8].mxu0 %v3435_v54  ;;  %v352_v54 = vld [vmem:[%s3923_s1 + $0xa20] sm:$0xff]  ;;  %v407_v20 = vld [vmem:[%s3923_s1 + $0xbd8] sm:$0xff]  ;;  %v2463_v22 = vpack.c.bf16 %v389_v16, %v388_v15  ;;  %v2433_v23 = vpack.c.bf16 %v375_v18, %v374_v17  ;;  %v358_v24 = vld [vmem:[%s3923_s1 + $0xa50] sm:$0xff] }
  0xa5   :  { %2416 = vmatpush3.bf16.msra.mxu0 %v2415_v35  ;;  %1334 = vmatprep.mubr.f32.mxu0 %v534_v45  ;;  %v2423_v60 = vpack.c.bf16 %v353_v53, %v352_v54  ;;  %v359_v25 = vld [vmem:[%s3923_s1 + $0xa58] sm:$0xff]  ;;  %v390_v26 = vld [vmem:[%s3923_s1 + $0xb50] sm:$0xff]  ;;  %v2465_v27 = vpack.c.bf16 %v407_v20, %v406_v19  ;;  %v376_v29 = vld [vmem:[%s3923_s1 + $0xae0] sm:$0xff] }
  0xa6   :  { %1265 = vmatmul.mubr.f32.vlgmr.msra.gmra.mrb[8].mxu1 %v3444_v57  ;;  %2418 = vmatprep.subr.bf16.mxu0 %v2417_v52  ;;  %v385_v57 = vld [vmem:[%s3923_s1 + $0xb28] sm:$0xff]  ;;  %v391_v28 = vld [vmem:[%s3923_s1 + $0xb58] sm:$0xff]  ;;  %v408_v33 = vld [vmem:[%s3923_s1 + $0xbe0] sm:$0xff]  ;;  %v2435_v35 = vpack.c.bf16 %v359_v25, %v358_v24 }
  0xa7   :  { %2448 = vmatpush3.bf16.msra.mxu1 %v2447_v36  ;;  %1404 = vmatprep.mubr.f32.mxu1 %v535_v48  ;;  %v2455_v61 = vpack.c.bf16 %v385_v57, %v384_v32  ;;  %v377_v30 = vld [vmem:[%s3923_s1 + $0xae8] sm:$0xff]  ;;  %v2467_v36 = vpack.c.bf16 %v391_v28, %v390_v26  ;;  %v360_v37 = vld [vmem:[%s3923_s1 + $0xa60] sm:$0xff]  ;;  %v378_v42 = vld [vmem:[%s3923_s1 + $0xaf0] sm:$0xff] }
  0xa8   :  { %2450 = vmatprep.subr.bf16.mxu1 %v2449_v10  ;;  %v409_v43 = vld [vmem:[%s3923_s1 + $0xbe8] sm:$0xff]  ;;  %v2437_v52 = vpack.c.bf16 %v377_v30, %v376_v29  ;;  %v392_v39 = vld [vmem:[%s3923_s1 + $0xb60] sm:$0xff]  ;;  %v379_v44 = vld [vmem:[%s3923_s1 + $0xaf8] sm:$0xff] }
  0xa9   :  { %2420 = vmatpush3.bf16.msra.mxu0 %v2419_v49  ;;  %v361_v38 = vld [vmem:[%s3923_s1 + $0xa68] sm:$0xff]  ;;  %v2469_v10 = vpack.c.bf16 %v409_v43, %v408_v33  ;;  %v410_v45 = vld [vmem:[%s3923_s1 + $0xbf0] sm:$0xff]  ;;  %v411_v46 = vld [vmem:[%s3923_s1 + $0xbf8] sm:$0xff]  ;;  %v2441_v49 = vpack.c.bf16 %v379_v44, %v378_v42 }
  0xaa   :  { %2422 = vmatprep.subr.bf16.mxu0 %v2421_v51  ;;  %v393_v40 = vld [vmem:[%s3923_s1 + $0xb68] sm:$0xff]  ;;  %v2439_v47 = vpack.c.bf16 %v361_v38, %v360_v37  ;;  %v363_v51 = vld [vmem:[%s3923_s1 + $0xa78] sm:$0xff]  ;;  %v2473_v54 = vpack.c.bf16 %v411_v46, %v410_v45  ;;  %v394_v53 = vld [vmem:[%s3923_s1 + $0xb70] sm:$0xff] }
  0xab   :  { %2452 = vmatpush3.bf16.msra.mxu1 %v2451_v50  ;;  %v2471_v48 = vpack.c.bf16 %v393_v40, %v392_v39  ;;  %v362_v50 = vld [vmem:[%s3923_s1 + $0xa70] sm:$0xff]  ;;  %v395_v32 = vld [vmem:[%s3923_s1 + $0xb78] sm:$0xff]  ;;  %v412_v56 = vld [vmem:[%s3923_s1 + $0xc00] sm:$0xff] }
  0xac   :  { %2454 = vmatprep.subr.bf16.mxu1 %v2453_v55  ;;  %v2443_v55 = vpack.c.bf16 %v363_v51, %v362_v50  ;;  %v2475_v57 = vpack.c.bf16 %v395_v32, %v394_v53  ;;  %v413_v41 = vld [vmem:[%s3923_s1 + $0xc08] sm:$0xff]  ;;  %v416_v63 = vld [vmem:[%s3923_s1 + $0xc20] sm:$0xff]  ;;  %v1590_v4 = vld.sshfl [vmem:[%s3922_s0 + $0x30] sm:$0x3 pattern:$0x76325410] }
  0xad   :  { %2424 = vmatpush3.bf16.msra.mxu0 %v2423_v60  ;;  %v2478_v58 = vpack.c.bf16 %v413_v41, %v412_v56  ;;  %v414_v60 = vld [vmem:[%s3923_s1 + $0xc10] sm:$0xff]  ;;  %v417_v0 = vld [vmem:[%s3923_s1 + $0xc28] sm:$0xff]  ;;  %v1589_v6 = vld [vmem:[%s3924_s2] ss:$0 sm:$0xff]  ;;  %s1581_s2 = sshll.u32 %s2552_s21, 4  ;;  %s1582_s2 = int_to_ptr.vmem [resolvable:$true] %s1581_s2 }
  0xae   :  { %2426 = vmatprep.subr.bf16.mxu0 %v2425_v62  ;;  %v1482_v16 = vld [vmem:[%s3925_s3 + $0x8] sm:$0xff]  ;;  %v1483_v17 = vld [vmem:[%s3925_s3 + $0x10] sm:$0xff]  ;;  %v1484_v19 = vld [vmem:[%s3925_s3 + $0x18] sm:$0xff]  ;;  %s2524_s22 = scalar_lea.vmem %s1582_s2, 32  ;;  %p2529_p1 = scmp.lt.s32.totalorder %s1582_s2, %s1582_s2 }
  0xaf   :  { %2456 = vmatpush3.bf16.msra.mxu1 %v2455_v61  ;;  %v415_v61 = vld [vmem:[%s3923_s1 + $0xc18] sm:$0xff]  ;;  %v2493_v20 = vpack.c.bf16 %v1484_v19, %v1483_v17  ;;  %v1487_v24 = vld [vmem:[%s3925_s3 + $0x30] sm:$0xff]  ;;  %v1493_v42 = vld [vmem:[%s3925_s3 + $0x60] sm:$0xff]  ;;  %p2525_p0 = scmp.ne.s32.totalorder %s1582_s2, %s2524_s22  ;;  %p2530_p2 = scmp.lt.s32.totalorder %s2524_s22, %s2524_s22 }
  0xb0   :  { %2458 = vmatprep.subr.bf16.mxu1 %v2457_v2  ;;  %v2481_v62 = vpack.c.bf16 %v415_v61, %v414_v60  ;;  %v419_v2 = vld [vmem:[%s3923_s1 + $0xc38] sm:$0xff]  ;;  %v1491_v38 = vld [vmem:[%s3925_s3 + $0x50] sm:$0xff]  ;;  %v1494_v44 = vld [vmem:[%s3925_s3 + $0x68] sm:$0xff] }
  0xb1   :  { %2428 = vmatpush3.bf16.msra.mxu0 %v2427_v8  ;;  %v1488_v25 = vld [vmem:[%s3925_s3 + $0x38] sm:$0xff]  ;;  %v2508_v45 = vpack.c.bf16 %v1494_v44, %v1493_v42  ;;  %v1495_v46 = vld [vmem:[%s3925_s3 + $0x70] sm:$0xff]  ;;  %v1592_v19 = vld [vmem:[%s3926_s4] ss:$0 sm:$0xff]  ;;  %p2531_p3 = por %p2530_p2, %p2529_p1 }
  0xb2   :  { %2430 = vmatprep.subr.bf16.mxu0 %v2429_v9  ;;  %v1492_v39 = vld [vmem:[%s3925_s3 + $0x58] sm:$0xff] }
  0xb3   :  { %2460 = vmatpush3.bf16.msra.mxu1 %v2459_v12  ;;  %v2505_v40 = vpack.c.bf16 %v1492_v39, %v1491_v38  ;;  %p2532_p4 = pnand %p2531_p3, %p2525_p0 }
  0xb4   :  { %2462 = vmatprep.subr.bf16.mxu1 %v2461_v14  ;;  %v1481_v14 = vld [vmem:[%s3925_s3] sm:$0xff] }
  0xb5   :  { %2432 = vmatpush3.bf16.msra.mxu0 %v2431_v21  ;;  %v2490_v18 = vpack.c.bf16 %v1482_v16, %v1481_v14  ;;  %v1485_v21 = vld [vmem:[%s3925_s3 + $0x20] sm:$0xff] }
  0xb6   :  { %2434 = vmatprep.subr.bf16.mxu0 %v2433_v23 }
  0xb7   :  { %2464 = vmatpush3.bf16.msra.mxu1 %v2463_v22  ;;  %v1486_v22 = vld [vmem:[%s3925_s3 + $0x28] sm:$0xff] }
  0xb8   :  { %2466 = vmatprep.subr.bf16.mxu1 %v2465_v27  ;;  %v2496_v23 = vpack.c.bf16 %v1486_v22, %v1485_v21  ;;  %v2499_v27 = vpack.c.bf16 %v1488_v25, %v1487_v24 }
  0xb9   :  { %2436 = vmatpush3.bf16.msra.mxu0 %v2435_v35  ;;  %v1489_v35 = vld [vmem:[%s3925_s3 + $0x40] sm:$0xff] }
  0xba   :  { %2438 = vmatprep.subr.bf16.mxu0 %v2437_v52 }
  0xbb   :  { %2468 = vmatpush3.bf16.msra.mxu1 %v2467_v36  ;;  %v1490_v36 = vld [vmem:[%s3925_s3 + $0x48] sm:$0xff] }
  0xbc   :  { %2470 = vmatprep.subr.bf16.mxu1 %v2469_v10  ;;  %v2502_v37 = vpack.c.bf16 %v1490_v36, %v1489_v35 }
  0xbd   :  { %2440 = vmatpush3.bf16.msra.mxu0 %v2439_v47  ;;  %v1496_v47 = vld [vmem:[%s3925_s3 + $0x78] sm:$0xff] }
  0xbe   :  { %2442 = vmatprep.subr.bf16.mxu0 %v2441_v49 }
  0xbf   :  { %2472 = vmatpush3.bf16.msra.mxu1 %v2471_v48  ;;  %v2511_v48 = vpack.c.bf16 %v1496_v47, %v1495_v46 }
  0xc0   :  { %2474 = vmatprep.subr.bf16.mxu1 %v2473_v54 }
  0xc1   :  { %2444 = vmatpush3.bf16.msra.mxu0 %v2443_v55 }
  0xc2   :  { %2477 = vmatprep.subr.bf16.mxu0 %v2549_v59 }
  0xc3   :  { %2476 = vmatpush3.bf16.msra.mxu1 %v2475_v57 }
  0xc4   :  { %2489 = vmatprep.subr.bf16.mxu1 %v2549_v59  ;;  %1335 = vmatmul.mubr.f32.vlgmr.msra.gmra.mrb[10].mxu0 %v3642_v31  ;;  %v2484_v31 = vpack.c.bf16 %v417_v0, %v416_v63 }
  0xc5   :  { %2479 = vmatpush3.bf16.msra.mxu0 %v2478_v58  ;;  %2055 = vmatprep.mubr.msk.f32.mxu0 %vm2550_vm0, %v2551_v1 }
  0xc6   :  { %1405 = vmatmul.mubr.f32.vlgmr.msra.gmra.mrb[10].mxu1 %v3651_v34  ;;  %2480 = vmatprep.subr.bf16.mxu0 %v2549_v59  ;;  %v418_v34 = vld [vmem:[%s3923_s1 + $0xc30] sm:$0xff] }
  0xc7   :  { %2090 = vmatprep.mubr.msk.f32.mxu1 %vm2550_vm0, %v2551_v1  ;;  %v2487_v3 = vpack.c.bf16 %v419_v2, %v418_v34  ;;  %2491 = vmatpush3.bf16.msra.mxu1 %v2490_v18 }
  0xc8   :  { %2492 = vmatprep.subr.bf16.mxu1 %v2549_v59 }
  0xc9   :  { %2482 = vmatpush3.bf16.msra.mxu0 %v2481_v62 }
  0xca   :  { %2483 = vmatprep.subr.bf16.mxu0 %v2549_v59 }
  0xcb   :  { %2494 = vmatpush3.bf16.msra.mxu1 %v2493_v20 }
  0xcc   :  { %2495 = vmatprep.subr.bf16.mxu1 %v2549_v59 }
  0xcd   :  { %2485 = vmatpush3.bf16.msra.mxu0 %v2484_v31 }
  0xce   :  { %2486 = vmatprep.subr.bf16.mxu0 %v2549_v59 }
  0xcf   :  { %2497 = vmatpush3.bf16.msra.mxu1 %v2496_v23 }
  0xd0   :  { %2498 = vmatprep.subr.bf16.mxu1 %v2549_v59 }
  0xd1   :  { %2488 = vmatpush3.bf16.msra.mxu0 %v2487_v3 }
  0xd3   :  { %2500 = vmatpush3.bf16.msra.mxu1 %v2499_v27 }
  0xd4   :  { %2056 = vmatmul.mubr.msk.f32.vlgmr.msra.gmra.mrb[12].mxu0 %vm567_vm1, %v1590_v4  ;;  %2501 = vmatprep.subr.bf16.mxu1 %v2549_v59 }
  0xd7   :  { %2503 = vmatpush3.bf16.msra.mxu1 %v2502_v37 }
  0xd8   :  { %2504 = vmatprep.subr.bf16.mxu1 %v2549_v59 }
  0xdb   :  { %2506 = vmatpush3.bf16.msra.mxu1 %v2505_v40 }
  0xdc   :  { %2507 = vmatprep.subr.bf16.mxu1 %v2549_v59 }
  0xdf   :  { %2509 = vmatpush3.bf16.msra.mxu1 %v2508_v45 }
  0xe0   :  { %2510 = vmatprep.subr.bf16.mxu1 %v2549_v59 }
  0xe3   :  { %2512 = vmatpush3.bf16.msra.mxu1 %v2511_v48 }
  0xf7   :  { %v1625_v5 = vpop.f32.mrb[0].mxu0 }
  0xf8   :  { %v1626_v7 = vpop.f32.mrb[1].mxu0 }
  0xf9   :  { %v1660_v8 = vpop.f32.mrb[0].mxu1  ;;  %v1627_v12 = vadd.f32 %v1626_v7, %v1625_v5 }
  0xfa   :  { %v1661_v9 = vpop.f32.mrb[1].mxu1 }
  0xfb   :  { %v1662_v11 = vadd.f32 %v1661_v9, %v1660_v8  ;;  %v637_v13 = vadd.f32 %v1627_v12, %v1589_v6 }
  0xfd   :  { %v707_v15 = vadd.f32 %v1662_v11, %v637_v13 }
 0x117   :  { %v1695_v26 = vpop.f32.mrb[2].mxu0 }
 0x118   :  { %v1696_v28 = vpop.f32.mrb[3].mxu0 }
 0x119   :  { %v1730_v29 = vpop.f32.mrb[2].mxu1  ;;  %v1697_v30 = vadd.f32 %v1696_v28, %v1695_v26 }
 0x11a   :  { %v1731_v33 = vpop.f32.mrb[3].mxu1 }
 0x11b   :  { %v1732_v43 = vadd.f32 %v1731_v33, %v1730_v29  ;;  %v777_v52 = vadd.f32 %v1697_v30, %v707_v15 }
 0x11d   :  { %v847_v10 = vadd.f32 %v1732_v43, %v777_v52 }
 0x137   :  { %v1765_v49 = vpop.f32.mrb[4].mxu0 }
 0x138   :  { %v1766_v50 = vpop.f32.mrb[5].mxu0 }
 0x139   :  { %v1800_v51 = vpop.f32.mrb[4].mxu1  ;;  %v1767_v54 = vadd.f32 %v1766_v50, %v1765_v49 }
 0x13a   :  { %v1801_v53 = vpop.f32.mrb[5].mxu1 }
 0x13b   :  { %v1802_v32 = vadd.f32 %v1801_v53, %v1800_v51  ;;  %v917_v55 = vadd.f32 %v1767_v54, %v847_v10 }
 0x13d   :  { %v987_v57 = vadd.f32 %v1802_v32, %v917_v55 }
 0x157   :  { %v1835_v56 = vpop.f32.mrb[6].mxu0 }
 0x158   :  { %v1836_v41 = vpop.f32.mrb[7].mxu0 }
 0x159   :  { %v1870_v58 = vpop.f32.mrb[6].mxu1  ;;  %v1837_v59 = vadd.f32 %v1836_v41, %v1835_v56 }
 0x15a   :  { %v1871_v60 = vpop.f32.mrb[7].mxu1 }
 0x15b   :  { %v1872_v61 = vadd.f32 %v1871_v60, %v1870_v58  ;;  %v1057_v62 = vadd.f32 %v1837_v59, %v987_v57 }
 0x15d   :  { %v1127_v63 = vadd.f32 %v1872_v61, %v1057_v62 }
 0x177   :  { %v1905_v0 = vpop.f32.mrb[8].mxu0 }
 0x178   :  { %v1906_v1 = vpop.f32.mrb[9].mxu0 }
 0x179   :  { %v1940_v31 = vpop.f32.mrb[8].mxu1  ;;  %v1907_v34 = vadd.f32 %v1906_v1, %v1905_v0 }
 0x17a   :  { %v1941_v2 = vpop.f32.mrb[9].mxu1 }
 0x17b   :  { %v1942_v3 = vadd.f32 %v1941_v2, %v1940_v31  ;;  %v1197_v4 = vadd.f32 %v1907_v34, %v1127_v63 }
 0x17d   :  { %v1267_v5 = vadd.f32 %v1942_v3, %v1197_v4 }
 0x197   :  { %v1975_v6 = vpop.f32.mrb[10].mxu0 }
 0x198   :  { %v1976_v7 = vpop.f32.mrb[11].mxu0 }
 0x199   :  { %v2010_v8 = vpop.f32.mrb[10].mxu1  ;;  %v1977_v12 = vadd.f32 %v1976_v7, %v1975_v6 }
 0x19a   :  { %v2011_v9 = vpop.f32.mrb[11].mxu1 }
 0x19b   :  { %v2012_v11 = vadd.f32 %v2011_v9, %v2010_v8  ;;  %v1337_v13 = vadd.f32 %v1977_v12, %v1267_v5 }
 0x19d   :  { %v1407_v15 = vadd.f32 %v2012_v11, %v1337_v13 }
 0x1a7   :  { %v1476_v14 = vpop.f32.mrb[12].mxu0 }
 0x1a8   :  { %v1477_v16 = vadd.f32 %v1476_v14, %v1407_v15  ;;  %v2057_v17 = vpop.f32.mrb[13].mxu0 }
 0x1aa   :  { %v1480_v18 = vmax.f32 %v1477_v16, 0.0 }
 0x1ac   :  { %2091 = vmatmul.mubr.f32.vlgmr.msra.gmra.mrb[12].mxu1 %v1480_v18 }
 0x27f   :  { %v1570_v20 = vpop.f32.mrb[12].mxu1 }
 0x280   :  { %v1571_v21 = vadd.f32 %v1592_v19, %v1570_v20  ;;  %v2092_v22 = vpop.f32.mrb[13].mxu1 }
 0x282   :  { %1574 = vst [vmem:[#allocation2] sm:$0x3] %v1571_v21 }
 0x283   :  { %2535 = shalt.err (!%p2532_p4)
}
 0x284   :  { %s2536_s25 = scalar_lea.hbm %s3927_s5, 32 }
 0x285   :  { %p2537_p5 = scmp.ne.s32.totalorder %s3927_s5, %s2536_s25  ;;  %p2540_p6 = scmp.lt.u32.totalorder %s2536_s25, %s3927_s5 }
 0x287   :  { %p2542_p7 = pnand %p2540_p6, %p2537_p5 }
 0x289   :  { %2545 = shalt.err (!%p2542_p7)
}
 0x28a   :  { %1584 = dma.vmem_to_hbm [thread:$0]  %s1582_s2, 32, %s3927_s5, [#allocation3]  }
 0x28b   :  { %2546 = dma.done.wait [#allocation3], 32  }
 0x28c   :  { %2547 = vsyncadd [#allocation3], 4294967264 }
 0x28d   :  { %1588 = vsyncpa [#allocation3], 1 }

// kernel: cnn_forward.2
= control target key start
LH: loop header
LB: loop body
LE: loop exit
PB: predicated region body
PF: predicated region fallthrough
CT: control target
= control target key end

     0   :  { %s8991_s24 = smov 0   ;;  %s12192_s0 = inlined_call_operand.vmem [shape: f32[2,784,9], index: 0, kind: input, shape index: {}]   ;;  %s12193_s1 = inlined_call_operand.vmem [shape: f32[9,32], index: 1, kind: input, shape index: {}]   ;;  %s12194_s2 = inlined_call_operand.vmem [shape: f32[1,32], index: 2, kind: input, shape index: {}]   ;;  %s12195_s3 = inlined_call_operand.vmem [shape: f32[272,755], index: 3, kind: input, shape index: {}]   ;;  %s12196_s4 = inlined_call_operand.vmem [shape: f32[9,32,64], index: 4, kind: input, shape index: {}]   ;;  %s12197_s5 = inlined_call_operand.vmem [shape: f32[1,64], index: 5, kind: input, shape index: {}]   ;;  %s12198_s6 = inlined_call_operand.vmem [shape: f32[49,205], index: 6, kind: input, shape index: {}]   ;;  %s12199_s7 = inlined_call_operand.vmem [shape: f32[2,49,64], index: 7, kind: output, shape index: {}]  }
   0x1 LB: > { %s6879_s25 = sadd.s32 4294967295, %s8946_s24   ;;  %p6883_p0 = scmp.ge.s32.totalorder %s8946_s24, 1  ;;  %s8946_s24 = sphi %s8991_s24, %s17_s24  }
   0x2   : > { %p237_p1 = scmp.lt.s32.totalorder %s8946_s24, 3 }
   0x4   : > { %p238_p2 = pnand %p6883_p0, %p237_p1 }
   0x6   : > { %241 = sbr.rel (%p238_p2) target bundleno = 1874 (0x752), region = 48 }
   0xd   : > { %v377_v0 = vld [vmem:[%s12193_s1] sm:$0xff]  ;;  %v378_v1 = vld [vmem:[%s12193_s1 + $0x8] sm:$0x1]  ;;  %vm681_vm0 = vcmask 1040384   ;;  %vm8948_vm1 = vmmov 1   ;;  %p269_p3 = scmp.lt.s32.totalorder %s6879_s25, 1 }
   0xe   : > { %v8305_v2 = vpack.c.bf16 %v378_v1, %v377_v0  ;;  %vm8306_vm2 = vmpackc.low %vm681_vm0, %vm8948_vm1  ;;  %vm386_vm3 = vcmask 72704   ;;  %vm1436_vm4 = vcmask 1046528   ;;  %vm1923_vm5 = vcmask 1043456  }
   0xf   : > { %s12388_s25 = smov (!%p269_p3, %s6879_s25), 1  ;;  %vm2610_vm6 = vcmask 1042432   ;;  %vm2507_vm7 = vcmask 941056   ;;  %vm3319_vm8 = vcmask 261120   ;;  %vm6689_vm9 = vcmask 629760  }
  0x10   : > { %8307 = vmatprep.subr.msk.bf16.mxu0 %vm8306_vm2, %v8305_v2  ;;  %8564 = vmatprep.subr.msk.bf16.mxu1 %vm8306_vm2, %v8305_v2  ;;  %s8926_s30 = smul.u32 784, %s12388_s25  ;;  %vm6711_vm10 = vcmask 1044480   ;;  %vm6815_vm12 = vcmask 523264   ;;  %vm6822_vm13 = vcmask 516096  }
  0x11   : > { %8310 = vmatpush3.bf16.msk.msra.mxu0 %vm8306_vm2, %v8305_v2  ;;  %8565 = vmatpush3.bf16.msk.msra.mxu1 %vm8306_vm2, %v8305_v2  ;;  %vm8562_vm11 = vmpackc.low %vm6711_vm10, %vm8948_vm1  ;;  %s8927_s21 = smul.u32 56, %s12388_s25 }
  0x12   : > { %s9012_s10 = scalar_lea.vmem %s12192_s0, %s8926_s30 }
  0x13   : > { %v279_v3 = vld [vmem:[%s9012_s10] sm:$0xff]  ;;  %v280_v4 = vld [vmem:[%s9012_s10 + $0x8] sm:$0xff]  ;;  %v281_v5 = vld [vmem:[%s9012_s10 + $0x10] sm:$0xff]  ;;  %s278_s26 = scalar_lea.vmem %s12199_s7, %s8927_s21 }
  0x14   : > { %7708 = vmatprep.mubr.msk.f32.mxu0 %vm386_vm3, %v279_v3  ;;  %v282_v6 = vld [vmem:[%s9012_s10 + $0x18] sm:$0xff]  ;;  %v283_v7 = vld [vmem:[%s9012_s10 + $0x20] sm:$0xff]  ;;  %v284_v8 = vld [vmem:[%s9012_s10 + $0x28] sm:$0xff] }
  0x15   : > { %7709 = vmatmul.mubr.msk.f32.vlgmr.msra.gmra.mrb[0].mxu0 %vm386_vm3, %v280_v4  ;;  %v285_v9 = vld [vmem:[%s9012_s10 + $0x30] sm:$0xff]  ;;  %v311_v10 = vld [vmem:[%s9012_s10 + $0x100] sm:$0xff]  ;;  %v312_v11 = vld [vmem:[%s9012_s10 + $0x108] sm:$0xff] }
  0x16   : > { %7711 = vmatprep.mubr.msk.f32.mxu0 %vm386_vm3, %v281_v5  ;;  %7756 = vmatprep.mubr.msk.f32.mxu1 %vm386_vm3, %v311_v10  ;;  %v313_v12 = vld [vmem:[%s9012_s10 + $0x110] sm:$0xff]  ;;  %v286_v13 = vld [vmem:[%s9012_s10 + $0x38] sm:$0xff]  ;;  %v287_v15 = vld [vmem:[%s9012_s10 + $0x40] sm:$0xff] }
  0x17   : > { %7757 = vmatmul.mubr.msk.f32.vlgmr.msra.gmra.mrb[0].mxu1 %vm386_vm3, %v312_v11  ;;  %v314_v14 = vld [vmem:[%s9012_s10 + $0x118] sm:$0xff]  ;;  %v315_v16 = vld [vmem:[%s9012_s10 + $0x120] sm:$0xff]  ;;  %v288_v17 = vld [vmem:[%s9012_s10 + $0x48] sm:$0xff] }
  0x18   : > { %7759 = vmatprep.mubr.msk.f32.mxu1 %vm386_vm3, %v313_v12  ;;  %v316_v18 = vld [vmem:[%s9012_s10 + $0x128] sm:$0xff]  ;;  %v289_v19 = vld [vmem:[%s9012_s10 + $0x50] sm:$0xff]  ;;  %v290_v21 = vld [vmem:[%s9012_s10 + $0x58] sm:$0xff] }
  0x19   : > { %7712 = vmatmul.mubr.msk.f32.gmra.mrb[2].mxu0 %vm386_vm3, %v282_v6  ;;  %v317_v20 = vld [vmem:[%s9012_s10 + $0x130] sm:$0xff]  ;;  %v318_v22 = vld [vmem:[%s9012_s10 + $0x138] sm:$0xff]  ;;  %v291_v23 = vld [vmem:[%s9012_s10 + $0x60] sm:$0xff] }
  0x1a   : > { %7714 = vmatprep.mubr.msk.f32.mxu0 %vm386_vm3, %v283_v7  ;;  %v319_v24 = vld [vmem:[%s9012_s10 + $0x140] sm:$0xff]  ;;  %v292_v25 = vld [vmem:[%s9012_s10 + $0x68] sm:$0xff]  ;;  %v293_v27 = vld [vmem:[%s9012_s10 + $0x70] sm:$0xff] }
  0x1b   : > { %7760 = vmatmul.mubr.msk.f32.gmra.mrb[2].mxu1 %vm386_vm3, %v314_v14  ;;  %v320_v26 = vld [vmem:[%s9012_s10 + $0x148] sm:$0xff]  ;;  %v321_v28 = vld [vmem:[%s9012_s10 + $0x150] sm:$0xff]  ;;  %v294_v29 = vld [vmem:[%s9012_s10 + $0x78] sm:$0xff] }
  0x1c   : > { %7762 = vmatprep.mubr.msk.f32.mxu1 %vm386_vm3, %v315_v16  ;;  %v322_v30 = vld [vmem:[%s9012_s10 + $0x158] sm:$0xff]  ;;  %v295_v31 = vld [vmem:[%s9012_s10 + $0x80] sm:$0xff]  ;;  %v296_v33 = vld [vmem:[%s9012_s10 + $0x88] sm:$0xff] }
  0x1d   : > { %7715 = vmatmul.mubr.msk.f32.gmra.mrb[4].mxu0 %vm386_vm3, %v284_v8  ;;  %v323_v32 = vld [vmem:[%s9012_s10 + $0x160] sm:$0xff]  ;;  %v324_v34 = vld [vmem:[%s9012_s10 + $0x168] sm:$0xff]  ;;  %v297_v35 = vld [vmem:[%s9012_s10 + $0x90] sm:$0xff] }
  0x1e   : > { %7717 = vmatprep.mubr.msk.f32.mxu0 %vm386_vm3, %v285_v9  ;;  %v325_v36 = vld [vmem:[%s9012_s10 + $0x170] sm:$0xff]  ;;  %v298_v37 = vld [vmem:[%s9012_s10 + $0x98] sm:$0xff]  ;;  %v299_v39 = vld [vmem:[%s9012_s10 + $0xa0] sm:$0xff] }
  0x1f   : > { %7763 = vmatmul.mubr.msk.f32.gmra.mrb[4].mxu1 %vm386_vm3, %v316_v18  ;;  %v326_v38 = vld [vmem:[%s9012_s10 + $0x178] sm:$0xff]  ;;  %v327_v40 = vld [vmem:[%s9012_s10 + $0x180] sm:$0xff]  ;;  %v300_v41 = vld [vmem:[%s9012_s10 + $0xa8] sm:$0xff] }
  0x20   : > { %7765 = vmatprep.mubr.msk.f32.mxu1 %vm386_vm3, %v317_v20  ;;  %v328_v42 = vld [vmem:[%s9012_s10 + $0x188] sm:$0xff]  ;;  %v301_v43 = vld [vmem:[%s9012_s10 + $0xb0] sm:$0xff]  ;;  %v302_v45 = vld [vmem:[%s9012_s10 + $0xb8] sm:$0xff] }
  0x21   : > { %7718 = vmatmul.mubr.msk.f32.gmra.mrb[6].mxu0 %vm386_vm3, %v286_v13  ;;  %v329_v44 = vld [vmem:[%s9012_s10 + $0x190] sm:$0xff]  ;;  %v330_v46 = vld [vmem:[%s9012_s10 + $0x198] sm:$0xff]  ;;  %v303_v47 = vld [vmem:[%s9012_s10 + $0xc0] sm:$0xff] }
  0x22   : > { %7720 = vmatprep.mubr.msk.f32.mxu0 %vm386_vm3, %v287_v15  ;;  %v331_v48 = vld [vmem:[%s9012_s10 + $0x1a0] sm:$0xff]  ;;  %v304_v49 = vld [vmem:[%s9012_s10 + $0xc8] sm:$0xff]  ;;  %v305_v51 = vld [vmem:[%s9012_s10 + $0xd0] sm:$0xff] }
  0x23   : > { %7766 = vmatmul.mubr.msk.f32.gmra.mrb[6].mxu1 %vm386_vm3, %v318_v22  ;;  %v332_v50 = vld [vmem:[%s9012_s10 + $0x1a8] sm:$0xff]  ;;  %v333_v52 = vld [vmem:[%s9012_s10 + $0x1b0] sm:$0xff]  ;;  %v306_v53 = vld [vmem:[%s9012_s10 + $0xd8] sm:$0xff] }
  0x24   : > { %7768 = vmatprep.mubr.msk.f32.mxu1 %vm386_vm3, %v319_v24  ;;  %v334_v54 = vld [vmem:[%s9012_s10 + $0x1b8] sm:$0xff]  ;;  %v307_v55 = vld [vmem:[%s9012_s10 + $0xe0] sm:$0xff]  ;;  %v308_v57 = vld [vmem:[%s9012_s10 + $0xe8] sm:$0xff] }
  0x25   : > { %7721 = vmatmul.mubr.msk.f32.gmra.mrb[8].mxu0 %vm386_vm3, %v288_v17  ;;  %v335_v56 = vld [vmem:[%s9012_s10 + $0x1c0] sm:$0xff]  ;;  %v336_v58 = vld [vmem:[%s9012_s10 + $0x1c8] sm:$0xff]  ;;  %v309_v59 = vld [vmem:[%s9012_s10 + $0xf0] sm:$0xff]  ;;  %v12206_v17 = vmov 0.0|0.0  }
  0x26   : > { %7723 = vmatprep.mubr.msk.f32.mxu0 %vm386_vm3, %v289_v19  ;;  %v337_v60 = vld [vmem:[%s9012_s10 + $0x1d0] sm:$0xff]  ;;  %v310_v61 = vld [vmem:[%s9012_s10 + $0xf8] sm:$0xff]  ;;  %v339_v63 = vld [vmem:[%s9012_s10 + $0x1e0] sm:$0xff]  ;;  %8311 = vmatprep.subr.bf16.mxu1 %v12206_v17 }
  0x27   : > { %7769 = vmatmul.mubr.msk.f32.gmra.mrb[8].mxu1 %vm386_vm3, %v320_v26  ;;  %v338_v62 = vld [vmem:[%s9012_s10 + $0x1d8] sm:$0xff]  ;;  %v340_v0 = vld [vmem:[%s9012_s10 + $0x1e8] sm:$0xff]  ;;  %v341_v1 = vld [vmem:[%s9012_s10 + $0x1f0] sm:$0xff] }
  0x28   : > { %7771 = vmatprep.mubr.msk.f32.mxu1 %vm386_vm3, %v321_v28  ;;  %v342_v2 = vld [vmem:[%s9012_s10 + $0x1f8] sm:$0xff]  ;;  %v343_v3 = vld [vmem:[%s9012_s10 + $0x200] sm:$0xff]  ;;  %v344_v4 = vld [vmem:[%s9012_s10 + $0x208] sm:$0xff] }
  0x29   : > { %7724 = vmatmul.mubr.msk.f32.gmra.mrb[10].mxu0 %vm386_vm3, %v290_v21  ;;  %v345_v5 = vld [vmem:[%s9012_s10 + $0x210] sm:$0xff]  ;;  %v346_v6 = vld [vmem:[%s9012_s10 + $0x218] sm:$0xff]  ;;  %v347_v7 = vld [vmem:[%s9012_s10 + $0x220] sm:$0xff] }
  0x2a   : > { %7726 = vmatprep.mubr.msk.f32.mxu0 %vm386_vm3, %v291_v23  ;;  %v348_v8 = vld [vmem:[%s9012_s10 + $0x228] sm:$0xff]  ;;  %v349_v9 = vld [vmem:[%s9012_s10 + $0x230] sm:$0xff]  ;;  %v350_v10 = vld [vmem:[%s9012_s10 + $0x238] sm:$0xff] }
  0x2b   : > { %7772 = vmatmul.mubr.msk.f32.gmra.mrb[10].mxu1 %vm386_vm3, %v322_v30  ;;  %v351_v11 = vld [vmem:[%s9012_s10 + $0x240] sm:$0xff]  ;;  %v352_v12 = vld [vmem:[%s9012_s10 + $0x248] sm:$0xff]  ;;  %v353_v13 = vld [vmem:[%s9012_s10 + $0x250] sm:$0xff] }
  0x2c   : > { %7774 = vmatprep.mubr.msk.f32.mxu1 %vm386_vm3, %v323_v32  ;;  %v354_v14 = vld [vmem:[%s9012_s10 + $0x258] sm:$0xff]  ;;  %v355_v15 = vld [vmem:[%s9012_s10 + $0x260] sm:$0xff]  ;;  %v356_v16 = vld [vmem:[%s9012_s10 + $0x268] sm:$0xff] }
  0x2d   : > { %7727 = vmatmul.mubr.msk.f32.gmra.mrb[12].mxu0 %vm386_vm3, %v292_v25  ;;  %v357_v18 = vld [vmem:[%s9012_s10 + $0x270] sm:$0xff]  ;;  %v358_v19 = vld [vmem:[%s9012_s10 + $0x278] sm:$0xff]  ;;  %v359_v20 = vld [vmem:[%s9012_s10 + $0x280] sm:$0xff] }
  0x2e   : > { %7729 = vmatprep.mubr.msk.f32.mxu0 %vm386_vm3, %v293_v27  ;;  %v360_v21 = vld [vmem:[%s9012_s10 + $0x288] sm:$0xff]  ;;  %v361_v22 = vld [vmem:[%s9012_s10 + $0x290] sm:$0xff]  ;;  %v362_v23 = vld [vmem:[%s9012_s10 + $0x298] sm:$0xff] }
  0x2f   : > { %7775 = vmatmul.mubr.msk.f32.gmra.mrb[12].mxu1 %vm386_vm3, %v324_v34  ;;  %v363_v24 = vld [vmem:[%s9012_s10 + $0x2a0] sm:$0xff]  ;;  %v364_v25 = vld [vmem:[%s9012_s10 + $0x2a8] sm:$0xff]  ;;  %v365_v26 = vld [vmem:[%s9012_s10 + $0x2b0] sm:$0xff] }
  0x30   : > { %7777 = vmatprep.mubr.msk.f32.mxu1 %vm386_vm3, %v325_v36  ;;  %v366_v27 = vld [vmem:[%s9012_s10 + $0x2b8] sm:$0xff]  ;;  %v367_v28 = vld [vmem:[%s9012_s10 + $0x2c0] sm:$0xff]  ;;  %v369_v30 = vld [vmem:[%s9012_s10 + $0x2d0] sm:$0xff] }
  0x31   : > { %7730 = vmatmul.mubr.msk.f32.gmra.mrb[14].mxu0 %vm386_vm3, %v294_v29  ;;  %v368_v29 = vld [vmem:[%s9012_s10 + $0x2c8] sm:$0xff]  ;;  %v371_v32 = vld [vmem:[%s9012_s10 + $0x2e0] sm:$0xff]  ;;  %v373_v34 = vld [vmem:[%s9012_s10 + $0x2f0] sm:$0xff] }
  0x32   : > { %7732 = vmatprep.mubr.msk.f32.mxu0 %vm386_vm3, %v295_v31  ;;  %v370_v31 = vld [vmem:[%s9012_s10 + $0x2d8] sm:$0xff]  ;;  %v375_v36 = vld [vmem:[%s9012_s10 + $0x300] sm:$0xff] }
  0x33   : > { %7778 = vmatmul.mubr.msk.f32.gmra.mrb[14].mxu1 %vm386_vm3, %v326_v38  ;;  %v2304_v38 = vld [vmem:[%s12195_s3 + $0x8] sm:$0xff] }
  0x34   : > { %7780 = vmatprep.mubr.msk.f32.mxu1 %vm386_vm3, %v327_v40 }
  0x35   : > { %7733 = vmatmul.mubr.msk.f32.gmra.mrb[16].mxu0 %vm386_vm3, %v296_v33  ;;  %v372_v33 = vld [vmem:[%s9012_s10 + $0x2e8] sm:$0xff] }
  0x36   : > { %7735 = vmatprep.mubr.msk.f32.mxu0 %vm386_vm3, %v297_v35  ;;  %v374_v35 = vld [vmem:[%s9012_s10 + $0x2f8] sm:$0xff] }
  0x37   : > { %7781 = vmatmul.mubr.msk.f32.gmra.mrb[16].mxu1 %vm386_vm3, %v328_v42 }
  0x38   : > { %7783 = vmatprep.mubr.msk.f32.mxu1 %vm386_vm3, %v329_v44 }
  0x39   : > { %7736 = vmatmul.mubr.msk.f32.gmra.mrb[18].mxu0 %vm386_vm3, %v298_v37  ;;  %v376_v37 = vld [vmem:[%s9012_s10 + $0x308] sm:$0xff] }
  0x3a   : > { %7738 = vmatprep.mubr.msk.f32.mxu0 %vm386_vm3, %v299_v39  ;;  %v9217_v39 = vld [vmem:[%s12194_s2] ss:$0 sm:$0xff] }
  0x3b   : > { %7784 = vmatmul.mubr.msk.f32.gmra.mrb[18].mxu1 %vm386_vm3, %v330_v46 }
  0x3c   : > { %7786 = vmatprep.mubr.msk.f32.mxu1 %vm386_vm3, %v331_v48 }
  0x3d   : > { %7739 = vmatmul.mubr.msk.f32.gmra.mrb[20].mxu0 %vm386_vm3, %v300_v41 }
  0x3e   : > { %7741 = vmatprep.mubr.msk.f32.mxu0 %vm386_vm3, %v301_v43 }
  0x3f   : > { %7787 = vmatmul.mubr.msk.f32.gmra.mrb[20].mxu1 %vm386_vm3, %v332_v50 }
  0x40   : > { %7789 = vmatprep.mubr.msk.f32.mxu1 %vm386_vm3, %v333_v52 }
  0x41   : > { %7742 = vmatmul.mubr.msk.f32.gmra.mrb[22].mxu0 %vm386_vm3, %v302_v45 }
  0x42   : > { %7744 = vmatprep.mubr.msk.f32.mxu0 %vm386_vm3, %v303_v47 }
  0x43   : > { %7790 = vmatmul.mubr.msk.f32.gmra.mrb[22].mxu1 %vm386_vm3, %v334_v54 }
  0x44   : > { %7792 = vmatprep.mubr.msk.f32.mxu1 %vm386_vm3, %v335_v56 }
  0x45   : > { %7745 = vmatmul.mubr.msk.f32.gmra.mrb[24].mxu0 %vm386_vm3, %v304_v49 }
  0x46   : > { %7747 = vmatprep.mubr.msk.f32.mxu0 %vm386_vm3, %v305_v51 }
  0x47   : > { %7793 = vmatmul.mubr.msk.f32.gmra.mrb[24].mxu1 %vm386_vm3, %v336_v58 }
  0x48   : > { %7795 = vmatprep.mubr.msk.f32.mxu1 %vm386_vm3, %v337_v60 }
  0x49   : > { %7748 = vmatmul.mubr.msk.f32.gmra.mrb[26].mxu0 %vm386_vm3, %v306_v53 }
  0x4a   : > { %7750 = vmatprep.mubr.msk.f32.mxu0 %vm386_vm3, %v307_v55 }
  0x4b   : > { %7796 = vmatmul.mubr.msk.f32.gmra.mrb[26].mxu1 %vm386_vm3, %v338_v62 }
  0x4c   : > { %7798 = vmatprep.mubr.msk.f32.mxu1 %vm386_vm3, %v339_v63 }
  0x4d   : > { %7751 = vmatmul.mubr.msk.f32.gmra.mrb[28].mxu0 %vm386_vm3, %v308_v57 }
  0x4e   : > { %7753 = vmatprep.mubr.msk.f32.mxu0 %vm386_vm3, %v309_v59 }
  0x4f   : > { %7799 = vmatmul.mubr.msk.f32.gmra.mrb[28].mxu1 %vm386_vm3, %v340_v0 }
  0x50   : > { %7801 = vmatprep.mubr.msk.f32.mxu1 %vm386_vm3, %v341_v1 }
  0x51   : > { %7754 = vmatmul.mubr.msk.f32.gmra.mrb[30].mxu0 %vm386_vm3, %v310_v61 }
  0x53   : > { %7802 = vmatmul.mubr.msk.f32.gmra.mrb[30].mxu1 %vm386_vm3, %v342_v2 }
  0x54   : > { %7804 = vmatprep.mubr.msk.f32.mxu1 %vm386_vm3, %v343_v3 }
  0x57   : > { %7805 = vmatmul.mubr.msk.f32.gmra.mrb[32].mxu1 %vm386_vm3, %v344_v4 }
  0x58   : > { %7807 = vmatprep.mubr.msk.f32.mxu1 %vm386_vm3, %v345_v5 }
  0x5b   : > { %7808 = vmatmul.mubr.msk.f32.gmra.mrb[34].mxu1 %vm386_vm3, %v346_v6 }
  0x5c   : > { %7810 = vmatprep.mubr.msk.f32.mxu1 %vm386_vm3, %v347_v7 }
  0x5f   : > { %7811 = vmatmul.mubr.msk.f32.gmra.mrb[36].mxu1 %vm386_vm3, %v348_v8 }
  0x60   : > { %7813 = vmatprep.mubr.msk.f32.mxu1 %vm386_vm3, %v349_v9 }
  0x63   : > { %7814 = vmatmul.mubr.msk.f32.gmra.mrb[38].mxu1 %vm386_vm3, %v350_v10 }
  0x64   : > { %7816 = vmatprep.mubr.msk.f32.mxu1 %vm386_vm3, %v351_v11 }
  0x67   : > { %7817 = vmatmul.mubr.msk.f32.gmra.mrb[40].mxu1 %vm386_vm3, %v352_v12 }
  0x68   : > { %7819 = vmatprep.mubr.msk.f32.mxu1 %vm386_vm3, %v353_v13 }
  0x6b   : > { %7820 = vmatmul.mubr.msk.f32.gmra.mrb[42].mxu1 %vm386_vm3, %v354_v14 }
  0x6c   : > { %7822 = vmatprep.mubr.msk.f32.mxu1 %vm386_vm3, %v355_v15 }
  0x6f   : > { %7823 = vmatmul.mubr.msk.f32.gmra.mrb[44].mxu1 %vm386_vm3, %v356_v16 }
  0x70   : > { %7825 = vmatprep.mubr.msk.f32.mxu1 %vm386_vm3, %v357_v18 }
  0x73   : > { %7826 = vmatmul.mubr.msk.f32.gmra.mrb[46].mxu1 %vm386_vm3, %v358_v19 }
  0x74   : > { %7828 = vmatprep.mubr.msk.f32.mxu1 %vm386_vm3, %v359_v20 }
  0x77   : > { %7829 = vmatmul.mubr.msk.f32.gmra.mrb[48].mxu1 %vm386_vm3, %v360_v21 }
  0x78   : > { %7831 = vmatprep.mubr.msk.f32.mxu1 %vm386_vm3, %v361_v22 }
  0x7b   : > { %7832 = vmatmul.mubr.msk.f32.gmra.mrb[50].mxu1 %vm386_vm3, %v362_v23 }
  0x7c   : > { %7834 = vmatprep.mubr.msk.f32.mxu1 %vm386_vm3, %v363_v24 }
  0x7f   : > { %7835 = vmatmul.mubr.msk.f32.gmra.mrb[52].mxu1 %vm386_vm3, %v364_v25 }
  0x80   : > { %7837 = vmatprep.mubr.msk.f32.mxu1 %vm386_vm3, %v365_v26 }
  0x83   : > { %7838 = vmatmul.mubr.msk.f32.gmra.mrb[54].mxu1 %vm386_vm3, %v366_v27 }
  0x84   : > { %7840 = vmatprep.mubr.msk.f32.mxu1 %vm386_vm3, %v367_v28 }
  0x87   : > { %7841 = vmatmul.mubr.msk.f32.gmra.mrb[56].mxu1 %vm386_vm3, %v368_v29 }
  0x88   : > { %7843 = vmatprep.mubr.msk.f32.mxu1 %vm386_vm3, %v369_v30 }
  0x8b   : > { %7844 = vmatmul.mubr.msk.f32.gmra.mrb[58].mxu1 %vm386_vm3, %v370_v31 }
  0x8c   : > { %7846 = vmatprep.mubr.msk.f32.mxu1 %vm386_vm3, %v371_v32 }
  0x8f   : > { %7847 = vmatmul.mubr.msk.f32.gmra.mrb[60].mxu1 %vm386_vm3, %v372_v33 }
  0x90   : > { %7849 = vmatprep.mubr.msk.f32.mxu1 %vm386_vm3, %v373_v34 }
  0x93   : > { %7850 = vmatmul.mubr.msk.f32.gmra.mrb[62].mxu1 %vm386_vm3, %v374_v35 }
  0x94   : > { %7852 = vmatprep.mubr.msk.f32.mxu1 %vm386_vm3, %v375_v36 }
  0x97   : > { %7853 = vmatmul.mubr.msk.f32.gmra.mrb[64].mxu1 %vm386_vm3, %v376_v37 }
  0x98   : > { %2678 = vmatprep.mubr.f32.mxu1 %v2304_v38 }
  0xe8   : > { %v7710_v40 = vpop.f32.mrb[0].mxu0 }
  0xe9   : > { %v757_v41 = vadd.f32 %v7710_v40, %v9217_v39  ;;  %v751_v42 = vpop.f32.mrb[1].mxu0 }
  0xea   : > { %v752_v43 = vadd.f32 %v9217_v39, %v751_v42  ;;  %v7758_v56 = vpop.f32.mrb[0].mxu1 }
  0xeb   : > { %v1241_v44 = vmax.f32 %v757_v41, 0.0  ;;  %v9228_v61 = vadd.f32 %v7758_v56, %v9217_v39  ;;  %v911_v62 = vpop.f32.mrb[1].mxu1 }
  0xec   : > { %v1240_v45 = vmax.f32 %v752_v43, 0.0  ;;  %v7713_v46 = vpop.f32.mrb[2].mxu0  ;;  %v912_v1 = vadd.f32 %v9217_v39, %v911_v62 }
  0xed   : > { %v1438_v47 = vrot.slane %v1241_v44, 1  ;;  %v767_v48 = vadd.f32 %v7713_v46, %v9217_v39  ;;  %v761_v49 = vpop.f32.mrb[3].mxu0  ;;  %v12203_v3 = vmax.f32 %v9228_v61, 0.0 }
  0xee   : > { %v1437_v50 = vrot.slane %v1240_v45, 1  ;;  %v762_v51 = vadd.f32 %v9217_v39, %v761_v49  ;;  %v1272_v8 = vmax.f32 %v912_v1, 0.0  ;;  %v7761_v9 = vpop.f32.mrb[2].mxu1 }
  0xef   : > { %v1243_v52 = vmax.f32 %v767_v48, 0.0  ;;  %v921_v15 = vpop.f32.mrb[3].mxu1  ;;  %v9243_v19 = vrot.slane %v12203_v3, 1  ;;  %v9248_v22 = vadd.f32 %v7761_v9, %v9217_v39 }
  0xf0   : > { %v1439_v53 = vsel %vm1436_vm4, %v1437_v50, %v1438_v47  ;;  %v1242_v54 = vmax.f32 %v762_v51, 0.0  ;;  %v7716_v55 = vpop.f32.mrb[4].mxu0  ;;  %v9245_v20 = vrot.slane %v1272_v8, 1  ;;  %v9251_v23 = vadd.f32 %v9217_v39, %v921_v15 }
  0xf1   : > { %v9224_v57 = vmax.f32 %v1240_v45, %v1439_v53  ;;  %v1442_v58 = vrot.slane %v1243_v52, 1  ;;  %v777_v59 = vadd.f32 %v7716_v55, %v9217_v39  ;;  %v771_v60 = vpop.f32.mrb[5].mxu0  ;;  %v12200_v40 = vmax.f32 %v9248_v22, 0.0 }
  0xf2   : > { %v1440_v63 = vrot.slane %v1242_v54, 1  ;;  %v772_v0 = vadd.f32 %v9217_v39, %v771_v60  ;;  %v1503_v28 = vsel %vm1436_vm4, %v9245_v20, %v9243_v19  ;;  %v9258_v29 = vpop.f32.mrb[4].mxu1 }
  0xf3   : > { %v1245_v2 = vmax.f32 %v777_v59, 0.0  ;;  %v9265_v35 = vpop.f32.mrb[5].mxu1  ;;  %v9268_v38 = vmax.f32 %v1272_v8, %v1503_v28  ;;  %v9293_v1 = vrot.slane %v12200_v40, 1 }
  0xf4   : > { %v1441_v4 = vsel %vm1436_vm4, %v1438_v47, %v1440_v63  ;;  %v1443_v5 = vsel %vm1436_vm4, %v1440_v63, %v1442_v58  ;;  %v1244_v6 = vmax.f32 %v772_v0, 0.0  ;;  %v7719_v7 = vpop.f32.mrb[6].mxu0 }
  0xf5   : > { %v9235_v10 = vmax.f32 %v1241_v44, %v1441_v4  ;;  %v9237_v11 = vmax.f32 %v1242_v54, %v1443_v5  ;;  %v1446_v12 = vrot.slane %v1245_v2, 1  ;;  %v787_v13 = vadd.f32 %v7719_v7, %v9217_v39  ;;  %v781_v14 = vpop.f32.mrb[7].mxu0 }
  0xf6   : > { %v1444_v16 = vrot.slane %v1244_v6, 1  ;;  %v782_v18 = vadd.f32 %v9217_v39, %v781_v14  ;;  %v12202_v44 = vmax.f32 %v9251_v23, 0.0  ;;  %v9277_v50 = vpop.f32.mrb[6].mxu1 }
  0xf7   : > { %v1247_v21 = vmax.f32 %v787_v13, 0.0  ;;  %v9284_v56 = vpop.f32.mrb[7].mxu1 }
  0xf8   : > { %v1445_v24 = vsel %vm1436_vm4, %v1442_v58, %v1444_v16  ;;  %v1447_v25 = vsel %vm1436_vm4, %v1444_v16, %v1446_v12  ;;  %v1246_v26 = vmax.f32 %v782_v18, 0.0  ;;  %v7722_v27 = vpop.f32.mrb[8].mxu0 }
  0xf9   : > { %v9260_v30 = vmax.f32 %v1243_v52, %v1445_v24  ;;  %v9262_v31 = vmax.f32 %v1244_v6, %v1447_v25  ;;  %v1450_v32 = vrot.slane %v1247_v21, 1  ;;  %v797_v33 = vadd.f32 %v7722_v27, %v9217_v39  ;;  %v791_v34 = vpop.f32.mrb[9].mxu0 }
  0xfa   : > { %v1448_v36 = vrot.slane %v1246_v26, 1  ;;  %v792_v37 = vadd.f32 %v9217_v39, %v791_v34 }
  0xfb   : > { %v1924_v41 = vrot.slane %v9260_v30, 4  ;;  %v1925_v42 = vrot.slane %v9262_v31, 4  ;;  %v1249_v43 = vmax.f32 %v797_v33, 0.0 }
  0xfc   : > { %v1449_v45 = vsel %vm1436_vm4, %v1446_v12, %v1448_v36  ;;  %v1451_v46 = vsel %vm1436_vm4, %v1448_v36, %v1450_v32  ;;  %v1248_v47 = vmax.f32 %v792_v37, 0.0  ;;  %v7725_v48 = vpop.f32.mrb[10].mxu0 }
  0xfd   : > { %v1926_v51 = vsel %vm1923_vm5, %v1924_v41, %v1925_v42  ;;  %v9280_v52 = vmax.f32 %v1245_v2, %v1449_v45  ;;  %v9282_v53 = vmax.f32 %v1246_v26, %v1451_v46  ;;  %v1454_v54 = vrot.slane %v1249_v43, 1  ;;  %v801_v55 = vpop.f32.mrb[11].mxu0 }
  0xfe   : > { %v1452_v58 = vrot.slane %v1248_v47, 1  ;;  %v807_v59 = vadd.f32 %v7725_v48, %v9217_v39  ;;  %v802_v60 = vadd.f32 %v9217_v39, %v801_v55  ;;  %v2208_v62 = vmax.f32 %v9224_v57, %v1926_v51  ;;  %v9301_v57 = vpop.f32.mrb[8].mxu1 }
  0xff   : > { %v1927_v63 = vrot.slane %v9280_v52, 4  ;;  %v1929_v0 = vrot.slane %v9282_v53, 4  ;;  %v9297_v2 = vrot.slane %v12202_v44, 1  ;;  %v9309_v16 = vpop.f32.mrb[9].mxu1 }
 0x100   : > { %v1453_v4 = vsel %vm1436_vm4, %v1450_v32, %v1452_v58  ;;  %v1455_v5 = vsel %vm1436_vm4, %v1452_v58, %v1454_v54  ;;  %v1251_v6 = vmax.f32 %v807_v59, 0.0  ;;  %v1250_v7 = vmax.f32 %v802_v60, 0.0  ;;  %v7728_v8 = vpop.f32.mrb[12].mxu0  ;;  %v9319_v45 = vpop.f32.mrb[10].mxu1 }
 0x101   : > { %v1930_v9 = vsel %vm1923_vm5, %v1927_v63, %v1929_v0  ;;  %v9304_v12 = vmax.f32 %v1247_v21, %v1453_v4  ;;  %v9306_v13 = vmax.f32 %v1248_v47, %v1455_v5  ;;  %v817_v14 = vadd.f32 %v7728_v8, %v9217_v39  ;;  %v811_v15 = vpop.f32.mrb[13].mxu0 }
 0x102   : > { %v1458_v18 = vrot.slane %v1251_v6, 1  ;;  %v1456_v24 = vrot.slane %v1250_v7, 1  ;;  %v812_v25 = vadd.f32 %v9217_v39, %v811_v15  ;;  %v1928_v26 = vsel %vm1923_vm5, %v1925_v42, %v1927_v63 }
 0x103   : > { %v1931_v27 = vrot.slane %v9304_v12, 4  ;;  %v1933_v28 = vrot.slane %v9306_v13, 4  ;;  %v1253_v32 = vmax.f32 %v817_v14, 0.0  ;;  %v2209_v21 = vmax.f32 %v9235_v10, %v1928_v26  ;;  %v9328_v10 = vpop.f32.mrb[11].mxu1 }
 0x104   : > { %v1457_v33 = vsel %vm1436_vm4, %v1454_v54, %v1456_v24  ;;  %v1459_v34 = vsel %vm1436_vm4, %v1456_v24, %v1458_v18  ;;  %v1252_v36 = vmax.f32 %v812_v25, 0.0  ;;  %v7731_v37 = vpop.f32.mrb[14].mxu0  ;;  %v2210_v41 = vmax.f32 %v9237_v11, %v1930_v9  ;;  %v9339_v14 = vpop.f32.mrb[12].mxu1 }
 0x105   : > { %v9322_v46 = vsel %vm1923_vm5, %v1931_v27, %v1933_v28  ;;  %v9324_v42 = vmax.f32 %v1249_v43, %v1457_v33  ;;  %v9326_v47 = vmax.f32 %v1250_v7, %v1459_v34  ;;  %v1462_v48 = vrot.slane %v1253_v32, 1  ;;  %v821_v51 = vpop.f32.mrb[15].mxu0 }
 0x106   : > { %v1460_v54 = vrot.slane %v1252_v36, 1  ;;  %v827_v55 = vadd.f32 %v7731_v37, %v9217_v39  ;;  %v822_v58 = vadd.f32 %v9217_v39, %v821_v51  ;;  %v8312_v59 = vpack.c.bf16 %v2209_v21, %v2208_v62 }
 0x107   : > { %v1935_v11 = vrot.slane %v9324_v42, 4  ;;  %v1937_v60 = vrot.slane %v9326_v47, 4  ;;  %v1932_v63 = vsel %vm1923_vm5, %v1929_v0, %v1931_v27  ;;  %v2212_v43 = vmax.f32 %v9262_v31, %v9322_v46 }
 0x108   : > { %v1461_v4 = vsel %vm1436_vm4, %v1458_v18, %v1460_v54  ;;  %v1463_v5 = vsel %vm1436_vm4, %v1460_v54, %v1462_v48  ;;  %v1255_v7 = vmax.f32 %v827_v55, 0.0  ;;  %v1254_v8 = vmax.f32 %v822_v58, 0.0  ;;  %8313 = vmatpush1.bf16.msra.mxu1 %v8312_v59  ;;  %v7734_v9 = vpop.f32.mrb[16].mxu0 }
 0x109   : > { %v9342_v62 = vsel %vm1923_vm5, %v1935_v11, %v1937_v60  ;;  %v9344_v15 = vmax.f32 %v1251_v6, %v1461_v4  ;;  %v9346_v24 = vmax.f32 %v1252_v36, %v1463_v5  ;;  %v9349_v0 = vadd.f32 %v7734_v9, %v9217_v39  ;;  %v831_v31 = vpop.f32.mrb[17].mxu0  ;;  %8314 = vmatprep.subr.bf16.mxu1 %v12206_v17  ;;  %v9358_v36 = vpop.f32.mrb[13].mxu1 }
 0x10a   : > { %v1466_v18 = vrot.slane %v1255_v7, 1  ;;  %v1464_v25 = vrot.slane %v1254_v8, 1  ;;  %v832_v26 = vadd.f32 %v9217_v39, %v831_v31  ;;  %v2211_v27 = vmax.f32 %v9260_v30, %v1932_v63  ;;  %v9362_v58 = vpop.f32.mrb[14].mxu1 }
 0x10b   : > { %v1939_v21 = vrot.slane %v9344_v15, 4  ;;  %v1941_v33 = vrot.slane %v9346_v24, 4  ;;  %v1257_v6 = vmax.f32 %v9349_v0, 0.0  ;;  %v1936_v34 = vsel %vm1923_vm5, %v1933_v28, %v1935_v11  ;;  %v9380_v31 = vpop.f32.mrb[15].mxu1 }
 0x10c   : > { %v1465_v37 = vsel %vm1436_vm4, %v1462_v48, %v1464_v25  ;;  %v1467_v46 = vsel %vm1436_vm4, %v1464_v25, %v1466_v18  ;;  %v1256_v51 = vmax.f32 %v832_v26, 0.0  ;;  %v8315_v54 = vpack.c.bf16 %v2211_v27, %v2210_v41  ;;  %v7737_v55 = vpop.f32.mrb[18].mxu0 }
 0x10d   : > { %v9365_v30 = vsel %vm1923_vm5, %v1939_v21, %v1941_v33  ;;  %v9367_v59 = vmax.f32 %v1253_v32, %v1465_v37  ;;  %v9369_v63 = vmax.f32 %v1254_v8, %v1467_v46  ;;  %v1470_v4 = vrot.slane %v1257_v6, 1  ;;  %v841_v28 = vpop.f32.mrb[19].mxu0 }
 0x10e   : > { %v1468_v11 = vrot.slane %v1256_v51, 1  ;;  %8316 = vmatpush1.bf16.msra.mxu1 %v8315_v54  ;;  %v847_v48 = vadd.f32 %v7737_v55, %v9217_v39  ;;  %v842_v5 = vadd.f32 %v9217_v39, %v841_v28  ;;  %v2213_v41 = vmax.f32 %v9280_v52, %v1936_v34  ;;  %v9384_v34 = vpop.f32.mrb[16].mxu1 }
 0x10f   : > { %v1943_v9 = vrot.slane %v9367_v59, 4  ;;  %v1945_v0 = vrot.slane %v9369_v63, 4  ;;  %8317 = vmatprep.subr.bf16.mxu1 %v12206_v17  ;;  %v1940_v32 = vsel %vm1923_vm5, %v1937_v60, %v1939_v21  ;;  %v2214_v8 = vmax.f32 %v9282_v53, %v9342_v62 }
 0x110   : > { %v1469_v25 = vsel %vm1436_vm4, %v1466_v18, %v1468_v11  ;;  %v1471_v26 = vsel %vm1436_vm4, %v1468_v11, %v1470_v4  ;;  %v1259_v27 = vmax.f32 %v847_v48, 0.0  ;;  %v1258_v37 = vmax.f32 %v842_v5, 0.0  ;;  %v7740_v52 = vpop.f32.mrb[20].mxu0 }
 0x111   : > { %v9389_v46 = vsel %vm1923_vm5, %v1943_v9, %v1945_v0  ;;  %v9391_v60 = vmax.f32 %v1255_v7, %v1469_v25  ;;  %v9393_v21 = vmax.f32 %v1256_v51, %v1471_v26  ;;  %v8318_v53 = vpack.c.bf16 %v2213_v41, %v2212_v43  ;;  %v851_v62 = vpop.f32.mrb[21].mxu0  ;;  %v9401_v25 = vpop.f32.mrb[17].mxu1 }
 0x112   : > { %v1474_v54 = vrot.slane %v1259_v27, 1  ;;  %v1472_v18 = vrot.slane %v1258_v37, 1  ;;  %v857_v55 = vadd.f32 %v7740_v52, %v9217_v39  ;;  %v852_v28 = vadd.f32 %v9217_v39, %v851_v62  ;;  %v9406_v62 = vpop.f32.mrb[18].mxu1 }
 0x113   : > { %v1947_v11 = vrot.slane %v9391_v60, 4  ;;  %v12201_v48 = vrot.slane %v9393_v21, 4  ;;  %8319 = vmatpush1.bf16.msra.mxu1 %v8318_v53  ;;  %v2215_v5 = vmax.f32 %v9304_v12, %v1940_v32  ;;  %v1944_v7 = vsel %vm1923_vm5, %v1941_v33, %v1943_v9 }
 0x114   : > { %v1473_v43 = vsel %vm1436_vm4, %v1470_v4, %v1472_v18  ;;  %v1475_v51 = vsel %vm1436_vm4, %v1472_v18, %v1474_v54  ;;  %v1261_v41 = vmax.f32 %v857_v55, 0.0  ;;  %v1260_v26 = vmax.f32 %v852_v28, 0.0  ;;  %8320 = vmatprep.subr.bf16.mxu1 %v12206_v17  ;;  %v7743_v52 = vpop.f32.mrb[22].mxu0 }
 0x115   : > { %v9411_v53 = vsel %vm1923_vm5, %v1947_v11, %v12201_v48  ;;  %v9413_v12 = vmax.f32 %v1257_v6, %v1473_v43  ;;  %v9415_v33 = vmax.f32 %v1258_v37, %v1475_v51  ;;  %v8321_v9 = vpack.c.bf16 %v2215_v5, %v2214_v8  ;;  %v861_v4 = vpop.f32.mrb[23].mxu0  ;;  %v9424_v37 = vpop.f32.mrb[19].mxu1 }
 0x116   : > { %v1478_v32 = vrot.slane %v1261_v41, 1  ;;  %v1476_v18 = vrot.slane %v1260_v26, 1  ;;  %v867_v55 = vadd.f32 %v7743_v52, %v9217_v39  ;;  %v862_v28 = vadd.f32 %v9217_v39, %v861_v4  ;;  %v9429_v4 = vpop.f32.mrb[20].mxu1 }
 0x117   : > { %v12205_v49 = vrot.slane %v9413_v12, 4  ;;  %v12204_v40 = vrot.slane %v9415_v33, 4  ;;  %8322 = vmatpush1.bf16.msra.mxu1 %v8321_v9  ;;  %v2216_v48 = vmax.f32 %v9306_v13, %v9365_v30  ;;  %v2217_v6 = vmax.f32 %v9324_v42, %v1944_v7  ;;  %12269 = vst [vmem:[#allocation3_spill] sm:$0xff] %v9429_v4 }
 0x118   : > { %v1477_v8 = vsel %vm1436_vm4, %v1474_v54, %v1476_v18  ;;  %v1479_v5 = vsel %vm1436_vm4, %v1476_v18, %v1478_v32  ;;  %v1263_v43 = vmax.f32 %v867_v55, 0.0  ;;  %v1262_v51 = vmax.f32 %v862_v28, 0.0  ;;  %8323 = vmatprep.subr.bf16.mxu1 %v12206_v17  ;;  %v7746_v52 = vpop.f32.mrb[24].mxu0 }
 0x119   : > { %v9436_v13 = vsel %vm1923_vm5, %v12205_v49, %v12204_v40  ;;  %v9438_v42 = vmax.f32 %v1259_v27, %v1477_v8  ;;  %v9440_v30 = vmax.f32 %v1260_v26, %v1479_v5  ;;  %v8324_v54 = vpack.c.bf16 %v2217_v6, %v2216_v48  ;;  %v871_v7 = vpop.f32.mrb[25].mxu0  ;;  %v9451_v48 = vpop.f32.mrb[21].mxu1 }
 0x11a   : > { %v1482_v9 = vrot.slane %v1263_v43, 1  ;;  %v1480_v18 = vrot.slane %v1262_v51, 1  ;;  %v877_v55 = vadd.f32 %v7746_v52, %v9217_v39  ;;  %v872_v28 = vadd.f32 %v9217_v39, %v871_v7  ;;  %12270 = vst [vmem:[#allocation4_spill] sm:$0xff] %v9451_v48  ;;  %v9456_v40 = vpop.f32.mrb[22].mxu1 }
 0x11b   : > { %v12209_v44 = vrot.slane %v9438_v42, 4  ;;  %v12208_v3 = vrot.slane %v9440_v30, 4  ;;  %8325 = vmatpush1.bf16.msra.mxu1 %v8324_v54  ;;  %v1948_v27 = vsel %vm1923_vm5, %v1945_v0, %v1947_v11  ;;  %v2218_v26 = vmax.f32 %v9326_v47, %v9389_v46  ;;  %12271 = vst [vmem:[#allocation5_spill] sm:$0xff] %v9456_v40 }
 0x11c   : > { %v1481_v6 = vsel %vm1436_vm4, %v1478_v32, %v1480_v18  ;;  %v1483_v8 = vsel %vm1436_vm4, %v1480_v18, %v1482_v9  ;;  %v1265_v5 = vmax.f32 %v877_v55, 0.0  ;;  %v1264_v52 = vmax.f32 %v872_v28, 0.0  ;;  %8326 = vmatprep.subr.bf16.mxu1 %v12206_v17  ;;  %v7749_v7 = vpop.f32.mrb[26].mxu0 }
 0x11d   : > { %v9463_v0 = vsel %vm1923_vm5, %v12209_v44, %v12208_v3  ;;  %v9465_v47 = vmax.f32 %v1261_v41, %v1481_v6  ;;  %v9467_v46 = vmax.f32 %v1262_v51, %v1483_v8  ;;  %v2219_v11 = vmax.f32 %v9344_v15, %v1948_v27  ;;  %v881_v32 = vpop.f32.mrb[27].mxu0  ;;  %v9479_v51 = vpop.f32.mrb[23].mxu1 }
 0x11e   : > { %v1486_v54 = vrot.slane %v1265_v5, 1  ;;  %v1484_v18 = vrot.slane %v1264_v52, 1  ;;  %v9471_v55 = vadd.f32 %v7749_v7, %v9217_v39  ;;  %v882_v28 = vadd.f32 %v9217_v39, %v881_v32  ;;  %12272 = vst [vmem:[#allocation6_spill] sm:$0xff] %v9479_v51  ;;  %v9484_v32 = vpop.f32.mrb[24].mxu1 }
 0x11f   : > { %v12211_v49 = vrot.slane %v9465_v47, 4  ;;  %v12210_v17 = vrot.slane %v9467_v46, 4  ;;  %v8327_v3 = vpack.c.bf16 %v2219_v11, %v2218_v26  ;;  %v1505_v41 = vsel %vm1436_vm4, %v9243_v19, %v9297_v2  ;;  %12273 = vst [vmem:[#allocation7_spill] sm:$0xff] %v9484_v32 }
 0x120   : > { %v1485_v15 = vsel %vm1436_vm4, %v1482_v9, %v1484_v18  ;;  %v1487_v27 = vsel %vm1436_vm4, %v1484_v18, %v1486_v54  ;;  %v12212_v6 = vmax.f32 %v9471_v55, 0.0  ;;  %v1266_v8 = vmax.f32 %v882_v28, 0.0  ;;  %v7752_v7 = vpop.f32.mrb[28].mxu0 }
 0x121   : > { %v9491_v26 = vsel %vm1923_vm5, %v12211_v49, %v12210_v17  ;;  %v9493_v19 = vmax.f32 %v1263_v43, %v1485_v15  ;;  %v9495_v11 = vmax.f32 %v1264_v52, %v1487_v27  ;;  %8328 = vmatpush1.bf16.msra.mxu1 %v8327_v3  ;;  %v1507_v9 = vsel %vm1436_vm4, %v9297_v2, %v9293_v1  ;;  %v891_v18 = vpop.f32.mrb[29].mxu0 }
 0x122   : > { %v1490_v28 = vrot.slane %v12212_v6, 1  ;;  %v1488_v44 = vrot.slane %v1266_v8, 1  ;;  %v12274_v32 = vmov 0.0|0.0   ;;  %v12275_v51 = vmax.f32 %v9228_v61, 0.0  ;;  %v9520_v61 = vpop.f32.mrb[25].mxu1 }
 0x123   : > { %8329 = vmatprep.subr.bf16.mxu1 %v12274_v32  ;;  %v12276_v43 = vmax.f32 %v9251_v23, 0.0  ;;  %v12213_v15 = vrot.slane %v9495_v11, 4  ;;  %v12277_v2 = vrot.slane %v9413_v12, 4  ;;  %v12278_v27 = vrot.slane %v9393_v21, 4  ;;  %12279 = vst [vmem:[#allocation8_spill] sm:$0xff] %v9520_v61  ;;  %v9526_v3 = vpop.f32.mrb[26].mxu1 }
 0x124   : > { %v9505_v17 = vmax.f32 %v12275_v51, %v1505_v41  ;;  %v2220_v6 = vmax.f32 %v9346_v24, %v9411_v53  ;;  %v1489_v41 = vsel %vm1436_vm4, %v1486_v54, %v1488_v44  ;;  %v1491_v23 = vsel %vm1436_vm4, %v1488_v44, %v1490_v28  ;;  %12280 = vst [vmem:[#allocation9_spill] sm:$0xff] %v9526_v3 }
 0x125   : > { %v9509_v52 = vmax.f32 %v12276_v43, %v1507_v9  ;;  %v1952_v49 = vsel %vm1923_vm5, %v12278_v27, %v12277_v2  ;;  %v7755_v43 = vpop.f32.mrb[30].mxu0  ;;  %v12281_v2 = vrot.slane %v9493_v19, 4  ;;  %v9535_v24 = vmax.f32 %v1265_v5, %v1489_v41 }
 0x126   : > { %v2221_v9 = vmax.f32 %v9367_v59, %v1952_v49  ;;  %v9537_v53 = vmax.f32 %v1266_v8, %v1491_v23  ;;  %v937_v44 = vadd.f32 %v9258_v29, %v9217_v39  ;;  %v901_v54 = vpop.f32.mrb[31].mxu0  ;;  %v9542_v49 = vadd.f32 %v7752_v7, %v9217_v39  ;;  %v9553_v29 = vpop.f32.mrb[27].mxu1 }
 0x127   : > { %v9533_v27 = vsel %vm1923_vm5, %v12281_v2, %v12213_v15  ;;  %v932_v59 = vadd.f32 %v9217_v39, %v9265_v35  ;;  %v892_v3 = vadd.f32 %v9217_v39, %v891_v18  ;;  %v12215_v2 = vrot.slane %v9535_v24, 4  ;;  %12282 = vst [vmem:[#allocation10_spill] sm:$0xff] %v9553_v29  ;;  %v9558_v18 = vpop.f32.mrb[28].mxu1 }
 0x128   : > { %v8330_v51 = vpack.c.bf16 %v2221_v9, %v2220_v6  ;;  %v12214_v5 = vrot.slane %v9537_v53, 4  ;;  %v1277_v41 = vmax.f32 %v937_v44, 0.0  ;;  %v9551_v8 = vadd.f32 %v9277_v50, %v9217_v39  ;;  %12283 = vst [vmem:[#allocation11_spill] sm:$0xff] %v9558_v18  ;;  %v9584_v48 = vpop.f32.mrb[29].mxu1 }
 0x129   : > { %v12216_v6 = vmax.f32 %v9542_v49, 0.0  ;;  %v1276_v7 = vmax.f32 %v932_v59, 0.0  ;;  %v1268_v23 = vmax.f32 %v892_v3, 0.0  ;;  %v942_v35 = vadd.f32 %v9217_v39, %v9284_v56  ;;  %12286 = vst [vmem:[#allocation12_spill] sm:$0xff] %v9584_v48 }
 0x12a   : > { %8331 = vmatpush1.bf16.msra.mxu1 %v8330_v51  ;;  %v9565_v9 = vsel %vm1923_vm5, %v12215_v2, %v12214_v5  ;;  %v1510_v50 = vrot.slane %v1277_v41, 1  ;;  %v12217_v44 = vmax.f32 %v9551_v8, 0.0  ;;  %v12284_v51 = vrot.slane %v9438_v42, 4 }
 0x12b   : > { %8332 = vmatprep.subr.bf16.mxu1 %v12274_v32  ;;  %v12285_v3 = vrot.slane %v9415_v33, 4  ;;  %v1494_v59 = vrot.slane %v12216_v6, 1  ;;  %v1508_v15 = vrot.slane %v1276_v7, 1  ;;  %v1492_v18 = vrot.slane %v1268_v23, 1 }
 0x12c   : > { %v1278_v29 = vmax.f32 %v942_v35, 0.0  ;;  %v9578_v5 = vrot.slane %v12217_v44, 1  ;;  %v2222_v2 = vmax.f32 %v9369_v63, %v9436_v13  ;;  %v907_v40 = vadd.f32 %v7755_v43, %v9217_v39  ;;  %v9591_v44 = vpop.f32.mrb[30].mxu1 }
 0x12d   : > { %v1956_v56 = vsel %vm1923_vm5, %v12285_v3, %v12284_v51  ;;  %v1509_v51 = vsel %vm1436_vm4, %v9293_v1, %v1508_v15  ;;  %v1511_v3 = vsel %vm1436_vm4, %v1508_v15, %v1510_v50  ;;  %v1493_v35 = vsel %vm1436_vm4, %v1490_v28, %v1492_v18  ;;  %12287 = vst [vmem:[#allocation13_spill] sm:$0xff] %v9591_v44 }
 0x12e   : > { %v2223_v61 = vmax.f32 %v9391_v60, %v1956_v56  ;;  %v1495_v6 = vsel %vm1436_vm4, %v1492_v18, %v1494_v59  ;;  %v12288_v4 = vmax.f32 %v9248_v22, 0.0  ;;  %v9597_v60 = vmax.f32 %v1276_v7, %v1511_v3  ;;  %v9610_v7 = vpop.f32.mrb[31].mxu1 }
 0x12f   : > { %v12289_v13 = vmax.f32 %v9471_v55, 0.0  ;;  %v9603_v56 = vmax.f32 %v1268_v23, %v1495_v6  ;;  %v1512_v1 = vrot.slane %v1278_v29, 1  ;;  %v1271_v48 = vmax.f32 %v907_v40, 0.0 }
 0x130   : > { %v9595_v63 = vmax.f32 %v12288_v4, %v1509_v51  ;;  %v8333_v15 = vpack.c.bf16 %v2223_v61, %v2222_v2  ;;  %v902_v28 = vadd.f32 %v9217_v39, %v901_v54  ;;  %v12218_v44 = vrot.slane %v9597_v60, 4  ;;  %v9615_v2 = vpop.f32.mrb[32].mxu1 }
 0x131   : > { %v9601_v43 = vmax.f32 %v12289_v13, %v1493_v35  ;;  %v12219_v4 = vrot.slane %v9603_v56, 4  ;;  %v1513_v55 = vsel %vm1436_vm4, %v1510_v50, %v1512_v1  ;;  %v1515_v6 = vsel %vm1436_vm4, %v1512_v1, %v9578_v5  ;;  %12290 = vst [vmem:[#allocation14_spill] sm:$0xff] %v9615_v2 }
 0x132   : > { %v1987_v18 = vrot.slane %v9595_v63, 4  ;;  %8334 = vmatpush1.bf16.msra.mxu1 %v8333_v15  ;;  %v1498_v61 = vrot.slane %v1271_v48, 1  ;;  %v1270_v40 = vmax.f32 %v902_v28, 0.0  ;;  %v9629_v50 = vmax.f32 %v1277_v41, %v1513_v55  ;;  %v9644_v55 = vpop.f32.mrb[33].mxu1 }
 0x133   : > { %v12220_v22 = vrot.slane %v9601_v43, 4  ;;  %v9631_v51 = vmax.f32 %v1278_v29, %v1515_v6  ;;  %8335 = vmatprep.subr.bf16.mxu1 %v12274_v32  ;;  %v12291_v35 = vrot.slane %v9509_v52, 4  ;;  %v12221_v15 = vrot.slane %v9505_v17, 4  ;;  %12292 = vst [vmem:[#allocation15_spill] sm:$0xff] %v9644_v55 }
 0x134   : > { %v9620_v54 = vsel %vm1923_vm5, %v1987_v18, %v12218_v44  ;;  %v1501_v3 = vsel %vm1436_vm4, %v1498_v61, %v9245_v20  ;;  %v1496_v1 = vrot.slane %v1270_v40, 1  ;;  %v12223_v28 = vrot.slane %v9629_v50, 4 }
 0x135   : > { %v9627_v23 = vsel %vm1923_vm5, %v12220_v22, %v12219_v4  ;;  %v1988_v13 = vsel %vm1923_vm5, %v12291_v35, %v1987_v18  ;;  %v12222_v44 = vrot.slane %v9631_v51, 4  ;;  %v1761_v41 = vmax.f32 %v1271_v48, %v1501_v3  ;;  %v9655_v22 = vpop.f32.mrb[34].mxu1 }
 0x136   : > { %v957_v29 = vadd.f32 %v9301_v57, %v9217_v39  ;;  %v1497_v6 = vsel %vm1436_vm4, %v1494_v59, %v1496_v1  ;;  %v1499_v20 = vsel %vm1436_vm4, %v1496_v1, %v1498_v61  ;;  %v12293_v4 = vmov %v12291_v35  ;;  %12294 = vst [vmem:[#allocation16_spill] sm:$0xff] %v9655_v22 }
 0x137   : > { %v1986_v18 = vsel %vm1923_vm5, %v12221_v15, %v12293_v4  ;;  %v952_v35 = vadd.f32 %v9217_v39, %v9309_v16  ;;  %v9662_v57 = vsel %vm1923_vm5, %v12223_v28, %v12222_v44  ;;  %v1979_v48 = vrot.slane %v1761_v41, 4 }
 0x138   : > { %v2239_v59 = vmax.f32 %v1761_v41, %v1988_v13  ;;  %v12295_v61 = vmax.f32 %v9542_v49, 0.0  ;;  %v1760_v1 = vmax.f32 %v1270_v40, %v1499_v20  ;;  %v1281_v4 = vmax.f32 %v957_v29, 0.0  ;;  %v9682_v41 = vpop.f32.mrb[35].mxu1 }
 0x139   : > { %v1280_v15 = vmax.f32 %v952_v35, 0.0  ;;  %v12296_v16 = vrot.slane %v9465_v47, 4  ;;  %v12297_v22 = vrot.slane %v9440_v30, 4  ;;  %v12298_v2 = vrot.slane %v9268_v38, 4 }
 0x13a   : > { %v9666_v3 = vmax.f32 %v12295_v61, %v1497_v6  ;;  %v2224_v49 = vmax.f32 %v9393_v21, %v9463_v0  ;;  %v1977_v29 = vrot.slane %v1760_v1, 4  ;;  %v2238_v6 = vmax.f32 %v1760_v1, %v1986_v18  ;;  %v9684_v61 = vpop.f32.mrb[36].mxu1 }
 0x13b   : > { %v1960_v55 = vsel %vm1923_vm5, %v12297_v22, %v12296_v16  ;;  %v9676_v44 = vsel %vm1923_vm5, %v1979_v48, %v12298_v2  ;;  %v1518_v20 = vrot.slane %v1281_v4, 1  ;;  %v1516_v35 = vrot.slane %v1280_v15, 1  ;;  %12299 = vst [vmem:[#allocation17_spill] sm:$0xff] %v9684_v61 }
 0x13c   : > { %v1975_v13 = vrot.slane %v9666_v3, 4  ;;  %v2225_v40 = vmax.f32 %v9413_v12, %v1960_v55  ;;  %v9688_v2 = vadd.f32 %v9319_v45, %v9217_v39  ;;  %v962_v16 = vadd.f32 %v9217_v39, %v9328_v10 }
 0x13d   : > { %v12300_v21 = vrot.slane %v9493_v19, 4  ;;  %v12301_v12 = vrot.slane %v9467_v46, 4  ;;  %v1980_v18 = vsel %vm1923_vm5, %v1977_v29, %v1979_v48  ;;  %v9699_v1 = vpack.c.bf16 %v2239_v59, %v2238_v6 }
 0x13e   : > { %v8336_v22 = vpack.c.bf16 %v2225_v40, %v2224_v49  ;;  %v1978_v55 = vsel %vm1923_vm5, %v1975_v13, %v1977_v29  ;;  %v1517_v49 = vsel %vm1436_vm4, %v9578_v5, %v1516_v35  ;;  %v1519_v45 = vsel %vm1436_vm4, %v1516_v35, %v1518_v20 }
 0x13f   : > { %v1964_v0 = vsel %vm1923_vm5, %v12301_v12, %v12300_v21  ;;  %v12302_v40 = vmax.f32 %v9551_v8, 0.0  ;;  %v1283_v28 = vmax.f32 %v9688_v2, 0.0  ;;  %v1282_v61 = vmax.f32 %v962_v16, 0.0  ;;  %v9709_v21 = vpop.f32.mrb[37].mxu1 }
 0x140   : > { %8337 = vmatpush1.bf16.msra.mxu1 %v8336_v22  ;;  %v9711_v12 = vmax.f32 %v1280_v15, %v1519_v45  ;;  %v2226_v48 = vmax.f32 %v9415_v33, %v9491_v26  ;;  %v2227_v5 = vmax.f32 %v9438_v42, %v1964_v0  ;;  %v12303_v59 = vrot.slane %v9535_v24, 4  ;;  %v9722_v6 = vpop.f32.mrb[38].mxu1 }
 0x141   : > { %v9706_v10 = vmax.f32 %v12302_v40, %v1517_v49  ;;  %8338 = vmatprep.subr.bf16.mxu1 %v12274_v32  ;;  %v12304_v8 = vrot.slane %v9495_v11, 4  ;;  %v9727_v15 = vrot.slane %v1283_v28, 1  ;;  %v1520_v22 = vrot.slane %v1282_v61, 1 }
 0x142   : > { %v2228_v33 = vmax.f32 %v9440_v30, %v9533_v27  ;;  %v1997_v42 = vrot.slane %v9711_v12, 4  ;;  %v8339_v26 = vpack.c.bf16 %v2227_v5, %v2226_v48  ;;  %v12305_v0 = vrot.slane %v9601_v43, 4  ;;  %v9744_v27 = vpop.f32.mrb[39].mxu1 }
 0x143   : > { %v1968_v29 = vsel %vm1923_vm5, %v12304_v8, %v12303_v59  ;;  %v1995_v35 = vrot.slane %v9706_v10, 4  ;;  %v12306_v49 = vrot.slane %v9537_v53, 4  ;;  %v1521_v40 = vsel %vm1436_vm4, %v1518_v20, %v1520_v22 }
 0x144   : > { %v2229_v16 = vmax.f32 %v9465_v47, %v1968_v29  ;;  %v1523_v59 = vsel %vm1436_vm4, %v1520_v22, %v9727_v15  ;;  %v2230_v8 = vmax.f32 %v9467_v46, %v9565_v9  ;;  %v9747_v48 = vmax.f32 %v1281_v4, %v1521_v40  ;;  %8340 = vmatpush1.bf16.msra.mxu1 %v8339_v26 }
 0x145   : > { %v1972_v45 = vsel %vm1923_vm5, %v12306_v49, %v12305_v0  ;;  %v1998_v47 = vsel %vm1923_vm5, %v1995_v35, %v1997_v42  ;;  %v9749_v5 = vmax.f32 %v1282_v61, %v1523_v59  ;;  %v9751_v0 = vpop.f32.mrb[40].mxu1  ;;  %8341 = vmatprep.subr.bf16.mxu1 %v12274_v32  ;;  %v12307_v22 = vrot.slane %v9603_v56, 4 }
 0x146   : > { %v2231_v30 = vmax.f32 %v9493_v19, %v1972_v45  ;;  %v8342_v29 = vpack.c.bf16 %v2229_v16, %v2228_v33  ;;  %v2232_v19 = vmax.f32 %v9495_v11, %v9627_v23  ;;  %v2234_v9 = vmax.f32 %v9537_v53, %v1978_v55  ;;  %v9778_v55 = vpop.f32.mrb[41].mxu1 }
 0x147   : > { %v1976_v46 = vsel %vm1923_vm5, %v12307_v22, %v1975_v13  ;;  %v1999_v4 = vrot.slane %v9747_v48, 4  ;;  %v2001_v61 = vrot.slane %v9749_v5, 4  ;;  %v2235_v26 = vmax.f32 %v9601_v43, %v1980_v18 }
 0x148   : > { %v8345_v20 = vpack.c.bf16 %v2231_v30, %v2230_v8  ;;  %v2233_v33 = vmax.f32 %v9535_v24, %v1976_v46  ;;  %v12308_v16 = vrot.slane %v9505_v17, 4  ;;  %v12309_v49 = vrot.slane %v9268_v38, 4  ;;  %8343 = vmatpush1.bf16.msra.mxu1 %v8342_v29 }
 0x149   : > { %v2236_v13 = vmax.f32 %v9603_v56, %v9676_v44  ;;  %v12310_v11 = vrot.slane %v9629_v50, 4  ;;  %v12311_v53 = vrot.slane %v9597_v60, 4  ;;  %v2240_v24 = vmax.f32 %v9268_v38, %v9620_v54  ;;  %v9786_v56 = vpop.f32.mrb[42].mxu1  ;;  %8344 = vmatprep.subr.bf16.mxu1 %v12274_v32 }
 0x14a   : > { %v1984_v45 = vsel %vm1923_vm5, %v12309_v49, %v12308_v16  ;;  %v9783_v43 = vsel %vm1923_vm5, %v1999_v4, %v2001_v61  ;;  %v8348_v18 = vpack.c.bf16 %v2233_v33, %v2232_v19  ;;  %v8351_v40 = vpack.c.bf16 %v2235_v26, %v2234_v9 }
 0x14b   : > { %v1992_v23 = vsel %vm1923_vm5, %v12311_v53, %v12310_v11  ;;  %v2237_v44 = vmax.f32 %v9666_v3, %v1984_v45  ;;  %v12312_v38 = vrot.slane %v9631_v51, 4  ;;  %v2242_v8 = vmax.f32 %v9509_v52, %v9662_v57  ;;  %v9809_v57 = vpop.f32.mrb[43].mxu1 }
 0x14c   : > { %v2241_v59 = vmax.f32 %v9505_v17, %v1992_v23  ;;  %v2000_v30 = vsel %vm1923_vm5, %v1997_v42, %v1999_v4  ;;  %v2244_v3 = vmax.f32 %v9597_v60, %v1998_v47  ;;  %v977_v17 = vadd.f32 %v9339_v14, %v9217_v39  ;;  %8346 = vmatpush1.bf16.msra.mxu1 %v8345_v20 }
 0x14d   : > { %v1996_v54 = vsel %vm1923_vm5, %v12312_v38, %v1995_v35  ;;  %v9796_v29 = vpack.c.bf16 %v2237_v44, %v2236_v13  ;;  %v2245_v46 = vmax.f32 %v9629_v50, %v2000_v30  ;;  %v972_v35 = vadd.f32 %v9217_v39, %v9358_v36  ;;  %8347 = vmatprep.subr.bf16.mxu1 %v12274_v32 }
 0x14e   : > { %v2243_v22 = vmax.f32 %v9595_v63, %v1996_v54  ;;  %v9801_v19 = vpack.c.bf16 %v2241_v59, %v2240_v24  ;;  %v987_v52 = vadd.f32 %v9362_v58, %v9217_v39  ;;  %v982_v60 = vadd.f32 %v9217_v39, %v9380_v31 }
 0x14f   : > { %v9813_v63 = vpack.c.bf16 %v2245_v46, %v2244_v3  ;;  %v997_v50 = vadd.f32 %v9384_v34, %v9217_v39  ;;  %v1285_v14 = vmax.f32 %v977_v17, 0.0  ;;  %v1284_v36 = vmax.f32 %v972_v35, 0.0 }
 0x150   : > { %v9811_v42 = vpack.c.bf16 %v2243_v22, %v2242_v8  ;;  %v1287_v47 = vmax.f32 %v987_v52, 0.0  ;;  %v992_v58 = vadd.f32 %v9217_v39, %v9401_v25  ;;  %v1286_v9 = vmax.f32 %v982_v60, 0.0  ;;  %8349 = vmatpush1.bf16.msra.mxu1 %v8348_v18 }
 0x151   : > { %v1289_v20 = vmax.f32 %v997_v50, 0.0  ;;  %v9824_v4 = vadd.f32 %v9406_v62, %v9217_v39  ;;  %v1002_v31 = vadd.f32 %v9217_v39, %v9424_v37  ;;  %v1526_v33 = vrot.slane %v1285_v14, 1  ;;  %8350 = vmatprep.subr.bf16.mxu1 %v12274_v32  ;;  %v12313_v37 = vld [vmem:[#allocation3_spill] sm:$0xff] }
 0x152   : > { %v1524_v26 = vrot.slane %v1284_v36, 1  ;;  %v1530_v34 = vrot.slane %v1287_v47, 1  ;;  %v1288_v16 = vmax.f32 %v992_v58, 0.0  ;;  %v1528_v49 = vrot.slane %v1286_v9, 1  ;;  %v12314_v58 = vld [vmem:[#allocation4_spill] sm:$0xff] }
 0x153   : > { %v1534_v45 = vrot.slane %v1289_v20, 1  ;;  %v1291_v13 = vmax.f32 %v9824_v4, 0.0  ;;  %v1290_v11 = vmax.f32 %v1002_v31, 0.0  ;;  %v9835_v23 = vadd.f32 %v12313_v37, %v9217_v39  ;;  %v2309_v4 = vld [vmem:[%s12195_s3 + $0x30] sm:$0xff] }
 0x154   : > { %v1525_v25 = vsel %vm1436_vm4, %v9727_v15, %v1524_v26  ;;  %v1527_v62 = vsel %vm1436_vm4, %v1524_v26, %v1526_v33  ;;  %v1532_v53 = vrot.slane %v1288_v16, 1  ;;  %v1529_v44 = vsel %vm1436_vm4, %v1526_v33, %v1528_v49  ;;  %8352 = vmatpush1.bf16.msra.mxu1 %v8351_v40 }
 0x155   : > { %v9839_v24 = vmax.f32 %v1283_v28, %v1525_v25  ;;  %v9841_v18 = vmax.f32 %v1284_v36, %v1527_v62  ;;  %v1531_v59 = vsel %vm1436_vm4, %v1528_v49, %v1530_v34  ;;  %v9845_v38 = vmax.f32 %v1285_v14, %v1529_v44  ;;  %8353 = vmatprep.subr.bf16.mxu1 %v12274_v32  ;;  %v2303_v44 = vld [vmem:[%s12195_s3] sm:$0xff] }
 0x156   : > { %v9847_v15 = vmax.f32 %v1286_v9, %v1531_v59  ;;  %v1533_v54 = vsel %vm1436_vm4, %v1530_v34, %v1532_v53  ;;  %v1535_v8 = vsel %vm1436_vm4, %v1532_v53, %v1534_v45  ;;  %v1538_v17 = vrot.slane %v1291_v13, 1  ;;  %v12316_v53 = vld [vmem:[#allocation6_spill] sm:$0xff] }
 0x157   : > { %v2003_v30 = vrot.slane %v9839_v24, 4  ;;  %v2005_v28 = vrot.slane %v9841_v18, 4  ;;  %v9853_v2 = vmax.f32 %v1287_v47, %v1533_v54  ;;  %v9855_v22 = vmax.f32 %v1288_v16, %v1535_v8 }
 0x158   : > { %v2007_v3 = vrot.slane %v9845_v38, 4  ;;  %v2009_v46 = vrot.slane %v9847_v15, 4  ;;  %v1536_v35 = vrot.slane %v1290_v11, 1  ;;  %v1293_v50 = vmax.f32 %v9835_v23, 0.0  ;;  %8355 = vmatpush1.bf16.msra.mxu1 %v9796_v29  ;;  %v9892_v29 = vld [vmem:[%s12194_s2] ss:$0 sm:$0xff] }
 0x159   : > { %v2006_v40 = vsel %vm1923_vm5, %v2003_v30, %v2005_v28  ;;  %v2011_v52 = vrot.slane %v9853_v2, 4  ;;  %v2013_v60 = vrot.slane %v9855_v22, 4  ;;  %v1012_v9 = vadd.f32 %v9217_v39, %v12314_v58  ;;  %8356 = vmatprep.subr.bf16.mxu1 %v12274_v32 }
 0x15a   : > { %v9867_v14 = vsel %vm1923_vm5, %v2007_v3, %v2009_v46  ;;  %v1537_v36 = vsel %vm1436_vm4, %v1534_v45, %v1536_v35  ;;  %v1539_v47 = vsel %vm1436_vm4, %v1536_v35, %v1538_v17  ;;  %v1542_v34 = vrot.slane %v1293_v50, 1 }
 0x15b   : > { %v9877_v31 = vsel %vm1923_vm5, %v2011_v52, %v2013_v60  ;;  %v9879_v33 = vmax.f32 %v1289_v20, %v1537_v36  ;;  %v9881_v26 = vmax.f32 %v1290_v11, %v1539_v47  ;;  %v1292_v16 = vmax.f32 %v1012_v9, 0.0  ;;  %v12315_v20 = vld [vmem:[#allocation5_spill] sm:$0xff] }
 0x15c   : > { %v2004_v49 = vsel %vm1923_vm5, %v2001_v61, %v2003_v30  ;;  %v2246_v39 = vmax.f32 %v9631_v51, %v9783_v43  ;;  %v9896_v45 = vadd.f32 %v9892_v29, %v12315_v20  ;;  %v1022_v61 = vadd.f32 %v9892_v29, %v12316_v53  ;;  %8358 = vmatpush1.bf16.msra.mxu1 %v9699_v1  ;;  %v2310_v1 = vld [vmem:[%s12195_s3 + $0x38] sm:$0xff]  ;;  %v12319_v53 = vld [vmem:[#allocation9_spill] sm:$0xff] }
 0x15d   : > { %v2015_v11 = vrot.slane %v9879_v33, 4  ;;  %v2017_v25 = vrot.slane %v9881_v26, 4  ;;  %v2247_v62 = vmax.f32 %v9706_v10, %v2004_v49  ;;  %v1540_v37 = vrot.slane %v1292_v16, 1  ;;  %8359 = vmatprep.subr.bf16.mxu1 %v12274_v32 }
 0x15e   : > { %v1295_v51 = vmax.f32 %v9896_v45, 0.0  ;;  %v2008_v43 = vsel %vm1923_vm5, %v2005_v28, %v2007_v3  ;;  %v2248_v23 = vmax.f32 %v9711_v12, %v2006_v40  ;;  %v1294_v54 = vmax.f32 %v1022_v61, 0.0  ;;  %v12317_v3 = vld [vmem:[#allocation7_spill] sm:$0xff] }
 0x15f   : > { %v9913_v10 = vsel %vm1923_vm5, %v2015_v11, %v2017_v25  ;;  %v9915_v59 = vpack.c.bf16 %v2247_v62, %v2246_v39  ;;  %v2249_v8 = vmax.f32 %v9747_v48, %v2008_v43  ;;  %v1541_v12 = vsel %vm1436_vm4, %v1538_v17, %v1540_v37  ;;  %2679 = vmatmul.mubr.f32.vlgmr.msra.gmra.mrb[66].mxu1 %v2303_v44  ;;  %v12318_v17 = vld [vmem:[#allocation8_spill] sm:$0xff] }
 0x160   : > { %v1543_v30 = vsel %vm1436_vm4, %v1540_v37, %v1542_v34  ;;  %v1546_v28 = vrot.slane %v1295_v51, 1  ;;  %v9926_v35 = vadd.f32 %v9892_v29, %v12317_v3  ;;  %v9930_v40 = vmax.f32 %v1291_v13, %v1541_v12  ;;  %8361 = vmatpush1.bf16.msra.mxu1 %v9801_v19  ;;  %2683 = vmatprep.mubr.f32.mxu1 %v2310_v1  ;;  %v12320_v37 = vld [vmem:[#allocation10_spill] sm:$0xff] }
 0x161   : > { %v9932_v48 = vmax.f32 %v1292_v16, %v1543_v30  ;;  %v1544_v36 = vrot.slane %v1294_v54, 1  ;;  %v9934_v47 = vpack.c.bf16 %v2249_v8, %v2248_v23  ;;  %v1032_v9 = vadd.f32 %v9892_v29, %v12318_v17  ;;  %8362 = vmatprep.subr.bf16.mxu1 %v12274_v32 }
 0x162   : > { %v1297_v58 = vmax.f32 %v9926_v35, 0.0  ;;  %v2012_v49 = vsel %vm1923_vm5, %v2009_v46, %v2011_v52  ;;  %v2250_v39 = vmax.f32 %v9749_v5, %v9867_v14  ;;  %v2019_v13 = vrot.slane %v9930_v40, 4  ;;  %v2316_v5 = vld [vmem:[%s12195_s3 + $0x68] sm:$0xff] }
 0x163   : > { %v2021_v16 = vrot.slane %v9932_v48, 4  ;;  %v1545_v20 = vsel %vm1436_vm4, %v1542_v34, %v1544_v36  ;;  %v1547_v45 = vsel %vm1436_vm4, %v1544_v36, %v1546_v28  ;;  %v1296_v14 = vmax.f32 %v1032_v9, 0.0  ;;  %2684 = vmatmul.mubr.f32.gmra.mrb[68].mxu1 %v2309_v4  ;;  %v12322_v4 = vld [vmem:[#allocation12_spill] sm:$0xff] }
 0x164   : > { %v9954_v19 = vmax.f32 %v1293_v50, %v1545_v20  ;;  %v9956_v46 = vmax.f32 %v1294_v54, %v1547_v45  ;;  %v1550_v52 = vrot.slane %v1297_v58, 1  ;;  %v2251_v34 = vmax.f32 %v9839_v24, %v2012_v49  ;;  %8364 = vmatpush1.bf16.msra.mxu1 %v9811_v42  ;;  %2688 = vmatprep.mubr.f32.mxu1 %v2316_v5  ;;  %v2315_v24 = vld [vmem:[%s12195_s3 + $0x60] sm:$0xff]  ;;  %v12321_v49 = vld [vmem:[#allocation11_spill] sm:$0xff] }
 0x165   : > { %v9961_v62 = vsel %vm1923_vm5, %v2019_v13, %v2021_v16  ;;  %v9966_v61 = vadd.f32 %v9892_v29, %v12319_v53  ;;  %v1042_v43 = vadd.f32 %v9892_v29, %v12320_v37  ;;  %v1548_v44 = vrot.slane %v1296_v14, 1  ;;  %8365 = vmatprep.subr.bf16.mxu1 %v12274_v32 }
 0x166   : > { %v2023_v50 = vrot.slane %v9954_v19, 4  ;;  %v2025_v23 = vrot.slane %v9956_v46, 4  ;;  %v2016_v54 = vsel %vm1923_vm5, %v2013_v60, %v2015_v11  ;;  %v9979_v8 = vpack.c.bf16 %v2251_v34, %v2250_v39  ;;  %v2322_v60 = vld [vmem:[%s12195_s3 + $0x98] sm:$0xff]  ;;  %v2328_v34 = vld [vmem:[%s12195_s3 + $0xc8] sm:$0xff] }
 0x167   : > { %v1299_v1 = vmax.f32 %v9966_v61, 0.0  ;;  %v1298_v12 = vmax.f32 %v1042_v43, 0.0  ;;  %v2252_v30 = vmax.f32 %v9841_v18, %v9877_v31  ;;  %v1549_v11 = vsel %vm1436_vm4, %v1546_v28, %v1548_v44  ;;  %2689 = vmatmul.mubr.f32.gmra.mrb[70].mxu1 %v2315_v24  ;;  %v12323_v43 = vld [vmem:[#allocation13_spill] sm:$0xff] }
 0x168   : > { %v9991_v42 = vsel %vm1923_vm5, %v2023_v50, %v2025_v23  ;;  %v1551_v3 = vsel %vm1436_vm4, %v1548_v44, %v1550_v52  ;;  %v2253_v35 = vmax.f32 %v9845_v38, %v2016_v54  ;;  %v9996_v36 = vmax.f32 %v1295_v51, %v1549_v11  ;;  %8367 = vmatpush1.bf16.msra.mxu1 %v9813_v63  ;;  %v2321_v51 = vld [vmem:[%s12195_s3 + $0x90] sm:$0xff]  ;;  %v2334_v11 = vld [vmem:[%s12195_s3 + $0xf8] sm:$0xff] }
 0x169   : > { %v9998_v18 = vmax.f32 %v1296_v14, %v1551_v3  ;;  %v1554_v31 = vrot.slane %v1299_v1, 1  ;;  %v1552_v17 = vrot.slane %v1298_v12, 1  ;;  %v10004_v39 = vadd.f32 %v9892_v29, %v12321_v49  ;;  %2693 = vmatprep.mubr.f32.mxu1 %v2322_v60  ;;  %8368 = vmatprep.subr.bf16.mxu1 %v12274_v32 }
 0x16a   : > { %v10000_v9 = vpack.c.bf16 %v2253_v35, %v2252_v30  ;;  %v1052_v28 = vadd.f32 %v9892_v29, %v12322_v4  ;;  %v2020_v38 = vsel %vm1923_vm5, %v2017_v25, %v2019_v13  ;;  %v2027_v20 = vrot.slane %v9996_v36, 4  ;;  %v2327_v30 = vld [vmem:[%s12195_s3 + $0xc0] sm:$0xff]  ;;  %v12324_v4 = vld [vmem:[#allocation14_spill] sm:$0xff] }
 0x16b   : > { %v2029_v45 = vrot.slane %v9998_v18, 4  ;;  %v1553_v5 = vsel %vm1436_vm4, %v1550_v52, %v1552_v17  ;;  %v1555_v14 = vsel %vm1436_vm4, %v1552_v17, %v1554_v31  ;;  %v1301_v13 = vmax.f32 %v10004_v39, 0.0  ;;  %2694 = vmatmul.mubr.f32.gmra.mrb[72].mxu1 %v2321_v51 }
 0x16c   : > { %v10023_v63 = vmax.f32 %v1297_v58, %v1553_v5  ;;  %v10025_v25 = vmax.f32 %v1298_v12, %v1555_v14  ;;  %v1300_v53 = vmax.f32 %v1052_v28, 0.0  ;;  %v2254_v52 = vmax.f32 %v9847_v15, %v9913_v10  ;;  %2698 = vmatprep.mubr.f32.mxu1 %v2328_v34  ;;  %8370 = vmatpush1.bf16.msra.mxu1 %v9915_v59  ;;  %v10089_v14 = vpop.f32.mrb[44].mxu1 }
 0x16d   : > { %v10031_v61 = vsel %vm1923_vm5, %v2027_v20, %v2029_v45  ;;  %v2255_v37 = vmax.f32 %v9853_v2, %v2020_v38  ;;  %v10038_v44 = vadd.f32 %v9892_v29, %v12323_v43  ;;  %v1558_v24 = vrot.slane %v1301_v13, 1  ;;  %8371 = vmatprep.subr.bf16.mxu1 %v12274_v32  ;;  %v12325_v38 = vld [vmem:[#allocation15_spill] sm:$0xff]  ;;  %v12326_v43 = vld [vmem:[#allocation16_spill] sm:$0xff] }
 0x16e   : > { %v2031_v58 = vrot.slane %v10023_v63, 4  ;;  %v2033_v54 = vrot.slane %v10025_v25, 4  ;;  %v1556_v12 = vrot.slane %v1300_v53, 1  ;;  %v1062_v10 = vadd.f32 %v9892_v29, %v9610_v7 }
 0x16f   : > { %v10046_v15 = vpack.c.bf16 %v2255_v37, %v2254_v52  ;;  %v1303_v2 = vmax.f32 %v10038_v44, 0.0  ;;  %v2024_v60 = vsel %vm1923_vm5, %v2021_v16, %v2023_v50  ;;  %v2256_v7 = vmax.f32 %v9855_v22, %v9961_v62  ;;  %2699 = vmatmul.mubr.f32.gmra.mrb[74].mxu1 %v2327_v30  ;;  %v2333_v62 = vld [vmem:[%s12195_s3 + $0xf0] sm:$0xff]  ;;  %v10099_v52 = vpop.f32.mrb[45].mxu1 }
 0x170   : > { %v10061_v59 = vsel %vm1923_vm5, %v2031_v58, %v2033_v54  ;;  %v1557_v3 = vsel %vm1436_vm4, %v1554_v31, %v1556_v12  ;;  %v1559_v35 = vsel %vm1436_vm4, %v1556_v12, %v1558_v24  ;;  %v1302_v49 = vmax.f32 %v1062_v10, 0.0  ;;  %2703 = vmatprep.mubr.f32.mxu1 %v2334_v11  ;;  %8373 = vmatpush1.bf16.msra.mxu1 %v9934_v47 }
 0x171   : > { %v10067_v17 = vmax.f32 %v1299_v1, %v1557_v3  ;;  %v10069_v16 = vmax.f32 %v1300_v53, %v1559_v35  ;;  %v1562_v50 = vrot.slane %v1303_v2, 1  ;;  %v2257_v39 = vmax.f32 %v9879_v33, %v2024_v60  ;;  %8374 = vmatprep.subr.bf16.mxu1 %v12274_v32  ;;  %v10116_v60 = vpop.f32.mrb[46].mxu1 }
 0x172   : > { %v10074_v28 = vadd.f32 %v9892_v29, %v12324_v4  ;;  %v1072_v31 = vadd.f32 %v9892_v29, %v12325_v38  ;;  %v2028_v22 = vsel %vm1923_vm5, %v2025_v23, %v2027_v20  ;;  %v1560_v51 = vrot.slane %v1302_v49, 1  ;;  %v2340_v23 = vld [vmem:[%s12195_s3 + $0x128] sm:$0xff] }
 0x173   : > { %v2035_v33 = vrot.slane %v10067_v17, 4  ;;  %v2037_v1 = vrot.slane %v10069_v16, 4  ;;  %v2258_v5 = vmax.f32 %v9881_v26, %v9991_v42  ;;  %v10095_v20 = vpack.c.bf16 %v2257_v39, %v2256_v7  ;;  %2704 = vmatmul.mubr.f32.gmra.mrb[76].mxu1 %v2333_v62  ;;  %v10130_v7 = vpop.f32.mrb[47].mxu1  ;;  %v12327_v62 = vld [vmem:[#allocation17_spill] sm:$0xff] }
 0x174   : > { %v1305_v47 = vmax.f32 %v10074_v28, 0.0  ;;  %v1304_v34 = vmax.f32 %v1072_v31, 0.0  ;;  %v2259_v53 = vmax.f32 %v9930_v40, %v2028_v22  ;;  %v1561_v42 = vsel %vm1436_vm4, %v1558_v24, %v1560_v51  ;;  %2708 = vmatprep.mubr.f32.mxu1 %v2340_v23  ;;  %v2339_v24 = vld [vmem:[%s12195_s3 + $0x120] sm:$0xff]  ;;  %8376 = vmatpush1.bf16.msra.mxu1 %v9979_v8 }
 0x175   : > { %v10104_v26 = vsel %vm1923_vm5, %v2035_v33, %v2037_v1  ;;  %v1563_v37 = vsel %vm1436_vm4, %v1560_v51, %v1562_v50  ;;  %v10110_v44 = vadd.f32 %v9892_v29, %v12326_v43  ;;  %v10112_v12 = vmax.f32 %v1301_v13, %v1561_v42  ;;  %8377 = vmatprep.subr.bf16.mxu1 %v12274_v32  ;;  %v10158_v51 = vpop.f32.mrb[48].mxu1 }
 0x176   : > { %v10114_v30 = vmax.f32 %v1302_v49, %v1563_v37  ;;  %v1566_v40 = vrot.slane %v1305_v47, 1  ;;  %v1564_v10 = vrot.slane %v1304_v34, 1  ;;  %v10122_v11 = vpack.c.bf16 %v2259_v53, %v2258_v5  ;;  %v2346_v49 = vld [vmem:[%s12195_s3 + $0x158] sm:$0xff]  ;;  %v2345_v5 = vld [vmem:[%s12195_s3 + $0x150] sm:$0xff]  ;;  %v2352_v53 = vld [vmem:[%s12195_s3 + $0x188] sm:$0xff] }
 0x177   : > { %v1307_v3 = vmax.f32 %v10110_v44, 0.0  ;;  %v1082_v13 = vadd.f32 %v9892_v29, %v9682_v41  ;;  %v2032_v35 = vsel %vm1923_vm5, %v2029_v45, %v2031_v58  ;;  %v2039_v8 = vrot.slane %v10112_v12, 4  ;;  %2709 = vmatmul.mubr.f32.gmra.mrb[78].mxu1 %v2339_v24 }
 0x178   : > { %v2041_v39 = vrot.slane %v10114_v30, 4  ;;  %v1565_v4 = vsel %vm1436_vm4, %v1562_v50, %v1564_v10  ;;  %v1567_v41 = vsel %vm1436_vm4, %v1564_v10, %v1566_v40  ;;  %v2260_v22 = vmax.f32 %v9932_v48, %v10031_v61  ;;  %2713 = vmatprep.mubr.f32.mxu1 %v2346_v49  ;;  %8379 = vmatpush1.bf16.msra.mxu1 %v10000_v9  ;;  %v10168_v61 = vpop.f32.mrb[49].mxu1 }
 0x179   : > { %v10140_v28 = vmax.f32 %v1303_v2, %v1565_v4  ;;  %v10142_v38 = vmax.f32 %v1304_v34, %v1567_v41  ;;  %v1570_v45 = vrot.slane %v1307_v3, 1  ;;  %v1306_v58 = vmax.f32 %v1082_v13, 0.0  ;;  %8380 = vmatprep.subr.bf16.mxu1 %v12274_v32 }
 0x17a   : > { %v10149_v31 = vsel %vm1923_vm5, %v2039_v8, %v2041_v39  ;;  %v2261_v50 = vmax.f32 %v9954_v19, %v2032_v35  ;;  %v10156_v2 = vadd.f32 %v9892_v29, %v12327_v62  ;;  %v1092_v19 = vadd.f32 %v9892_v29, %v9709_v21 }
 0x17b   : > { %v2043_v23 = vrot.slane %v10140_v28, 4  ;;  %v2045_v34 = vrot.slane %v10142_v38, 4  ;;  %v1568_v48 = vrot.slane %v1306_v58, 1  ;;  %v2036_v37 = vsel %vm1923_vm5, %v2033_v54, %v2035_v33  ;;  %2714 = vmatmul.mubr.f32.gmra.mrb[80].mxu1 %v2345_v5  ;;  %v10194_v33 = vpop.f32.mrb[50].mxu1 }
 0x17c   : > { %v10174_v42 = vpack.c.bf16 %v2261_v50, %v2260_v22  ;;  %v1309_v9 = vmax.f32 %v10156_v2, 0.0  ;;  %v2262_v43 = vmax.f32 %v9956_v46, %v10061_v59  ;;  %v1308_v13 = vmax.f32 %v1092_v19, 0.0  ;;  %2718 = vmatprep.mubr.f32.mxu1 %v2352_v53  ;;  %v2351_v46 = vld [vmem:[%s12195_s3 + $0x180] sm:$0xff]  ;;  %8382 = vmatpush1.bf16.msra.mxu1 %v10046_v15  ;;  %v10209_v41 = vpop.f32.mrb[51].mxu1 }
 0x17d   : > { %v10185_v21 = vsel %vm1923_vm5, %v2043_v23, %v2045_v34  ;;  %v1569_v10 = vsel %vm1436_vm4, %v1566_v40, %v1568_v48  ;;  %v1571_v24 = vsel %vm1436_vm4, %v1568_v48, %v1570_v45  ;;  %v2263_v54 = vmax.f32 %v9996_v36, %v2036_v37  ;;  %8383 = vmatprep.subr.bf16.mxu1 %v12274_v32 }
 0x17e   : > { %v10189_v35 = vmax.f32 %v1305_v47, %v1569_v10  ;;  %v10191_v49 = vmax.f32 %v1306_v58, %v1571_v24  ;;  %v1574_v4 = vrot.slane %v1309_v9, 1  ;;  %v1572_v59 = vrot.slane %v1308_v13, 1  ;;  %v2358_v58 = vld [vmem:[%s12195_s3 + $0x1b8] sm:$0xff] }
 0x17f   : > { %v10202_v40 = vadd.f32 %v9892_v29, %v9722_v6  ;;  %v1102_v47 = vadd.f32 %v9892_v29, %v9744_v27  ;;  %v2040_v36 = vsel %vm1923_vm5, %v2037_v1, %v2039_v8  ;;  %v10217_v22 = vpack.c.bf16 %v2263_v54, %v2262_v43  ;;  %2719 = vmatmul.mubr.f32.gmra.mrb[82].mxu1 %v2351_v46 }
 0x180   : > { %v2047_v15 = vrot.slane %v10189_v35, 4  ;;  %v2049_v6 = vrot.slane %v10191_v49, 4  ;;  %v2264_v27 = vmax.f32 %v9998_v18, %v10104_v26  ;;  %v1573_v50 = vsel %vm1436_vm4, %v1570_v45, %v1572_v59  ;;  %v10236_v26 = vpop.f32.mrb[52].mxu1  ;;  %2723 = vmatprep.mubr.f32.mxu1 %v2358_v58  ;;  %v2357_v45 = vld [vmem:[%s12195_s3 + $0x1b0] sm:$0xff]  ;;  %8385 = vmatpush1.bf16.msra.mxu1 %v10095_v20 }
 0x181   : > { %v1575_v1 = vsel %vm1436_vm4, %v1572_v59, %v1574_v4  ;;  %v1311_v8 = vmax.f32 %v10202_v40, 0.0  ;;  %v1310_v62 = vmax.f32 %v1102_v47, 0.0  ;;  %v10231_v5 = vmax.f32 %v1307_v3, %v1573_v50  ;;  %v10248_v37 = vpop.f32.mrb[53].mxu1  ;;  %8386 = vmatprep.subr.bf16.mxu1 %v12274_v32 }
 0x182   : > { %v10227_v2 = vsel %vm1923_vm5, %v2047_v15, %v2049_v6  ;;  %v10233_v48 = vmax.f32 %v1308_v13, %v1575_v1  ;;  %v2265_v18 = vmax.f32 %v10023_v63, %v2040_v36  ;;  %v10244_v44 = vadd.f32 %v9892_v29, %v9751_v0  ;;  %v2364_v63 = vld [vmem:[%s12195_s3 + $0x1e8] sm:$0xff]  ;;  %v10273_v36 = vpop.f32.mrb[54].mxu1 }
 0x183   : > { %v1578_v19 = vrot.slane %v1311_v8, 1  ;;  %v1576_v53 = vrot.slane %v1310_v62, 1  ;;  %v1112_v3 = vadd.f32 %v9892_v29, %v9778_v55  ;;  %v2051_v43 = vrot.slane %v10231_v5, 4  ;;  %2724 = vmatmul.mubr.f32.gmra.mrb[84].mxu1 %v2357_v45 }
 0x184   : > { %v2053_v20 = vrot.slane %v10233_v48, 4  ;;  %v10256_v10 = vpack.c.bf16 %v2265_v18, %v2264_v27  ;;  %v2044_v0 = vsel %vm1923_vm5, %v2041_v39, %v2043_v23  ;;  %v1313_v13 = vmax.f32 %v10244_v44, 0.0  ;;  %2728 = vmatprep.mubr.f32.mxu1 %v2364_v63  ;;  %v2363_v39 = vld [vmem:[%s12195_s3 + $0x1e0] sm:$0xff]  ;;  %8388 = vmatpush1.bf16.msra.mxu1 %v10122_v11  ;;  %v10284_v27 = vpop.f32.mrb[55].mxu1 }
 0x185   : > { %v1577_v55 = vsel %vm1436_vm4, %v1574_v4, %v1576_v53  ;;  %v1579_v24 = vsel %vm1436_vm4, %v1576_v53, %v1578_v19  ;;  %v1312_v54 = vmax.f32 %v1112_v3, 0.0  ;;  %v2266_v47 = vmax.f32 %v10025_v25, %v10149_v31  ;;  %v2370_v25 = vld [vmem:[%s12195_s3 + $0x218] sm:$0xff]  ;;  %8389 = vmatprep.subr.bf16.mxu1 %v12274_v32  ;;  %v10307_v3 = vpop.f32.mrb[56].mxu1 }
 0x186   : > { %v10265_v46 = vsel %vm1923_vm5, %v2051_v43, %v2053_v20  ;;  %v10267_v59 = vmax.f32 %v1309_v9, %v1577_v55  ;;  %v10269_v40 = vmax.f32 %v1310_v62, %v1579_v24  ;;  %v1582_v23 = vrot.slane %v1313_v13, 1  ;;  %v2376_v55 = vld [vmem:[%s12195_s3 + $0x248] sm:$0xff] }
 0x187   : > { %v1580_v4 = vrot.slane %v1312_v54, 1  ;;  %v2267_v58 = vmax.f32 %v10067_v17, %v2044_v0  ;;  %v10282_v9 = vadd.f32 %v9892_v29, %v9786_v56  ;;  %v1122_v50 = vadd.f32 %v9892_v29, %v9809_v57  ;;  %2729 = vmatmul.mubr.f32.gmra.mrb[86].mxu1 %v2363_v39  ;;  %v10323_v0 = vpop.f32.mrb[57].mxu1 }
 0x188   : > { %v2055_v31 = vrot.slane %v10267_v59, 4  ;;  %v2057_v11 = vrot.slane %v10269_v40, 4  ;;  %v2048_v56 = vsel %vm1923_vm5, %v2045_v34, %v2047_v15  ;;  %2733 = vmatprep.mubr.f32.mxu1 %v2370_v25  ;;  %v2369_v34 = vld [vmem:[%s12195_s3 + $0x210] sm:$0xff]  ;;  %8391 = vmatpush1.bf16.msra.mxu1 %v10174_v42  ;;  %v2052_v63 = vsel %vm1923_vm5, %v2049_v6, %v2051_v43 }
 0x189   : > { %v1581_v17 = vsel %vm1436_vm4, %v1578_v19, %v1580_v4  ;;  %v1583_v1 = vsel %vm1436_vm4, %v1580_v4, %v1582_v23  ;;  %v10299_v62 = vpack.c.bf16 %v2267_v58, %v2266_v47  ;;  %v1315_v18 = vmax.f32 %v10282_v9, 0.0  ;;  %8392 = vmatprep.subr.bf16.mxu1 %v12274_v32  ;;  %v2393_v9 = vld [vmem:[%s12195_s3 + $0x2d0] sm:$0xff] }
 0x18a   : > { %v2058_v45 = vsel %vm1923_vm5, %v2055_v31, %v2057_v11  ;;  %v10303_v53 = vmax.f32 %v1311_v8, %v1581_v17  ;;  %v10305_v44 = vmax.f32 %v1312_v54, %v1583_v1  ;;  %v1314_v57 = vmax.f32 %v1122_v50, 0.0 }
 0x18b   : > { %v10315_v15 = vrot.slane %v1315_v18, 1  ;;  %v2268_v8 = vmax.f32 %v10069_v16, %v10185_v21  ;;  %v2269_v19 = vmax.f32 %v10112_v12, %v2048_v56  ;;  %v2270_v16 = vmax.f32 %v10114_v30, %v10227_v2  ;;  %2734 = vmatmul.mubr.f32.gmra.mrb[88].mxu1 %v2369_v34  ;;  %v10344_v30 = vpop.f32.mrb[58].mxu1 }
 0x18c   : > { %v2059_v42 = vrot.slane %v10303_v53, 4  ;;  %v2061_v24 = vrot.slane %v10305_v44, 4  ;;  %v1584_v54 = vrot.slane %v1314_v57, 1  ;;  %v2271_v21 = vmax.f32 %v10140_v28, %v2052_v63  ;;  %2738 = vmatprep.mubr.f32.mxu1 %v2376_v55  ;;  %v2375_v28 = vld [vmem:[%s12195_s3 + $0x240] sm:$0xff]  ;;  %8394 = vmatpush1.bf16.msra.mxu1 %v10217_v22 }
 0x18d   : > { %v10333_v12 = vpack.c.bf16 %v2269_v19, %v2268_v8  ;;  %v2056_v6 = vsel %vm1923_vm5, %v2053_v20, %v2055_v31  ;;  %v2272_v43 = vmax.f32 %v10142_v38, %v10265_v46  ;;  %v10356_v46 = vpop.f32.mrb[59].mxu1  ;;  %8395 = vmatprep.subr.bf16.mxu1 %v12274_v32  ;;  %v2274_v22 = vmax.f32 %v10191_v49, %v2058_v45 }
 0x18e   : > { %v2062_v47 = vsel %vm1923_vm5, %v2059_v42, %v2061_v24  ;;  %v1585_v39 = vsel %vm1436_vm4, %v1582_v23, %v1584_v54  ;;  %v1587_v4 = vsel %vm1436_vm4, %v1584_v54, %v10315_v15  ;;  %v2273_v58 = vmax.f32 %v10189_v35, %v2056_v6  ;;  %v2382_v35 = vld [vmem:[%s12195_s3 + $0x278] sm:$0xff]  ;;  %v10384_v45 = vpop.f32.mrb[60].mxu1  ;;  %v2387_v6 = vld [vmem:[%s12195_s3 + $0x2a0] sm:$0xff] }
 0x18f   : > { %v10350_v38 = vmax.f32 %v1313_v13, %v1585_v39  ;;  %v10352_v2 = vmax.f32 %v1314_v57, %v1587_v4  ;;  %v10354_v20 = vpack.c.bf16 %v2271_v21, %v2270_v16  ;;  %v2060_v25 = vsel %vm1923_vm5, %v2057_v11, %v2059_v42  ;;  %2739 = vmatmul.mubr.f32.gmra.mrb[90].mxu1 %v2375_v28  ;;  %v2388_v57 = vld [vmem:[%s12195_s3 + $0x2a8] sm:$0xff]  ;;  %v2394_v39 = vld [vmem:[%s12195_s3 + $0x2d8] sm:$0xff] }
 0x190   : > { %v10362_v23 = vpack.c.bf16 %v2273_v58, %v2272_v43  ;;  %v2276_v13 = vmax.f32 %v10233_v48, %v2062_v47  ;;  %v2275_v56 = vmax.f32 %v10231_v5, %v2060_v25  ;;  %v1137_v17 = vadd.f32 %v9892_v29, %v10089_v14  ;;  %2743 = vmatprep.mubr.f32.mxu1 %v2382_v35  ;;  %v2381_v14 = vld [vmem:[%s12195_s3 + $0x270] sm:$0xff]  ;;  %v10398_v5 = vpop.f32.mrb[61].mxu1 }
 0x191   : > { %v2063_v31 = vrot.slane %v10350_v38, 4  ;;  %v2065_v50 = vrot.slane %v10352_v2, 4  ;;  %v1132_v1 = vadd.f32 %v9892_v29, %v10099_v52  ;;  %v10376_v11 = vadd.f32 %v9892_v29, %v10116_v60  ;;  %8397 = vmatpush1.bf16.msra.mxu1 %v10256_v10 }
 0x192   : > { %v1142_v49 = vadd.f32 %v9892_v29, %v10130_v7  ;;  %v10382_v48 = vadd.f32 %v9892_v29, %v10158_v51  ;;  %v10395_v60 = vpack.c.bf16 %v2275_v56, %v2274_v22  ;;  %v1317_v51 = vmax.f32 %v1137_v17, 0.0  ;;  %8398 = vmatprep.subr.bf16.mxu1 %v12274_v32 }
 0x193   : > { %v10393_v52 = vsel %vm1923_vm5, %v2063_v31, %v2065_v50  ;;  %v2064_v7 = vsel %vm1923_vm5, %v2061_v24, %v2063_v31  ;;  %v1316_v34 = vmax.f32 %v1132_v1, 0.0  ;;  %v1319_v8 = vmax.f32 %v10376_v11, 0.0  ;;  %2744 = vmatmul.mubr.f32.gmra.mrb[92].mxu1 %v2381_v14 }
 0x194   : > { %v2277_v10 = vmax.f32 %v10267_v59, %v2064_v7  ;;  %v1318_v19 = vmax.f32 %v1142_v49, 0.0  ;;  %v1590_v63 = vrot.slane %v1317_v51, 1  ;;  %v1321_v55 = vmax.f32 %v10382_v48, 0.0  ;;  %2748 = vmatprep.mubr.f32.mxu1 %v2388_v57  ;;  %v10455_v49 = vpop.f32.mrb[62].mxu1 }
 0x195   : > { %v1152_v42 = vadd.f32 %v9892_v29, %v10168_v61  ;;  %v10411_v24 = vadd.f32 %v9892_v29, %v10194_v33  ;;  %v1588_v16 = vrot.slane %v1316_v34, 1  ;;  %v1594_v21 = vrot.slane %v1319_v8, 1  ;;  %8400 = vmatpush1.bf16.msra.mxu1 %v10299_v62 }
 0x196   : > { %v10413_v54 = vpack.c.bf16 %v2277_v10, %v2276_v13  ;;  %v1592_v59 = vrot.slane %v1318_v19, 1  ;;  %v1598_v43 = vrot.slane %v1321_v55, 1  ;;  %v1162_v33 = vadd.f32 %v9892_v29, %v10209_v41  ;;  %8401 = vmatprep.subr.bf16.mxu1 %v12274_v32 }
 0x197   : > { %v1320_v47 = vmax.f32 %v1152_v42, 0.0  ;;  %v1323_v61 = vmax.f32 %v10411_v24, 0.0  ;;  %v1589_v4 = vsel %vm1436_vm4, %v10315_v15, %v1588_v16  ;;  %v1591_v58 = vsel %vm1436_vm4, %v1588_v16, %v1590_v63  ;;  %2749 = vmatmul.mubr.f32.gmra.mrb[94].mxu1 %v2387_v6  ;;  %v2411_v24 = vld [vmem:[%s12195_s3 + $0x360] sm:$0xff] }
 0x198   : > { %v1593_v62 = vsel %vm1436_vm4, %v1590_v63, %v1592_v59  ;;  %v1595_v28 = vsel %vm1436_vm4, %v1592_v59, %v1594_v21  ;;  %v10433_v35 = vmax.f32 %v1315_v18, %v1589_v4  ;;  %v10435_v41 = vmax.f32 %v1316_v34, %v1591_v58  ;;  %2753 = vmatprep.mubr.f32.mxu1 %v2394_v39  ;;  %v2399_v59 = vld [vmem:[%s12195_s3 + $0x300] sm:$0xff] }
 0x199   : > { %v10437_v25 = vmax.f32 %v1317_v51, %v1593_v62  ;;  %v10439_v22 = vmax.f32 %v1318_v19, %v1595_v28  ;;  %v1596_v13 = vrot.slane %v1320_v47, 1  ;;  %v1602_v15 = vrot.slane %v1323_v61, 1  ;;  %8403 = vmatpush1.bf16.msra.mxu1 %v10333_v12  ;;  %v10464_v51 = vpop.f32.mrb[63].mxu1 }
 0x19a   : > { %v1322_v31 = vmax.f32 %v1162_v33, 0.0  ;;  %v10445_v56 = vadd.f32 %v9892_v29, %v10236_v26  ;;  %v2067_v18 = vrot.slane %v10433_v35, 4  ;;  %v2069_v17 = vrot.slane %v10435_v41, 4  ;;  %v2400_v26 = vld [vmem:[%s12195_s3 + $0x308] sm:$0xff]  ;;  %8404 = vmatprep.subr.bf16.mxu1 %v12274_v32  ;;  %v2406_v33 = vld [vmem:[%s12195_s3 + $0x338] sm:$0xff]  ;;  %v10503_v4 = vpop.f32.mrb[64].mxu1 }
 0x19b   : > { %v2071_v1 = vrot.slane %v10437_v25, 4  ;;  %v2073_v11 = vrot.slane %v10439_v22, 4  ;;  %v1597_v48 = vsel %vm1436_vm4, %v1594_v21, %v1596_v13  ;;  %v1599_v12 = vsel %vm1436_vm4, %v1596_v13, %v1598_v43  ;;  %2754 = vmatmul.mubr.f32.gmra.mrb[96].mxu1 %v2393_v9  ;;  %v10513_v13 = vpop.f32.mrb[65].mxu1  ;;  %v2405_v9 = vld [vmem:[%s12195_s3 + $0x330] sm:$0xff] }
 0x19c   : > { %v1600_v14 = vrot.slane %v1322_v31, 1  ;;  %v1325_v7 = vmax.f32 %v10445_v56, 0.0  ;;  %v2070_v57 = vsel %vm1923_vm5, %v2067_v18, %v2069_v17  ;;  %v10470_v34 = vmax.f32 %v1319_v8, %v1597_v48  ;;  %2758 = vmatprep.mubr.f32.mxu1 %v2400_v26 }
 0x19d   : > { %v10468_v10 = vsel %vm1923_vm5, %v2071_v1, %v2073_v11  ;;  %v10472_v19 = vmax.f32 %v1320_v47, %v1599_v12  ;;  %v1172_v21 = vadd.f32 %v9892_v29, %v10248_v37  ;;  %8406 = vmatpush1.bf16.msra.mxu1 %v10354_v20  ;;  %v2068_v39 = vsel %vm1923_vm5, %v2065_v50, %v2067_v18 }
 0x19e   : > { %v1601_v63 = vsel %vm1436_vm4, %v1598_v43, %v1600_v14  ;;  %v1603_v42 = vsel %vm1436_vm4, %v1600_v14, %v1602_v15  ;;  %v1606_v16 = vrot.slane %v1325_v7, 1  ;;  %v2075_v8 = vrot.slane %v10470_v34, 4  ;;  %8407 = vmatprep.subr.bf16.mxu1 %v12274_v32 }
 0x19f   : > { %v2077_v6 = vrot.slane %v10472_v19, 4  ;;  %v10486_v43 = vmax.f32 %v1321_v55, %v1601_v63  ;;  %v10488_v47 = vmax.f32 %v1322_v31, %v1603_v42  ;;  %v1324_v37 = vmax.f32 %v1172_v21, 0.0  ;;  %2759 = vmatmul.mubr.f32.gmra.mrb[98].mxu1 %v2399_v59 }
 0x1a0   : > { %v2278_v20 = vmax.f32 %v10269_v40, %v10393_v52  ;;  %v10501_v55 = vadd.f32 %v9892_v29, %v10273_v36  ;;  %v2279_v50 = vmax.f32 %v10303_v53, %v2068_v39  ;;  %v1182_v52 = vadd.f32 %v9892_v29, %v10284_v27  ;;  %2763 = vmatprep.mubr.f32.mxu1 %v2406_v33  ;;  %v2412_v27 = vld [vmem:[%s12195_s3 + $0x368] sm:$0xff] }
 0x1a1   : > { %v10508_v58 = vsel %vm1923_vm5, %v2075_v8, %v2077_v6  ;;  %v2079_v62 = vrot.slane %v10486_v43, 4  ;;  %v2081_v28 = vrot.slane %v10488_v47, 4  ;;  %v1604_v40 = vrot.slane %v1324_v37, 1 }
 0x1a2   : > { %v1327_v36 = vmax.f32 %v10501_v55, 0.0  ;;  %v2072_v31 = vsel %vm1923_vm5, %v2069_v17, %v2071_v1  ;;  %v10527_v18 = vpack.c.bf16 %v2279_v50, %v2278_v20  ;;  %v2280_v26 = vmax.f32 %v10305_v44, %v2070_v57 }
 0x1a3   : > { %v10525_v53 = vsel %vm1923_vm5, %v2079_v62, %v2081_v28  ;;  %v2281_v48 = vmax.f32 %v10350_v38, %v2072_v31  ;;  %v1605_v17 = vsel %vm1436_vm4, %v1602_v15, %v1604_v40  ;;  %v1607_v1 = vsel %vm1436_vm4, %v1604_v40, %v1606_v16  ;;  %2764 = vmatmul.mubr.f32.gmra.mrb[100].mxu1 %v2405_v9 }
 0x1a4   : > { %v1610_v12 = vrot.slane %v1327_v36, 1  ;;  %v1326_v14 = vmax.f32 %v1182_v52, 0.0  ;;  %v10538_v63 = vmax.f32 %v1323_v61, %v1605_v17  ;;  %v10540_v42 = vmax.f32 %v1324_v37, %v1607_v1  ;;  %2768 = vmatprep.mubr.f32.mxu1 %v2412_v27  ;;  %v2417_v52 = vld [vmem:[%s12195_s3 + $0x390] sm:$0xff] }
 0x1a5   : > { %v10542_v21 = vpack.c.bf16 %v2281_v48, %v2280_v26  ;;  %v1197_v44 = vadd.f32 %v9892_v29, %v10307_v3  ;;  %v1192_v15 = vadd.f32 %v9892_v29, %v10323_v0  ;;  %v2076_v57 = vsel %vm1923_vm5, %v2073_v11, %v2075_v8  ;;  %v2418_v0 = vld [vmem:[%s12195_s3 + $0x398] sm:$0xff] }
 0x1a6   : > { %v1608_v38 = vrot.slane %v1326_v14, 1  ;;  %v2282_v59 = vmax.f32 %v10352_v2, %v10468_v10  ;;  %v2083_v61 = vrot.slane %v10538_v63, 4  ;;  %v2085_v33 = vrot.slane %v10540_v42, 4 }
 0x1a7   : > { %v1329_v3 = vmax.f32 %v1197_v44, 0.0  ;;  %v2283_v37 = vmax.f32 %v10433_v35, %v2076_v57  ;;  %v1328_v10 = vmax.f32 %v1192_v15, 0.0  ;;  %v10564_v8 = vadd.f32 %v9892_v29, %v10344_v30  ;;  %2769 = vmatmul.mubr.f32.gmra.mrb[102].mxu1 %v2411_v24 }
 0x1a8   : > { %v1609_v11 = vsel %vm1436_vm4, %v1606_v16, %v1608_v38  ;;  %v1611_v2 = vsel %vm1436_vm4, %v1608_v38, %v1610_v12  ;;  %v10569_v39 = vsel %vm1923_vm5, %v2083_v61, %v2085_v33  ;;  %v1202_v30 = vadd.f32 %v9892_v29, %v10356_v46  ;;  %2773 = vmatprep.mubr.f32.mxu1 %v2418_v0  ;;  %v2424_v46 = vld [vmem:[%s12195_s3 + $0x3c8] sm:$0xff] }
 0x1a9   : > { %v10573_v35 = vmax.f32 %v1325_v7, %v1609_v11  ;;  %v10575_v20 = vmax.f32 %v1326_v14, %v1611_v2  ;;  %v1614_v55 = vrot.slane %v1329_v3, 1  ;;  %v1612_v16 = vrot.slane %v1328_v10, 1 }
 0x1aa   : > { %v10577_v50 = vpack.c.bf16 %v2283_v37, %v2282_v59  ;;  %v1331_v40 = vmax.f32 %v10564_v8, 0.0  ;;  %v2080_v31 = vsel %vm1923_vm5, %v2077_v6, %v2079_v62  ;;  %v2284_v9 = vmax.f32 %v10435_v41, %v10508_v58  ;;  %v2429_v8 = vld [vmem:[%s12195_s3 + $0x3f0] sm:$0xff] }
 0x1ab   : > { %v2087_v56 = vrot.slane %v10573_v35, 4  ;;  %v2089_v7 = vrot.slane %v10575_v20, 4  ;;  %v1613_v26 = vsel %vm1436_vm4, %v1610_v12, %v1612_v16  ;;  %v1615_v48 = vsel %vm1436_vm4, %v1612_v16, %v1614_v55  ;;  %2774 = vmatmul.mubr.f32.gmra.mrb[104].mxu1 %v2417_v52 }
 0x1ac   : > { %v1618_v27 = vrot.slane %v1331_v40, 1  ;;  %v1330_v17 = vmax.f32 %v1202_v30, 0.0  ;;  %v10602_v14 = vmax.f32 %v1327_v36, %v1613_v26  ;;  %v10604_v6 = vmax.f32 %v1328_v10, %v1615_v48  ;;  %2778 = vmatprep.mubr.f32.mxu1 %v2424_v46  ;;  %v2423_v36 = vld [vmem:[%s12195_s3 + $0x3c0] sm:$0xff] }
 0x1ad   : > { %v10600_v1 = vsel %vm1923_vm5, %v2087_v56, %v2089_v7  ;;  %v2285_v41 = vmax.f32 %v10437_v25, %v2080_v31  ;;  %v1217_v62 = vadd.f32 %v9892_v29, %v10384_v45  ;;  %v1212_v12 = vadd.f32 %v9892_v29, %v10398_v5  ;;  %v2430_v5 = vld [vmem:[%s12195_s3 + $0x3f8] sm:$0xff] }
 0x1ae   : > { %v1616_v58 = vrot.slane %v1330_v17, 1  ;;  %v2084_v44 = vsel %vm1923_vm5, %v2081_v28, %v2083_v61  ;;  %v2091_v38 = vrot.slane %v10602_v14, 4  ;;  %v2093_v25 = vrot.slane %v10604_v6, 4 }
 0x1af   : > { %v10619_v15 = vpack.c.bf16 %v2285_v41, %v2284_v9  ;;  %v2286_v45 = vmax.f32 %v10439_v22, %v10525_v53  ;;  %v1333_v59 = vmax.f32 %v1217_v62, 0.0  ;;  %v1332_v24 = vmax.f32 %v1212_v12, 0.0  ;;  %2779 = vmatmul.mubr.f32.gmra.mrb[106].mxu1 %v2423_v36  ;;  %v2435_v41 = vld [vmem:[%s12195_s3 + $0x420] sm:$0xff] }
 0x1b0   : > { %v1617_v28 = vsel %vm1436_vm4, %v1614_v55, %v1616_v58  ;;  %v1619_v57 = vsel %vm1436_vm4, %v1616_v58, %v1618_v27  ;;  %v10629_v61 = vsel %vm1923_vm5, %v2091_v38, %v2093_v25  ;;  %v2287_v11 = vmax.f32 %v10470_v34, %v2084_v44  ;;  %2783 = vmatprep.mubr.f32.mxu1 %v2430_v5 }
 0x1b1   : > { %v10631_v37 = vmax.f32 %v1329_v3, %v1617_v28  ;;  %v10633_v0 = vmax.f32 %v1330_v17, %v1619_v57  ;;  %v1622_v22 = vrot.slane %v1333_v59, 1  ;;  %v1620_v53 = vrot.slane %v1332_v24, 1  ;;  %v2441_v57 = vld [vmem:[%s12195_s3 + $0x450] sm:$0xff] }
 0x1b2   : > { %v1227_v2 = vadd.f32 %v9892_v29, %v10455_v49  ;;  %v1222_v10 = vadd.f32 %v9892_v29, %v10464_v51  ;;  %v10645_v16 = vpack.c.bf16 %v2287_v11, %v2286_v45  ;;  %v2088_v34 = vsel %vm1923_vm5, %v2085_v33, %v2087_v56  ;;  %v2436_v49 = vld [vmem:[%s12195_s3 + $0x428] sm:$0xff] }
 0x1b3   : > { %v2095_v3 = vrot.slane %v10631_v37, 4  ;;  %v2097_v55 = vrot.slane %v10633_v0, 4  ;;  %v1621_v51 = vsel %vm1436_vm4, %v1618_v27, %v1620_v53  ;;  %v1623_v30 = vsel %vm1436_vm4, %v1620_v53, %v1622_v22  ;;  %2784 = vmatmul.mubr.f32.gmra.mrb[108].mxu1 %v2429_v8  ;;  %v2448_v53 = vld [vmem:[%s12195_s3 + $0x488] sm:$0xff] }
 0x1b4   : > { %v1335_v52 = vmax.f32 %v1227_v2, 0.0  ;;  %v1334_v31 = vmax.f32 %v1222_v10, 0.0  ;;  %v10656_v46 = vmax.f32 %v1331_v40, %v1621_v51  ;;  %v10658_v26 = vmax.f32 %v1332_v24, %v1623_v30  ;;  %2788 = vmatprep.mubr.f32.mxu1 %v2436_v49 }
 0x1b5   : > { %v2098_v9 = vsel %vm1923_vm5, %v2095_v3, %v2097_v55  ;;  %v2288_v48 = vmax.f32 %v10472_v19, %v10569_v39  ;;  %v2289_v17 = vmax.f32 %v10486_v43, %v2088_v34  ;;  %v1237_v27 = vadd.f32 %v9892_v29, %v10503_v4  ;;  %v2442_v43 = vld [vmem:[%s12195_s3 + $0x458] sm:$0xff] }
 0x1b6   : > { %v1626_v33 = vrot.slane %v1335_v52, 1  ;;  %v1624_v56 = vrot.slane %v1334_v31, 1  ;;  %v2099_v40 = vrot.slane %v10656_v46, 4  ;;  %v2101_v58 = vrot.slane %v10658_v26, 4 }
 0x1b7   : > { %v1232_v19 = vadd.f32 %v9892_v29, %v10513_v13  ;;  %v2092_v39 = vsel %vm1923_vm5, %v2089_v7, %v2091_v38  ;;  %v10680_v12 = vpack.c.bf16 %v2289_v17, %v2288_v48  ;;  %v1337_v44 = vmax.f32 %v1237_v27, 0.0  ;;  %2789 = vmatmul.mubr.f32.gmra.mrb[110].mxu1 %v2435_v41  ;;  %v2453_v27 = vld [vmem:[%s12195_s3 + $0x4b0] sm:$0xff] }
 0x1b8   : > { %v1625_v4 = vsel %vm1436_vm4, %v1622_v22, %v1624_v56  ;;  %v1627_v62 = vsel %vm1436_vm4, %v1624_v56, %v1626_v33  ;;  %v2102_v36 = vsel %vm1923_vm5, %v2099_v40, %v2101_v58  ;;  %v2290_v7 = vmax.f32 %v10488_v47, %v10600_v1  ;;  %2793 = vmatprep.mubr.f32.mxu1 %v2442_v43  ;;  %v2459_v43 = vld [vmem:[%s12195_s3 + $0x4e0] sm:$0xff] }
 0x1b9   : > { %v1823_v45 = vmax.f32 %v1333_v59, %v1625_v4  ;;  %v1824_v5 = vmax.f32 %v1334_v31, %v1627_v62  ;;  %v1336_v29 = vmax.f32 %v1232_v19, 0.0  ;;  %v1630_v13 = vrot.slane %v1337_v44, 1  ;;  %v2472_v4 = vld [vmem:[%s12195_s3 + $0x548] sm:$0xff]  ;;  %v2471_v62 = vld [vmem:[%s12195_s3 + $0x540] sm:$0xff] }
 0x1ba   : > { %v2291_v38 = vmax.f32 %v10538_v63, %v2092_v39  ;;  %v2096_v28 = vsel %vm1923_vm5, %v2093_v25, %v2095_v3  ;;  %v2292_v59 = vmax.f32 %v10540_v42, %v10629_v61  ;;  %v2100_v25 = vsel %vm1923_vm5, %v2097_v55, %v2099_v40 }
 0x1bb   : > { %v2103_v24 = vrot.slane %v1823_v45, 4  ;;  %v2105_v11 = vrot.slane %v1824_v5, 4  ;;  %v1628_v22 = vrot.slane %v1336_v29, 1  ;;  %v1827_v47 = vmax.f32 %v1337_v44, %v1630_v13  ;;  %2794 = vmatmul.mubr.f32.gmra.mrb[112].mxu1 %v2441_v57  ;;  %v2478_v44 = vld [vmem:[%s12195_s3 + $0x578] sm:$0xff]  ;;  %v2501_v57 = vld [vmem:[%s12195_s3 + $0x630] sm:$0xff] }
 0x1bc   : > { %v10695_v1 = vpack.c.bf16 %v2291_v38, %v2290_v7  ;;  %v2293_v63 = vmax.f32 %v10573_v35, %v2096_v28  ;;  %v2294_v3 = vmax.f32 %v10575_v20, %v2098_v9  ;;  %2798 = vmatprep.mubr.f32.mxu1 %v2448_v53  ;;  %v2447_v35 = vld [vmem:[%s12195_s3 + $0x480] sm:$0xff]  ;;  %v2295_v55 = vmax.f32 %v10602_v14, %v2100_v25  ;;  %v2454_v20 = vld [vmem:[%s12195_s3 + $0x4b8] sm:$0xff]  ;;  %v2496_v7 = vld [vmem:[%s12195_s3 + $0x608] sm:$0xff] }
 0x1bd   : > { %v2106_v2 = vsel %vm1923_vm5, %v2103_v24, %v2105_v11  ;;  %v1629_v10 = vsel %vm1436_vm4, %v1626_v33, %v1628_v22  ;;  %v1631_v8 = vsel %vm1436_vm4, %v1628_v22, %v1630_v13  ;;  %v2111_v42 = vrot.slane %v1827_v47, 4  ;;  %v2489_v13 = vld [vmem:[%s12195_s3 + $0x5d0] sm:$0xff]  ;;  %v2495_v38 = vld [vmem:[%s12195_s3 + $0x600] sm:$0xff]  ;;  %v2502_v28 = vld [vmem:[%s12195_s3 + $0x638] sm:$0xff] }
 0x1be   : > { %v1825_v61 = vmax.f32 %v1335_v52, %v1629_v10  ;;  %v1826_v34 = vmax.f32 %v1336_v29, %v1631_v8  ;;  %v10703_v49 = vpack.c.bf16 %v2293_v63, %v2292_v59  ;;  %v2104_v51 = vsel %vm1923_vm5, %v2101_v58, %v2103_v24  ;;  %v2460_v58 = vld [vmem:[%s12195_s3 + $0x4e8] sm:$0xff]  ;;  %v2490_v29 = vld [vmem:[%s12195_s3 + $0x5d8] sm:$0xff]  ;;  %v2311_v59 = vld [vmem:[%s12195_s3 + $0x40] sm:$0xff] }
 0x1bf   : > { %v2296_v30 = vmax.f32 %v10604_v6, %v2102_v36  ;;  %v2298_v31 = vmax.f32 %v10633_v0, %v2106_v2  ;;  %v10715_v52 = vmax.f32 %v1824_v5, %v2111_v42  ;;  %v2297_v33 = vmax.f32 %v10631_v37, %v2104_v51  ;;  %2799 = vmatmul.mubr.f32.gmra.mrb[114].mxu1 %v2447_v35  ;;  %v2477_v36 = vld [vmem:[%s12195_s3 + $0x570] sm:$0xff]  ;;  %v2483_v5 = vld [vmem:[%s12195_s3 + $0x5a0] sm:$0xff]  ;;  %v2306_v24 = vld [vmem:[%s12195_s3 + $0x18] sm:$0xff] }
 0x1c0   : > { %v2107_v9 = vrot.slane %v1825_v61, 4  ;;  %v2109_v48 = vrot.slane %v1826_v34, 4  ;;  %v10718_v56 = vpack.c.bf16 %v2295_v55, %v2294_v3  ;;  %2803 = vmatprep.mubr.f32.mxu1 %v2454_v20  ;;  %v2312_v22 = vld [vmem:[%s12195_s3 + $0x48] sm:$0xff]  ;;  %v2318_v53 = vld [vmem:[%s12195_s3 + $0x78] sm:$0xff]  ;;  %v2317_v47 = vld [vmem:[%s12195_s3 + $0x70] sm:$0xff] }
 0x1c1   : > { %v10722_v6 = vpack.c.bf16 %v2297_v33, %v2296_v30  ;;  %v2323_v63 = vld [vmem:[%s12195_s3 + $0xa0] sm:$0xff]  ;;  %v2329_v25 = vld [vmem:[%s12195_s3 + $0xd0] sm:$0xff]  ;;  %v2342_v10 = vld [vmem:[%s12195_s3 + $0x138] sm:$0xff] }
 0x1c2   : > { %v2110_v14 = vsel %vm1923_vm5, %v2107_v9, %v2109_v48  ;;  %v2112_v17 = vsel %vm1923_vm5, %v2109_v48, %v2111_v42  ;;  %v2108_v0 = vsel %vm1923_vm5, %v2105_v11, %v2107_v9  ;;  %v2305_v11 = vld [vmem:[%s12195_s3 + $0x10] sm:$0xff]  ;;  %v2335_v2 = vld [vmem:[%s12195_s3 + $0x100] sm:$0xff]  ;;  %v2348_v8 = vld [vmem:[%s12195_s3 + $0x168] sm:$0xff]  ;;  %v8950_v48 = vmov 0.0  }
 0x1c3   : > { %v2300_v41 = vmax.f32 %v10658_v26, %v2110_v14  ;;  %v2301_v40 = vmax.f32 %v1823_v45, %v2112_v17  ;;  %v2299_v37 = vmax.f32 %v10656_v46, %v2108_v0  ;;  %2804 = vmatmul.mubr.f32.gmra.mrb[116].mxu1 %v2453_v27  ;;  %v2466_v26 = vld [vmem:[%s12195_s3 + $0x518] sm:$0xff]  ;;  %v2465_v46 = vld [vmem:[%s12195_s3 + $0x510] sm:$0xff]  ;;  %v2484_v45 = vld [vmem:[%s12195_s3 + $0x5a8] sm:$0xff] }
 0x1c4   : > { %2808 = vmatprep.mubr.f32.mxu1 %v2460_v58  ;;  %v2354_v3 = vld [vmem:[%s12195_s3 + $0x198] sm:$0xff]  ;;  %v2360_v42 = vld [vmem:[%s12195_s3 + $0x1c8] sm:$0xff]  ;;  %v2389_v30 = vld [vmem:[%s12195_s3 + $0x2b0] sm:$0xff] }
 0x1c5   : > { %v10733_v19 = vpack.c.bf16 %v2299_v37, %v2298_v31  ;;  %v10735_v39 = vpack.c.bf16 %v2301_v40, %v2300_v41  ;;  %v2366_v61 = vld [vmem:[%s12195_s3 + $0x1f8] sm:$0xff]  ;;  %v2372_v34 = vld [vmem:[%s12195_s3 + $0x228] sm:$0xff]  ;;  %v2395_v20 = vld [vmem:[%s12195_s3 + $0x2e0] sm:$0xff] }
 0x1c6   : > { %v2378_v35 = vld [vmem:[%s12195_s3 + $0x258] sm:$0xff]  ;;  %v2384_v55 = vld [vmem:[%s12195_s3 + $0x288] sm:$0xff]  ;;  %v2401_v33 = vld [vmem:[%s12195_s3 + $0x310] sm:$0xff] }
 0x1c7   : > { %2809 = vmatmul.mubr.f32.gmra.mrb[118].mxu1 %v2459_v43  ;;  %v2390_v51 = vld [vmem:[%s12195_s3 + $0x2b8] sm:$0xff]  ;;  %v2396_v31 = vld [vmem:[%s12195_s3 + $0x2e8] sm:$0xff]  ;;  %v2407_v14 = vld [vmem:[%s12195_s3 + $0x340] sm:$0xff] }
 0x1c8   : > { %2813 = vmatprep.mubr.f32.mxu1 %v2466_v26  ;;  %v2402_v9 = vld [vmem:[%s12195_s3 + $0x318] sm:$0xff]  ;;  %v2419_v0 = vld [vmem:[%s12195_s3 + $0x3a0] sm:$0xff]  ;;  %v2425_v41 = vld [vmem:[%s12195_s3 + $0x3d0] sm:$0xff] }
 0x1c9   : > { %v2414_v17 = vld [vmem:[%s12195_s3 + $0x378] sm:$0xff]  ;;  %v2432_v40 = vld [vmem:[%s12195_s3 + $0x408] sm:$0xff]  ;;  %v2431_v37 = vld [vmem:[%s12195_s3 + $0x400] sm:$0xff] }
 0x1ca   : > { %v2426_v27 = vld [vmem:[%s12195_s3 + $0x3d8] sm:$0xff]  ;;  %v2443_v43 = vld [vmem:[%s12195_s3 + $0x460] sm:$0xff] }
 0x1cb   : > { %2814 = vmatmul.mubr.f32.gmra.mrb[120].mxu1 %v2465_v46  ;;  %v2438_v58 = vld [vmem:[%s12195_s3 + $0x438] sm:$0xff]  ;;  %v2449_v46 = vld [vmem:[%s12195_s3 + $0x490] sm:$0xff] }
 0x1cc   : > { %2818 = vmatprep.mubr.f32.mxu1 %v2472_v4  ;;  %v2450_v26 = vld [vmem:[%s12195_s3 + $0x498] sm:$0xff]  ;;  %v2456_v4 = vld [vmem:[%s12195_s3 + $0x4c8] sm:$0xff] }
 0x1cf   : > { %2819 = vmatmul.mubr.f32.gmra.mrb[122].mxu1 %v2471_v62  ;;  %v2455_v62 = vld [vmem:[%s12195_s3 + $0x4c0] sm:$0xff] }
 0x1d0   : > { %2823 = vmatprep.mubr.f32.mxu1 %v2478_v44  ;;  %v2462_v44 = vld [vmem:[%s12195_s3 + $0x4f8] sm:$0xff] }
 0x1d3   : > { %2824 = vmatmul.mubr.f32.gmra.mrb[124].mxu1 %v2477_v36  ;;  %v2461_v36 = vld [vmem:[%s12195_s3 + $0x4f0] sm:$0xff] }
 0x1d4   : > { %2828 = vmatprep.mubr.f32.mxu1 %v2484_v45  ;;  %v2468_v45 = vld [vmem:[%s12195_s3 + $0x528] sm:$0xff] }
 0x1d7   : > { %2829 = vmatmul.mubr.f32.gmra.mrb[126].mxu1 %v2483_v5  ;;  %v2467_v5 = vld [vmem:[%s12195_s3 + $0x520] sm:$0xff] }
 0x1d8   : > { %2833 = vmatprep.mubr.f32.mxu1 %v2490_v29  ;;  %v2474_v29 = vld [vmem:[%s12195_s3 + $0x558] sm:$0xff] }
 0x1db   : > { %2834 = vmatmul.mubr.f32.gmra.mrb[128].mxu1 %v2489_v13  ;;  %v2473_v13 = vld [vmem:[%s12195_s3 + $0x550] sm:$0xff] }
 0x1dc   : > { %2838 = vmatprep.mubr.f32.mxu1 %v2496_v7  ;;  %v2480_v7 = vld [vmem:[%s12195_s3 + $0x588] sm:$0xff] }
 0x1df   : > { %2839 = vmatmul.mubr.f32.gmra.mrb[130].mxu1 %v2495_v38  ;;  %v2479_v38 = vld [vmem:[%s12195_s3 + $0x580] sm:$0xff] }
 0x1e0   : > { %2843 = vmatprep.mubr.f32.mxu1 %v2502_v28  ;;  %v2486_v28 = vld [vmem:[%s12195_s3 + $0x5b8] sm:$0xff] }
 0x1e3   : > { %2844 = vmatmul.mubr.f32.gmra.mrb[132].mxu1 %v2501_v57  ;;  %v2485_v57 = vld [vmem:[%s12195_s3 + $0x5b0] sm:$0xff] }
 0x1e4   : > { %2913 = vmatprep.mubr.f32.mxu1 %v2306_v24  ;;  %v2492_v24 = vld [vmem:[%s12195_s3 + $0x5e8] sm:$0xff] }
 0x1e7   : > { %2914 = vmatmul.mubr.f32.vlgmr.msra.gmra.mrb[66].mxu1 %v2305_v11  ;;  %v2491_v11 = vld [vmem:[%s12195_s3 + $0x5e0] sm:$0xff] }
 0x1e8   : > { %8409 = vmatpush1.bf16.msra.mxu1 %v10362_v23  ;;  %2918 = vmatprep.mubr.f32.mxu1 %v2312_v22  ;;  %v2324_v23 = vld [vmem:[%s12195_s3 + $0xa8] sm:$0xff]  ;;  %v2498_v22 = vld [vmem:[%s12195_s3 + $0x618] sm:$0xff] }
 0x1e9   : > { %8410 = vmatprep.subr.bf16.mxu1 %v12274_v32 }
 0x1eb   : > { %2919 = vmatmul.mubr.f32.gmra.mrb[68].mxu1 %v2311_v59  ;;  %v2497_v59 = vld [vmem:[%s12195_s3 + $0x610] sm:$0xff] }
 0x1ec   : > { %8412 = vmatpush1.bf16.msra.mxu1 %v10395_v60  ;;  %2923 = vmatprep.mubr.f32.mxu1 %v2318_v53  ;;  %v2330_v60 = vld [vmem:[%s12195_s3 + $0xd8] sm:$0xff]  ;;  %v2504_v53 = vld [vmem:[%s12195_s3 + $0x648] sm:$0xff] }
 0x1ed   : > { %8413 = vmatprep.subr.bf16.mxu1 %v12274_v32 }
 0x1ef   : > { %2924 = vmatmul.mubr.f32.gmra.mrb[70].mxu1 %v2317_v47  ;;  %v2503_v47 = vld [vmem:[%s12195_s3 + $0x640] sm:$0xff] }
 0x1f0   : > { %8415 = vmatpush1.bf16.msra.mxu1 %v10413_v54  ;;  %2928 = vmatprep.mubr.f32.mxu1 %v2324_v23  ;;  %v2336_v54 = vld [vmem:[%s12195_s3 + $0x108] sm:$0xff] }
 0x1f1   : > { %8416 = vmatprep.subr.bf16.mxu1 %v12274_v32  ;;  %v2308_v23 = vld [vmem:[%s12195_s3 + $0x28] sm:$0xff] }
 0x1f3   : > { %2929 = vmatmul.mubr.f32.gmra.mrb[72].mxu1 %v2323_v63  ;;  %v2307_v63 = vld [vmem:[%s12195_s3 + $0x20] sm:$0xff] }
 0x1f4   : > { %2933 = vmatprep.mubr.f32.mxu1 %v2330_v60  ;;  %8418 = vmatpush1.bf16.msra.mxu1 %v10527_v18  ;;  %v2341_v18 = vld [vmem:[%s12195_s3 + $0x130] sm:$0xff]  ;;  %v2314_v60 = vld [vmem:[%s12195_s3 + $0x58] sm:$0xff] }
 0x1f5   : > { %8419 = vmatprep.subr.bf16.mxu1 %v12274_v32 }
 0x1f7   : > { %2934 = vmatmul.mubr.f32.gmra.mrb[74].mxu1 %v2329_v25  ;;  %v2313_v25 = vld [vmem:[%s12195_s3 + $0x50] sm:$0xff] }
 0x1f8   : > { %2938 = vmatprep.mubr.f32.mxu1 %v2336_v54  ;;  %8421 = vmatpush1.bf16.msra.mxu1 %v10542_v21  ;;  %v2347_v21 = vld [vmem:[%s12195_s3 + $0x160] sm:$0xff]  ;;  %v2320_v54 = vld [vmem:[%s12195_s3 + $0x88] sm:$0xff] }
 0x1f9   : > { %8422 = vmatprep.subr.bf16.mxu1 %v12274_v32 }
 0x1fb   : > { %2939 = vmatmul.mubr.f32.gmra.mrb[76].mxu1 %v2335_v2  ;;  %v2319_v2 = vld [vmem:[%s12195_s3 + $0x80] sm:$0xff] }
 0x1fc   : > { %2943 = vmatprep.mubr.f32.mxu1 %v2342_v10  ;;  %8424 = vmatpush1.bf16.msra.mxu1 %v10577_v50  ;;  %v2353_v50 = vld [vmem:[%s12195_s3 + $0x190] sm:$0xff]  ;;  %v2326_v10 = vld [vmem:[%s12195_s3 + $0xb8] sm:$0xff] }
 0x1fd   : > { %8425 = vmatprep.subr.bf16.mxu1 %v12274_v32 }
 0x1ff   : > { %2944 = vmatmul.mubr.f32.gmra.mrb[78].mxu1 %v2341_v18  ;;  %v2325_v18 = vld [vmem:[%s12195_s3 + $0xb0] sm:$0xff] }
 0x200   : > { %2948 = vmatprep.mubr.f32.mxu1 %v2348_v8  ;;  %8427 = vmatpush1.bf16.msra.mxu1 %v10619_v15  ;;  %v2359_v15 = vld [vmem:[%s12195_s3 + $0x1c0] sm:$0xff]  ;;  %v2332_v8 = vld [vmem:[%s12195_s3 + $0xe8] sm:$0xff] }
 0x201   : > { %8428 = vmatprep.subr.bf16.mxu1 %v12274_v32 }
 0x203   : > { %2949 = vmatmul.mubr.f32.gmra.mrb[80].mxu1 %v2347_v21  ;;  %v2331_v21 = vld [vmem:[%s12195_s3 + $0xe0] sm:$0xff] }
 0x204   : > { %2953 = vmatprep.mubr.f32.mxu1 %v2354_v3  ;;  %8430 = vmatpush1.bf16.msra.mxu1 %v10645_v16  ;;  %v2365_v16 = vld [vmem:[%s12195_s3 + $0x1f0] sm:$0xff]  ;;  %v2338_v3 = vld [vmem:[%s12195_s3 + $0x118] sm:$0xff] }
 0x205   : > { %8431 = vmatprep.subr.bf16.mxu1 %v12274_v32 }
 0x207   : > { %2954 = vmatmul.mubr.f32.gmra.mrb[82].mxu1 %v2353_v50  ;;  %v2337_v50 = vld [vmem:[%s12195_s3 + $0x110] sm:$0xff] }
 0x208   : > { %2958 = vmatprep.mubr.f32.mxu1 %v2360_v42  ;;  %8433 = vmatpush1.bf16.msra.mxu1 %v10680_v12  ;;  %v2371_v12 = vld [vmem:[%s12195_s3 + $0x220] sm:$0xff]  ;;  %v2344_v42 = vld [vmem:[%s12195_s3 + $0x148] sm:$0xff] }
 0x209   : > { %8434 = vmatprep.subr.bf16.mxu1 %v12274_v32 }
 0x20b   : > { %2959 = vmatmul.mubr.f32.gmra.mrb[84].mxu1 %v2359_v15  ;;  %v2343_v15 = vld [vmem:[%s12195_s3 + $0x140] sm:$0xff] }
 0x20c   : > { %2963 = vmatprep.mubr.f32.mxu1 %v2366_v61  ;;  %8436 = vmatpush1.bf16.msra.mxu1 %v10695_v1  ;;  %v2377_v1 = vld [vmem:[%s12195_s3 + $0x250] sm:$0xff]  ;;  %v2350_v61 = vld [vmem:[%s12195_s3 + $0x178] sm:$0xff] }
 0x20d   : > { %8437 = vmatprep.subr.bf16.mxu1 %v12274_v32 }
 0x20f   : > { %2964 = vmatmul.mubr.f32.gmra.mrb[86].mxu1 %v2365_v16  ;;  %v2349_v16 = vld [vmem:[%s12195_s3 + $0x170] sm:$0xff] }
 0x210   : > { %2968 = vmatprep.mubr.f32.mxu1 %v2372_v34  ;;  %8439 = vmatpush1.bf16.msra.mxu1 %v10703_v49  ;;  %v2383_v49 = vld [vmem:[%s12195_s3 + $0x280] sm:$0xff]  ;;  %v2356_v34 = vld [vmem:[%s12195_s3 + $0x1a8] sm:$0xff] }
 0x211   : > { %8440 = vmatprep.subr.bf16.mxu1 %v12274_v32 }
 0x213   : > { %2969 = vmatmul.mubr.f32.gmra.mrb[88].mxu1 %v2371_v12  ;;  %v2355_v12 = vld [vmem:[%s12195_s3 + $0x1a0] sm:$0xff] }
 0x214   : > { %2973 = vmatprep.mubr.f32.mxu1 %v2378_v35  ;;  %8442 = vmatpush1.bf16.msra.mxu1 %v10718_v56  ;;  %v2408_v56 = vld [vmem:[%s12195_s3 + $0x348] sm:$0xff]  ;;  %v2362_v35 = vld [vmem:[%s12195_s3 + $0x1d8] sm:$0xff] }
 0x215   : > { %8443 = vmatprep.subr.bf16.mxu1 %v12274_v32 }
 0x217   : > { %2974 = vmatmul.mubr.f32.gmra.mrb[90].mxu1 %v2377_v1  ;;  %v2361_v1 = vld [vmem:[%s12195_s3 + $0x1d0] sm:$0xff] }
 0x218   : > { %2978 = vmatprep.mubr.f32.mxu1 %v2384_v55  ;;  %8445 = vmatpush1.bf16.msra.mxu1 %v10722_v6  ;;  %v2420_v6 = vld [vmem:[%s12195_s3 + $0x3a8] sm:$0xff] }
 0x219   : > { %8446 = vmatprep.subr.bf16.mxu1 %v12274_v32  ;;  %v2368_v55 = vld [vmem:[%s12195_s3 + $0x208] sm:$0xff] }
 0x21b   : > { %2979 = vmatmul.mubr.f32.gmra.mrb[92].mxu1 %v2383_v49  ;;  %v2367_v49 = vld [vmem:[%s12195_s3 + $0x200] sm:$0xff] }
 0x21c   : > { %2983 = vmatprep.mubr.f32.mxu1 %v2390_v51  ;;  %8448 = vmatpush1.bf16.msra.mxu1 %v10733_v19  ;;  %v2437_v19 = vld [vmem:[%s12195_s3 + $0x430] sm:$0xff]  ;;  %v2374_v51 = vld [vmem:[%s12195_s3 + $0x238] sm:$0xff] }
 0x21d   : > { %8449 = vmatprep.subr.bf16.mxu1 %v12274_v32 }
 0x21f   : > { %2984 = vmatmul.mubr.f32.gmra.mrb[94].mxu1 %v2389_v30  ;;  %v2373_v30 = vld [vmem:[%s12195_s3 + $0x230] sm:$0xff] }
 0x220   : > { %2988 = vmatprep.mubr.f32.mxu1 %v2396_v31  ;;  %8451 = vmatpush1.bf16.msra.mxu1 %v10735_v39  ;;  %v2444_v39 = vld [vmem:[%s12195_s3 + $0x468] sm:$0xff] }
 0x221   : > { %3144 = vmatprep.subr.mxu1 %v8950_v48  ;;  %v2380_v31 = vld [vmem:[%s12195_s3 + $0x268] sm:$0xff]  ;;  %v2385_v48 = vld [vmem:[%s12195_s3 + $0x290] sm:$0xff] }
 0x223   : > { %2989 = vmatmul.mubr.f32.gmra.mrb[96].mxu1 %v2395_v20  ;;  %v2379_v20 = vld [vmem:[%s12195_s3 + $0x260] sm:$0xff] }
 0x224   : > { %2993 = vmatprep.mubr.f32.mxu1 %v2402_v9  ;;  %6986 = vmatpush1.msk.msra.mxu1 %vm2610_vm6, %v10715_v52  ;;  %v2413_v52 = vld [vmem:[%s12195_s3 + $0x370] sm:$0xff]  ;;  %v2386_v9 = vld [vmem:[%s12195_s3 + $0x298] sm:$0xff] }
 0x225   : > { %8524 = vmatprep.subr.bf16.mxu1 %v12274_v32 }
 0x227   : > { %2994 = vmatmul.mubr.f32.gmra.mrb[98].mxu1 %v2401_v33  ;;  %v2392_v33 = vld [vmem:[%s12195_s3 + $0x2c8] sm:$0xff] }
 0x228   : > { %2998 = vmatprep.mubr.f32.mxu1 %v2408_v56  ;;  %v2391_v56 = vld [vmem:[%s12195_s3 + $0x2c0] sm:$0xff] }
 0x22b   : > { %2999 = vmatmul.mubr.f32.gmra.mrb[100].mxu1 %v2407_v14  ;;  %v2398_v14 = vld [vmem:[%s12195_s3 + $0x2f8] sm:$0xff] }
 0x22c   : > { %3003 = vmatprep.mubr.f32.mxu1 %v2414_v17  ;;  %v2397_v17 = vld [vmem:[%s12195_s3 + $0x2f0] sm:$0xff] }
 0x22f   : > { %3004 = vmatmul.mubr.f32.gmra.mrb[102].mxu1 %v2413_v52  ;;  %v2404_v52 = vld [vmem:[%s12195_s3 + $0x328] sm:$0xff] }
 0x230   : > { %3008 = vmatprep.mubr.f32.mxu1 %v2420_v6  ;;  %v2403_v6 = vld [vmem:[%s12195_s3 + $0x320] sm:$0xff] }
 0x233   : > { %3009 = vmatmul.mubr.f32.gmra.mrb[104].mxu1 %v2419_v0  ;;  %v2410_v0 = vld [vmem:[%s12195_s3 + $0x358] sm:$0xff] }
 0x234   : > { %3013 = vmatprep.mubr.f32.mxu1 %v2426_v27  ;;  %v2409_v27 = vld [vmem:[%s12195_s3 + $0x350] sm:$0xff] }
 0x237   : > { %3014 = vmatmul.mubr.f32.gmra.mrb[106].mxu1 %v2425_v41  ;;  %v2416_v41 = vld [vmem:[%s12195_s3 + $0x388] sm:$0xff] }
 0x238   : > { %3018 = vmatprep.mubr.f32.mxu1 %v2432_v40  ;;  %v2415_v40 = vld [vmem:[%s12195_s3 + $0x380] sm:$0xff] }
 0x23b   : > { %3019 = vmatmul.mubr.f32.gmra.mrb[108].mxu1 %v2431_v37  ;;  %v2422_v37 = vld [vmem:[%s12195_s3 + $0x3b8] sm:$0xff] }
 0x23c   : > { %3023 = vmatprep.mubr.f32.mxu1 %v2438_v58  ;;  %v2421_v58 = vld [vmem:[%s12195_s3 + $0x3b0] sm:$0xff] }
 0x23f   : > { %3024 = vmatmul.mubr.f32.gmra.mrb[110].mxu1 %v2437_v19  ;;  %v2428_v19 = vld [vmem:[%s12195_s3 + $0x3e8] sm:$0xff] }
 0x240   : > { %3028 = vmatprep.mubr.f32.mxu1 %v2444_v39  ;;  %v2427_v39 = vld [vmem:[%s12195_s3 + $0x3e0] sm:$0xff] }
 0x243   : > { %3029 = vmatmul.mubr.f32.gmra.mrb[112].mxu1 %v2443_v43  ;;  %v2434_v43 = vld [vmem:[%s12195_s3 + $0x418] sm:$0xff] }
 0x244   : > { %3033 = vmatprep.mubr.f32.mxu1 %v2450_v26  ;;  %v2433_v26 = vld [vmem:[%s12195_s3 + $0x410] sm:$0xff] }
 0x247   : > { %3034 = vmatmul.mubr.f32.gmra.mrb[114].mxu1 %v2449_v46  ;;  %v2440_v46 = vld [vmem:[%s12195_s3 + $0x448] sm:$0xff] }
 0x248   : > { %3038 = vmatprep.mubr.f32.mxu1 %v2456_v4  ;;  %v2439_v4 = vld [vmem:[%s12195_s3 + $0x440] sm:$0xff] }
 0x24b   : > { %3039 = vmatmul.mubr.f32.gmra.mrb[116].mxu1 %v2455_v62  ;;  %v2446_v62 = vld [vmem:[%s12195_s3 + $0x478] sm:$0xff] }
 0x24c   : > { %3043 = vmatprep.mubr.f32.mxu1 %v2462_v44  ;;  %v2445_v44 = vld [vmem:[%s12195_s3 + $0x470] sm:$0xff] }
 0x24f   : > { %3044 = vmatmul.mubr.f32.gmra.mrb[118].mxu1 %v2461_v36  ;;  %v2452_v36 = vld [vmem:[%s12195_s3 + $0x4a8] sm:$0xff] }
 0x250   : > { %3048 = vmatprep.mubr.f32.mxu1 %v2468_v45  ;;  %v7021_v45 = vld [vmem:[%s12196_s4 + $0x20] sm:$0xff] }
 0x253   : > { %3049 = vmatmul.mubr.f32.gmra.mrb[120].mxu1 %v2467_v5  ;;  %v7022_v5 = vld [vmem:[%s12196_s4 + $0x28] sm:$0xff] }
 0x254   : > { %3053 = vmatprep.mubr.f32.mxu1 %v2474_v29  ;;  %v2451_v29 = vld [vmem:[%s12195_s3 + $0x4a0] sm:$0xff] }
 0x257   : > { %3054 = vmatmul.mubr.f32.gmra.mrb[122].mxu1 %v2473_v13  ;;  %v8452_v13 = vpack.c.bf16 %v7022_v5, %v7021_v45  ;;  %v7081_v5 = vld [vmem:[%s12196_s4 + $0x40] sm:$0xff] }
 0x258   : > { %3058 = vmatprep.mubr.f32.mxu1 %v2480_v7  ;;  %v2458_v7 = vld [vmem:[%s12195_s3 + $0x4d8] sm:$0xff] }
 0x259   : > { %8453 = vmatprep.subr.bf16.mxu0 %v8452_v13 }
 0x25a   : > { %8455 = vmatpush3.bf16.msra.mxu0 %v8452_v13 }
 0x25b   : > { %3059 = vmatmul.mubr.f32.gmra.mrb[124].mxu1 %v2479_v38  ;;  %v7023_v38 = vld [vmem:[%s12196_s4 + $0x30] sm:$0xff] }
 0x25c   : > { %3063 = vmatprep.mubr.f32.mxu1 %v2486_v28  ;;  %v7024_v28 = vld [vmem:[%s12196_s4 + $0x38] sm:$0xff] }
 0x25f   : > { %3064 = vmatmul.mubr.f32.gmra.mrb[126].mxu1 %v2485_v57  ;;  %v2457_v57 = vld [vmem:[%s12195_s3 + $0x4d0] sm:$0xff] }
 0x260   : > { %3068 = vmatprep.mubr.f32.mxu1 %v2492_v24  ;;  %v8456_v24 = vpack.c.bf16 %v7024_v28, %v7023_v38 }
 0x262   : > { %8457 = vmatprep.subr.bf16.mxu0 %v8456_v24 }
 0x263   : > { %3069 = vmatmul.mubr.f32.gmra.mrb[128].mxu1 %v2491_v11  ;;  %v2464_v11 = vld [vmem:[%s12195_s3 + $0x508] sm:$0xff]  ;;  %8459 = vmatpush3.bf16.msra.mxu0 %v8456_v24 }
 0x264   : > { %3073 = vmatprep.mubr.f32.mxu1 %v2498_v22  ;;  %v2463_v22 = vld [vmem:[%s12195_s3 + $0x500] sm:$0xff] }
 0x267   : > { %3074 = vmatmul.mubr.f32.gmra.mrb[130].mxu1 %v2497_v59  ;;  %v2470_v59 = vld [vmem:[%s12195_s3 + $0x538] sm:$0xff] }
 0x268   : > { %3078 = vmatprep.mubr.f32.mxu1 %v2504_v53  ;;  %v2469_v53 = vld [vmem:[%s12195_s3 + $0x530] sm:$0xff] }
 0x26b   : > { %3079 = vmatmul.mubr.f32.gmra.mrb[132].mxu1 %v2503_v47  ;;  %v2476_v47 = vld [vmem:[%s12195_s3 + $0x568] sm:$0xff] }
 0x26c   : > { %6987 = vmatprep.mubr.msk.f32.mxu1 %vm2507_vm7, %v2308_v23  ;;  %v2475_v23 = vld [vmem:[%s12195_s3 + $0x560] sm:$0xff] }
 0x26f   : > { %3149 = vmatmul.mubr.f32.vlgmr.msra.gmra.mrb[66].mxu1 %v2307_v63  ;;  %v2482_v63 = vld [vmem:[%s12195_s3 + $0x598] sm:$0xff] }
 0x270   : > { %6988 = vmatprep.mubr.msk.f32.mxu1 %vm2507_vm7, %v2314_v60  ;;  %v2481_v60 = vld [vmem:[%s12195_s3 + $0x590] sm:$0xff] }
 0x273   : > { %3154 = vmatmul.mubr.f32.gmra.mrb[68].mxu1 %v2313_v25  ;;  %v2488_v25 = vld [vmem:[%s12195_s3 + $0x5c8] sm:$0xff] }
 0x274   : > { %6989 = vmatprep.mubr.msk.f32.mxu1 %vm2507_vm7, %v2320_v54  ;;  %v2487_v54 = vld [vmem:[%s12195_s3 + $0x5c0] sm:$0xff] }
 0x277   : > { %3159 = vmatmul.mubr.f32.gmra.mrb[70].mxu1 %v2319_v2  ;;  %v2494_v2 = vld [vmem:[%s12195_s3 + $0x5f8] sm:$0xff] }
 0x278   : > { %6990 = vmatprep.mubr.msk.f32.mxu1 %vm2507_vm7, %v2326_v10  ;;  %v2493_v10 = vld [vmem:[%s12195_s3 + $0x5f0] sm:$0xff] }
 0x27b   : > { %3164 = vmatmul.mubr.f32.gmra.mrb[72].mxu1 %v2325_v18  ;;  %v2500_v18 = vld [vmem:[%s12195_s3 + $0x628] sm:$0xff] }
 0x27c   : > { %6991 = vmatprep.mubr.msk.f32.mxu1 %vm2507_vm7, %v2332_v8  ;;  %v2499_v8 = vld [vmem:[%s12195_s3 + $0x620] sm:$0xff] }
 0x27f   : > { %3169 = vmatmul.mubr.f32.gmra.mrb[74].mxu1 %v2331_v21  ;;  %v2506_v21 = vld [vmem:[%s12195_s3 + $0x658] sm:$0xff] }
 0x280   : > { %6992 = vmatprep.mubr.msk.f32.mxu1 %vm2507_vm7, %v2338_v3  ;;  %v2505_v3 = vld [vmem:[%s12195_s3 + $0x650] sm:$0xff] }
 0x283   : > { %3174 = vmatmul.mubr.f32.gmra.mrb[76].mxu1 %v2337_v50  ;;  %v3382_v50 = vld [vmem:[%s12196_s4] sm:$0xff] }
 0x284   : > { %6993 = vmatprep.mubr.msk.f32.mxu1 %vm2507_vm7, %v2344_v42  ;;  %v3383_v42 = vld [vmem:[%s12196_s4 + $0x8] sm:$0xff] }
 0x287   : > { %3179 = vmatmul.mubr.f32.gmra.mrb[78].mxu1 %v2343_v15  ;;  %v8460_v15 = vpack.c.bf16 %v3383_v42, %v3382_v50 }
 0x288   : > { %6994 = vmatprep.mubr.msk.f32.mxu1 %vm2507_vm7, %v2350_v61 }
 0x289   : > { %8461 = vmatprep.subr.bf16.mxu0 %v8460_v15 }
 0x28b   : > { %3184 = vmatmul.mubr.f32.gmra.mrb[80].mxu1 %v2349_v16 }
 0x28c   : > { %6995 = vmatprep.mubr.msk.f32.mxu1 %vm2507_vm7, %v2356_v34 }
 0x28f   : > { %3189 = vmatmul.mubr.f32.gmra.mrb[82].mxu1 %v2355_v12 }
 0x290   : > { %6996 = vmatprep.mubr.msk.f32.mxu1 %vm2507_vm7, %v2362_v35 }
 0x293   : > { %3194 = vmatmul.mubr.f32.gmra.mrb[84].mxu1 %v2361_v1 }
 0x294   : > { %6997 = vmatprep.mubr.msk.f32.mxu1 %vm2507_vm7, %v2368_v55 }
 0x297   : > { %3199 = vmatmul.mubr.f32.gmra.mrb[86].mxu1 %v2367_v49 }
 0x298   : > { %6998 = vmatprep.mubr.msk.f32.mxu1 %vm2507_vm7, %v2374_v51  ;;  %v3384_v51 = vld [vmem:[%s12196_s4 + $0x10] sm:$0xff] }
 0x29b   : > { %3204 = vmatmul.mubr.f32.gmra.mrb[88].mxu1 %v2373_v30  ;;  %v3385_v30 = vld [vmem:[%s12196_s4 + $0x18] sm:$0xff] }
 0x29c   : > { %6999 = vmatprep.mubr.msk.f32.mxu1 %vm2507_vm7, %v2380_v31 }
 0x29f   : > { %3209 = vmatmul.mubr.f32.gmra.mrb[90].mxu1 %v2379_v20  ;;  %v8464_v20 = vpack.c.bf16 %v3385_v30, %v3384_v51 }
 0x2a0   : > { %7000 = vmatprep.mubr.msk.f32.mxu1 %vm2507_vm7, %v2386_v9 }
 0x2a3   : > { %3214 = vmatmul.mubr.f32.gmra.mrb[92].mxu1 %v2385_v48 }
 0x2a4   : > { %7001 = vmatprep.mubr.msk.f32.mxu1 %vm2507_vm7, %v2392_v33 }
 0x2a7   : > { %3219 = vmatmul.mubr.f32.gmra.mrb[94].mxu1 %v2391_v56 }
 0x2a8   : > { %7002 = vmatprep.mubr.msk.f32.mxu1 %vm2507_vm7, %v2398_v14 }
 0x2ab   : > { %3224 = vmatmul.mubr.f32.gmra.mrb[96].mxu1 %v2397_v17 }
 0x2ac   : > { %7003 = vmatprep.mubr.msk.f32.mxu1 %vm2507_vm7, %v2404_v52 }
 0x2af   : > { %3229 = vmatmul.mubr.f32.gmra.mrb[98].mxu1 %v2403_v6 }
 0x2b0   : > { %7004 = vmatprep.mubr.msk.f32.mxu1 %vm2507_vm7, %v2410_v0 }
 0x2b3   : > { %3234 = vmatmul.mubr.f32.gmra.mrb[100].mxu1 %v2409_v27 }
 0x2b4   : > { %7005 = vmatprep.mubr.msk.f32.mxu1 %vm2507_vm7, %v2416_v41 }
 0x2b7   : > { %3239 = vmatmul.mubr.f32.gmra.mrb[102].mxu1 %v2415_v40 }
 0x2b8   : > { %7006 = vmatprep.mubr.msk.f32.mxu1 %vm2507_vm7, %v2422_v37 }
 0x2bb   : > { %3244 = vmatmul.mubr.f32.gmra.mrb[104].mxu1 %v2421_v58 }
 0x2bc   : > { %7007 = vmatprep.mubr.msk.f32.mxu1 %vm2507_vm7, %v2428_v19 }
 0x2bf   : > { %3249 = vmatmul.mubr.f32.gmra.mrb[106].mxu1 %v2427_v39 }
 0x2c0   : > { %7008 = vmatprep.mubr.msk.f32.mxu1 %vm2507_vm7, %v2434_v43 }
 0x2c3   : > { %3254 = vmatmul.mubr.f32.gmra.mrb[108].mxu1 %v2433_v26 }
 0x2c4   : > { %7009 = vmatprep.mubr.msk.f32.mxu1 %vm2507_vm7, %v2440_v46 }
 0x2c7   : > { %3259 = vmatmul.mubr.f32.gmra.mrb[110].mxu1 %v2439_v4 }
 0x2c8   : > { %7010 = vmatprep.mubr.msk.f32.mxu1 %vm2507_vm7, %v2446_v62 }
 0x2cb   : > { %3264 = vmatmul.mubr.f32.gmra.mrb[112].mxu1 %v2445_v44 }
 0x2cc   : > { %7011 = vmatprep.mubr.msk.f32.mxu1 %vm2507_vm7, %v2452_v36 }
 0x2cf   : > { %3269 = vmatmul.mubr.f32.gmra.mrb[114].mxu1 %v2451_v29  ;;  %v7082_v29 = vld [vmem:[%s12196_s4 + $0x48] sm:$0xff] }
 0x2d0   : > { %7012 = vmatprep.mubr.msk.f32.mxu1 %vm2507_vm7, %v2458_v7  ;;  %v11327_v13 = vpack.c.bf16 %v7082_v29, %v7081_v5 }
 0x2d3   : > { %3274 = vmatmul.mubr.f32.gmra.mrb[116].mxu1 %v2457_v57 }
 0x2d4   : > { %7013 = vmatprep.mubr.msk.f32.mxu1 %vm2507_vm7, %v2464_v11 }
 0x2d7   : > { %3279 = vmatmul.mubr.f32.gmra.mrb[118].mxu1 %v2463_v22 }
 0x2d8   : > { %7014 = vmatprep.mubr.msk.f32.mxu1 %vm2507_vm7, %v2470_v59 }
 0x2db   : > { %3284 = vmatmul.mubr.f32.gmra.mrb[120].mxu1 %v2469_v53 }
 0x2dc   : > { %7015 = vmatprep.mubr.msk.f32.mxu1 %vm2507_vm7, %v2476_v47 }
 0x2df   : > { %3289 = vmatmul.mubr.f32.gmra.mrb[122].mxu1 %v2475_v23 }
 0x2e0   : > { %7016 = vmatprep.mubr.msk.f32.mxu1 %vm2507_vm7, %v2482_v63 }
 0x2e3   : > { %3294 = vmatmul.mubr.f32.gmra.mrb[124].mxu1 %v2481_v60 }
 0x2e4   : > { %7017 = vmatprep.mubr.msk.f32.mxu1 %vm2507_vm7, %v2488_v25 }
 0x2e7   : > { %3299 = vmatmul.mubr.f32.gmra.mrb[126].mxu1 %v2487_v54 }
 0x2e8   : > { %7018 = vmatprep.mubr.msk.f32.mxu1 %vm2507_vm7, %v2494_v2 }
 0x2eb   : > { %3304 = vmatmul.mubr.f32.gmra.mrb[128].mxu1 %v2493_v10 }
 0x2ec   : > { %7019 = vmatprep.mubr.msk.f32.mxu1 %vm2507_vm7, %v2500_v18 }
 0x2ef   : > { %3309 = vmatmul.mubr.f32.gmra.mrb[130].mxu1 %v2499_v8 }
 0x2f0   : > { %7020 = vmatprep.mubr.msk.f32.mxu1 %vm2507_vm7, %v2506_v21 }
 0x2f3   : > { %3314 = vmatmul.mubr.f32.gmra.mrb[132].mxu1 %v2505_v3 }
 0x342   : > { %v3150_v61 = vpop.f32.mrb[66].mxu1 }
 0x343   : > { %3320 = vst.msk [vmem:[#allocation2] sm:$0xff] %vm3319_vm8, %v3150_v61  ;;  %v3152_v16 = vpop.f32.mrb[67].mxu1 }
 0x346   : > { %v3155_v34 = vpop.f32.mrb[68].mxu1 }
 0x347   : > { %3321 = vst.msk [vmem:[#allocation2 + $0x8] sm:$0xff] %vm3319_vm8, %v3155_v34  ;;  %v3157_v12 = vpop.f32.mrb[69].mxu1 }
 0x34a   : > { %v3160_v35 = vpop.f32.mrb[70].mxu1 }
 0x34b   : > { %3322 = vst.msk [vmem:[#allocation2 + $0x10] sm:$0xff] %vm3319_vm8, %v3160_v35  ;;  %v3162_v1 = vpop.f32.mrb[71].mxu1 }
 0x34e   : > { %v3165_v55 = vpop.f32.mrb[72].mxu1  ;;  %v3386_v49 = vld [vmem:[#allocation2 + $0x1] sm:$0xff] }
 0x34f   : > { %3323 = vst.msk [vmem:[#allocation2 + $0x18] sm:$0xff] %vm3319_vm8, %v3165_v55  ;;  %v3167_v31 = vpop.f32.mrb[73].mxu1  ;;  %7863 = vmatprep.mubr.msk.f32.mxu0 %vm3319_vm8, %v3386_v49 }
 0x352   : > { %v3170_v9 = vpop.f32.mrb[74].mxu1  ;;  %v3387_v48 = vld [vmem:[#allocation2 + $0x9] sm:$0xff] }
 0x353   : > { %3324 = vst.msk [vmem:[#allocation2 + $0x20] sm:$0xff] %vm3319_vm8, %v3170_v9  ;;  %v3172_v33 = vpop.f32.mrb[75].mxu1  ;;  %7864 = vmatmul.mubr.msk.f32.vlgmr.msra.gmra.mrb[32].mxu0 %vm3319_vm8, %v3387_v48 }
 0x354   : > { %8463 = vmatpush3.bf16.msra.mxu0 %v8460_v15 }
 0x355   : > { %8465 = vmatprep.subr.bf16.mxu0 %v8464_v20 }
 0x356   : > { %v3175_v56 = vpop.f32.mrb[76].mxu1  ;;  %v11286_v14 = vld [vmem:[#allocation2 + $0x11] sm:$0xff] }
 0x357   : > { %3325 = vst.msk [vmem:[#allocation2 + $0x28] sm:$0xff] %vm3319_vm8, %v3175_v56  ;;  %v3177_v17 = vpop.f32.mrb[77].mxu1  ;;  %7866 = vmatprep.mubr.msk.f32.mxu0 %vm3319_vm8, %v11286_v14 }
 0x358   : > { %8467 = vmatpush3.bf16.msra.mxu0 %v8464_v20 }
 0x359   : > { %8469 = vmatprep.subr.bf16.mxu0 %v11327_v13 }
 0x35a   : > { %v3180_v52 = vpop.f32.mrb[78].mxu1  ;;  %v11291_v6 = vld [vmem:[#allocation2 + $0x19] sm:$0xff] }
 0x35b   : > { %3326 = vst.msk [vmem:[#allocation2 + $0x30] sm:$0xff] %vm3319_vm8, %v3180_v52  ;;  %v3182_v0 = vpop.f32.mrb[79].mxu1  ;;  %7867 = vmatmul.mubr.msk.f32.gmra.mrb[34].mxu0 %vm3319_vm8, %v11291_v6 }
 0x35e   : > { %v3185_v27 = vpop.f32.mrb[80].mxu1  ;;  %v11296_v41 = vld [vmem:[#allocation2 + $0x21] sm:$0xff] }
 0x35f   : > { %3327 = vst.msk [vmem:[#allocation2 + $0x38] sm:$0xff] %vm3319_vm8, %v3185_v27  ;;  %v3187_v40 = vpop.f32.mrb[81].mxu1  ;;  %7869 = vmatprep.mubr.msk.f32.mxu0 %vm3319_vm8, %v11296_v41 }
 0x362   : > { %v3190_v37 = vpop.f32.mrb[82].mxu1  ;;  %v11301_v58 = vld [vmem:[#allocation2 + $0x29] sm:$0xff] }
 0x363   : > { %3328 = vst.msk [vmem:[#allocation2 + $0x40] sm:$0xff] %vm3319_vm8, %v3190_v37  ;;  %v3192_v19 = vpop.f32.mrb[83].mxu1  ;;  %7870 = vmatmul.mubr.msk.f32.gmra.mrb[36].mxu0 %vm3319_vm8, %v11301_v58 }
 0x366   : > { %v3195_v39 = vpop.f32.mrb[84].mxu1  ;;  %v11306_v43 = vld [vmem:[#allocation2 + $0x31] sm:$0xff] }
 0x367   : > { %3329 = vst.msk [vmem:[#allocation2 + $0x48] sm:$0xff] %vm3319_vm8, %v3195_v39  ;;  %v3197_v26 = vpop.f32.mrb[85].mxu1  ;;  %7872 = vmatprep.mubr.msk.f32.mxu0 %vm3319_vm8, %v11306_v43 }
 0x36a   : > { %v3200_v46 = vpop.f32.mrb[86].mxu1  ;;  %v11311_v4 = vld [vmem:[#allocation2 + $0x39] sm:$0xff] }
 0x36b   : > { %3330 = vst.msk [vmem:[#allocation2 + $0x50] sm:$0xff] %vm3319_vm8, %v3200_v46  ;;  %v3202_v62 = vpop.f32.mrb[87].mxu1  ;;  %7873 = vmatmul.mubr.msk.f32.gmra.mrb[38].mxu0 %vm3319_vm8, %v11311_v4 }
 0x36e   : > { %v3205_v44 = vpop.f32.mrb[88].mxu1  ;;  %v11316_v36 = vld [vmem:[#allocation2 + $0x41] sm:$0xff] }
 0x36f   : > { %3331 = vst.msk [vmem:[#allocation2 + $0x58] sm:$0xff] %vm3319_vm8, %v3205_v44  ;;  %v3207_v45 = vpop.f32.mrb[89].mxu1  ;;  %7875 = vmatprep.mubr.msk.f32.mxu0 %vm3319_vm8, %v11316_v36 }
 0x372   : > { %v3210_v7 = vpop.f32.mrb[90].mxu1  ;;  %v11329_v38 = vld [vmem:[#allocation2 + $0x49] sm:$0xff] }
 0x373   : > { %3332 = vst.msk [vmem:[#allocation2 + $0x60] sm:$0xff] %vm3319_vm8, %v3210_v7  ;;  %v3212_v28 = vpop.f32.mrb[91].mxu1  ;;  %7876 = vmatmul.mubr.msk.f32.gmra.mrb[40].mxu0 %vm3319_vm8, %v11329_v38 }
 0x374   : > { %v7083_v28 = vld [vmem:[%s12196_s4 + $0x50] sm:$0xff] }
 0x376   : > { %v3215_v57 = vpop.f32.mrb[92].mxu1  ;;  %v11335_v24 = vld [vmem:[#allocation2 + $0x51] sm:$0xff] }
 0x377   : > { %3333 = vst.msk [vmem:[#allocation2 + $0x68] sm:$0xff] %vm3319_vm8, %v3215_v57  ;;  %v3217_v11 = vpop.f32.mrb[93].mxu1  ;;  %7878 = vmatprep.mubr.msk.f32.mxu0 %vm3319_vm8, %v11335_v24  ;;  %v7084_v57 = vld [vmem:[%s12196_s4 + $0x58] sm:$0xff] }
 0x37a   : > { %v3220_v22 = vpop.f32.mrb[94].mxu1  ;;  %v11340_v59 = vld [vmem:[#allocation2 + $0x59] sm:$0xff] }
 0x37b   : > { %3334 = vst.msk [vmem:[#allocation2 + $0x70] sm:$0xff] %vm3319_vm8, %v3220_v22  ;;  %v3222_v53 = vpop.f32.mrb[95].mxu1  ;;  %7879 = vmatmul.mubr.msk.f32.gmra.mrb[42].mxu0 %vm3319_vm8, %v11340_v59  ;;  %v3354_v22 = vld [vmem:[#allocation2] sm:$0xff] }
 0x37c   : > { %v8472_v53 = vpack.c.bf16 %v7084_v57, %v7083_v28 }
 0x37e   : > { %v3225_v47 = vpop.f32.mrb[96].mxu1  ;;  %v11345_v23 = vld [vmem:[#allocation2 + $0x61] sm:$0xff] }
 0x37f   : > { %3335 = vst.msk [vmem:[#allocation2 + $0x78] sm:$0xff] %vm3319_vm8, %v3225_v47  ;;  %v3227_v63 = vpop.f32.mrb[97].mxu1  ;;  %7881 = vmatprep.mubr.msk.f32.mxu0 %vm3319_vm8, %v11345_v23  ;;  %v11604_v32 = vld [vmem:[#allocation2 + $0x62] sm:$0xff] }
 0x380   : > { %v3355_v63 = vld [vmem:[#allocation2 + $0x8] sm:$0xff]  ;;  %12333 = vst [vmem:[#allocation8_spill] sm:$0xff] %v11604_v32 }
 0x382   : > { %v3230_v60 = vpop.f32.mrb[98].mxu1  ;;  %v11350_v25 = vld [vmem:[#allocation2 + $0x69] sm:$0xff] }
 0x383   : > { %3336 = vst.msk [vmem:[#allocation2 + $0x80] sm:$0xff] %vm3319_vm8, %v3230_v60  ;;  %v3232_v54 = vpop.f32.mrb[99].mxu1  ;;  %7882 = vmatmul.mubr.msk.f32.gmra.mrb[44].mxu0 %vm3319_vm8, %v11350_v25  ;;  %v7113_v60 = vld [vmem:[%s12196_s4 + $0x60] sm:$0xff] }
 0x384   : > { %v7114_v54 = vld [vmem:[%s12196_s4 + $0x68] sm:$0xff] }
 0x386   : > { %v3235_v2 = vpop.f32.mrb[100].mxu1  ;;  %v11355_v10 = vld [vmem:[#allocation2 + $0x71] sm:$0xff] }
 0x387   : > { %3337 = vst.msk [vmem:[#allocation2 + $0x88] sm:$0xff] %vm3319_vm8, %v3235_v2  ;;  %v3237_v18 = vpop.f32.mrb[101].mxu1  ;;  %7884 = vmatprep.mubr.msk.f32.mxu0 %vm3319_vm8, %v11355_v10 }
 0x388   : > { %v11440_v18 = vld [vmem:[#allocation2 + $0x10] sm:$0xff] }
 0x38a   : > { %v3240_v8 = vpop.f32.mrb[102].mxu1  ;;  %v11360_v21 = vld [vmem:[#allocation2 + $0x79] sm:$0xff] }
 0x38b   : > { %3338 = vst.msk [vmem:[#allocation2 + $0x90] sm:$0xff] %vm3319_vm8, %v3240_v8  ;;  %v3242_v3 = vpop.f32.mrb[103].mxu1  ;;  %7885 = vmatmul.mubr.msk.f32.gmra.mrb[46].mxu0 %vm3319_vm8, %v11360_v21  ;;  %v11445_v8 = vpack.c.bf16 %v7114_v54, %v7113_v60  ;;  %v3998_v54 = vld [vmem:[#allocation2 + $0xa] sm:$0xff] }
 0x38e   : > { %v3245_v50 = vpop.f32.mrb[104].mxu1  ;;  %v11365_v42 = vld [vmem:[#allocation2 + $0x81] sm:$0xff] }
 0x38f   : > { %3339 = vst.msk [vmem:[#allocation2 + $0x98] sm:$0xff] %vm3319_vm8, %v3245_v50  ;;  %v3247_v15 = vpop.f32.mrb[105].mxu1  ;;  %7887 = vmatprep.mubr.msk.f32.mxu0 %vm3319_vm8, %v11365_v42  ;;  %v11447_v50 = vld [vmem:[#allocation2 + $0x18] sm:$0xff] }
 0x392   : > { %v3250_v61 = vpop.f32.mrb[106].mxu1  ;;  %v11370_v16 = vld [vmem:[#allocation2 + $0x89] sm:$0xff] }
 0x393   : > { %3340 = vst.msk [vmem:[#allocation2 + $0xa0] sm:$0xff] %vm3319_vm8, %v3250_v61  ;;  %v3252_v34 = vpop.f32.mrb[107].mxu1  ;;  %7888 = vmatmul.mubr.msk.f32.gmra.mrb[48].mxu0 %vm3319_vm8, %v11370_v16  ;;  %v11452_v61 = vld [vmem:[#allocation2 + $0x20] sm:$0xff] }
 0x394   : > { %v11457_v34 = vld [vmem:[#allocation2 + $0x28] sm:$0xff] }
 0x396   : > { %v3255_v12 = vpop.f32.mrb[108].mxu1  ;;  %v11375_v35 = vld [vmem:[#allocation2 + $0x91] sm:$0xff] }
 0x397   : > { %3341 = vst.msk [vmem:[#allocation2 + $0xa8] sm:$0xff] %vm3319_vm8, %v3255_v12  ;;  %v3257_v1 = vpop.f32.mrb[109].mxu1  ;;  %7890 = vmatprep.mubr.msk.f32.mxu0 %vm3319_vm8, %v11375_v35 }
 0x398   : > { %v11461_v1 = vld [vmem:[#allocation2 + $0x30] sm:$0xff] }
 0x39a   : > { %v3260_v55 = vpop.f32.mrb[110].mxu1  ;;  %v11380_v49 = vld [vmem:[#allocation2 + $0x99] sm:$0xff] }
 0x39b   : > { %3342 = vst.msk [vmem:[#allocation2 + $0xb0] sm:$0xff] %vm3319_vm8, %v3260_v55  ;;  %v3262_v51 = vpop.f32.mrb[111].mxu1  ;;  %7891 = vmatmul.mubr.msk.f32.gmra.mrb[50].mxu0 %vm3319_vm8, %v11380_v49  ;;  %v11465_v55 = vld [vmem:[#allocation2 + $0x38] sm:$0xff] }
 0x39c   : > { %v11469_v51 = vld [vmem:[#allocation2 + $0x40] sm:$0xff] }
 0x39e   : > { %v3265_v30 = vpop.f32.mrb[112].mxu1  ;;  %v11385_v31 = vld [vmem:[#allocation2 + $0xa1] sm:$0xff] }
 0x39f   : > { %3343 = vst.msk [vmem:[#allocation2 + $0xb8] sm:$0xff] %vm3319_vm8, %v3265_v30  ;;  %v3267_v20 = vpop.f32.mrb[113].mxu1  ;;  %7893 = vmatprep.mubr.msk.f32.mxu0 %vm3319_vm8, %v11385_v31  ;;  %v11473_v30 = vld [vmem:[#allocation2 + $0x48] sm:$0xff] }
 0x3a0   : > { %v11477_v20 = vld [vmem:[#allocation2 + $0x50] sm:$0xff] }
 0x3a2   : > { %v3270_v9 = vpop.f32.mrb[114].mxu1  ;;  %v11390_v48 = vld [vmem:[#allocation2 + $0xa9] sm:$0xff] }
 0x3a3   : > { %3344 = vst.msk [vmem:[#allocation2 + $0xc0] sm:$0xff] %vm3319_vm8, %v3270_v9  ;;  %v3272_v33 = vpop.f32.mrb[115].mxu1  ;;  %7894 = vmatmul.mubr.msk.f32.gmra.mrb[52].mxu0 %vm3319_vm8, %v11390_v48  ;;  %v11481_v9 = vld [vmem:[#allocation2 + $0x58] sm:$0xff] }
 0x3a4   : > { %v11485_v33 = vld [vmem:[#allocation2 + $0x60] sm:$0xff] }
 0x3a6   : > { %v3275_v56 = vpop.f32.mrb[116].mxu1  ;;  %v11395_v17 = vld [vmem:[#allocation2 + $0xb1] sm:$0xff] }
 0x3a7   : > { %3345 = vst.msk [vmem:[#allocation2 + $0xc8] sm:$0xff] %vm3319_vm8, %v3275_v56  ;;  %v3277_v52 = vpop.f32.mrb[117].mxu1  ;;  %7896 = vmatprep.mubr.msk.f32.mxu0 %vm3319_vm8, %v11395_v17  ;;  %v11489_v56 = vld [vmem:[#allocation2 + $0x68] sm:$0xff] }
 0x3a8   : > { %v11493_v52 = vld [vmem:[#allocation2 + $0x70] sm:$0xff] }
 0x3aa   : > { %v3280_v0 = vpop.f32.mrb[118].mxu1  ;;  %v11400_v27 = vld [vmem:[#allocation2 + $0xb9] sm:$0xff] }
 0x3ab   : > { %3346 = vst.msk [vmem:[#allocation2 + $0xd0] sm:$0xff] %vm3319_vm8, %v3280_v0  ;;  %v3282_v40 = vpop.f32.mrb[119].mxu1  ;;  %7897 = vmatmul.mubr.msk.f32.gmra.mrb[54].mxu0 %vm3319_vm8, %v11400_v27  ;;  %v11497_v0 = vld [vmem:[#allocation2 + $0x78] sm:$0xff]  ;;  %v11533_v28 = vld [vmem:[#allocation2 + $0xc0] sm:$0xff] }
 0x3ac   : > { %v11501_v40 = vld [vmem:[#allocation2 + $0x80] sm:$0xff] }
 0x3ae   : > { %v3285_v37 = vpop.f32.mrb[120].mxu1  ;;  %v11405_v19 = vld [vmem:[#allocation2 + $0xc1] sm:$0xff] }
 0x3af   : > { %3347 = vst.msk [vmem:[#allocation2 + $0xd8] sm:$0xff] %vm3319_vm8, %v3285_v37  ;;  %v3287_v39 = vpop.f32.mrb[121].mxu1  ;;  %7899 = vmatprep.mubr.msk.f32.mxu0 %vm3319_vm8, %v11405_v19  ;;  %v11505_v37 = vld [vmem:[#allocation2 + $0x88] sm:$0xff] }
 0x3b0   : > { %v11509_v39 = vld [vmem:[#allocation2 + $0x90] sm:$0xff]  ;;  %v11537_v57 = vld [vmem:[#allocation2 + $0xc8] sm:$0xff] }
 0x3b2   : > { %v3290_v26 = vpop.f32.mrb[122].mxu1  ;;  %v11410_v46 = vld [vmem:[#allocation2 + $0xc9] sm:$0xff] }
 0x3b3   : > { %3348 = vst.msk [vmem:[#allocation2 + $0xe0] sm:$0xff] %vm3319_vm8, %v3290_v26  ;;  %v3292_v62 = vpop.f32.mrb[123].mxu1  ;;  %7900 = vmatmul.mubr.msk.f32.gmra.mrb[56].mxu0 %vm3319_vm8, %v11410_v46  ;;  %v11513_v26 = vld [vmem:[#allocation2 + $0x98] sm:$0xff] }
 0x3b4   : > { %v11517_v62 = vld [vmem:[#allocation2 + $0xa0] sm:$0xff] }
 0x3b6   : > { %v3295_v44 = vpop.f32.mrb[124].mxu1  ;;  %v11415_v45 = vld [vmem:[#allocation2 + $0xd1] sm:$0xff] }
 0x3b7   : > { %3349 = vst.msk [vmem:[#allocation2 + $0xe8] sm:$0xff] %vm3319_vm8, %v3295_v44  ;;  %v3297_v5 = vpop.f32.mrb[125].mxu1  ;;  %7902 = vmatprep.mubr.msk.f32.mxu0 %vm3319_vm8, %v11415_v45  ;;  %v11521_v44 = vld [vmem:[#allocation2 + $0xa8] sm:$0xff] }
 0x3b8   : > { %v11525_v5 = vld [vmem:[#allocation2 + $0xb0] sm:$0xff] }
 0x3ba   : > { %v3300_v29 = vpop.f32.mrb[126].mxu1  ;;  %v11420_v7 = vld [vmem:[#allocation2 + $0xd9] sm:$0xff] }
 0x3bb   : > { %3350 = vst.msk [vmem:[#allocation2 + $0xf0] sm:$0xff] %vm3319_vm8, %v3300_v29  ;;  %v3302_v11 = vpop.f32.mrb[127].mxu1  ;;  %7903 = vmatmul.mubr.msk.f32.gmra.mrb[58].mxu0 %vm3319_vm8, %v11420_v7  ;;  %v11529_v29 = vld [vmem:[#allocation2 + $0xb8] sm:$0xff] }
 0x3bc   : > { %7913 = vmatprep.mubr.msk.f32.mxu0 %vm3319_vm8, %v3354_v22  ;;  %v11541_v11 = vld [vmem:[#allocation2 + $0xd0] sm:$0xff]  ;;  %v11545_v22 = vld [vmem:[#allocation2 + $0xd8] sm:$0xff] }
 0x3be   : > { %v3305_v47 = vpop.f32.mrb[128].mxu1 }
 0x3bf   : > { %3351 = vst.msk [vmem:[#allocation2 + $0xf8] sm:$0xff] %vm3319_vm8, %v3305_v47  ;;  %v3307_v2 = vpop.f32.mrb[129].mxu1  ;;  %7914 = vmatmul.mubr.msk.f32.vlgmr.msra.gmra.mrb[32].mxu0 %vm3319_vm8, %v3355_v63  ;;  %v7116_v47 = vld [vmem:[%s12196_s4 + $0x78] sm:$0xff]  ;;  %v3997_v63 = vld [vmem:[#allocation2 + $0x2] sm:$0xff] }
 0x3c0   : > { %7916 = vmatprep.mubr.msk.f32.mxu0 %vm3319_vm8, %v11440_v18  ;;  %8471 = vmatpush3.bf16.msra.mxu0 %v11327_v13  ;;  %v7145_v2 = vld [vmem:[%s12196_s4 + $0x80] sm:$0xff] }
 0x3c1   : > { %8473 = vmatprep.subr.bf16.mxu0 %v8472_v53 }
 0x3c2   : > { %v3310_v3 = vpop.f32.mrb[130].mxu1 }
 0x3c3   : > { %3352 = vst.msk [vmem:[#allocation2 + $0x100] sm:$0xff] %vm3319_vm8, %v3310_v3  ;;  %v3312_v15 = vpop.f32.mrb[131].mxu1  ;;  %7917 = vmatmul.mubr.msk.f32.gmra.mrb[34].mxu0 %vm3319_vm8, %v11447_v50  ;;  %v7146_v3 = vld [vmem:[%s12196_s4 + $0x88] sm:$0xff] }
 0x3c4   : > { %7919 = vmatprep.mubr.msk.f32.mxu0 %vm3319_vm8, %v11452_v61  ;;  %8475 = vmatpush3.bf16.msra.mxu0 %v8472_v53  ;;  %v7115_v53 = vld [vmem:[%s12196_s4 + $0x70] sm:$0xff] }
 0x3c5   : > { %8477 = vmatprep.subr.bf16.mxu0 %v11445_v8  ;;  %v8480_v60 = vpack.c.bf16 %v7116_v47, %v7115_v53  ;;  %v11563_v15 = vld [vmem:[#allocation2 + $0x12] sm:$0xff]  ;;  %v11572_v53 = vld [vmem:[#allocation2 + $0x22] sm:$0xff]  ;;  %v11576_v47 = vld [vmem:[#allocation2 + $0x2a] sm:$0xff] }
 0x3c6   : > { %v3315_v13 = vpop.f32.mrb[132].mxu1 }
 0x3c7   : > { %v3317_v12 = vpop.f32.mrb[133].mxu1  ;;  %7920 = vmatmul.mubr.msk.f32.gmra.mrb[36].mxu0 %vm3319_vm8, %v11457_v34  ;;  %v8484_v13 = vpack.c.bf16 %v7146_v3, %v7145_v2  ;;  %v11596_v2 = vld [vmem:[#allocation2 + $0x52] sm:$0xff]  ;;  %v11600_v3 = vld [vmem:[#allocation2 + $0x5a] sm:$0xff] }
 0x3c8   : > { %7922 = vmatprep.mubr.msk.f32.mxu0 %vm3319_vm8, %v11461_v1  ;;  %v11568_v12 = vld [vmem:[#allocation2 + $0x1a] sm:$0xff]  ;;  %12331 = vst [vmem:[#allocation6_spill] sm:$0xff] %v11596_v2  ;;  %12332 = vst [vmem:[#allocation7_spill] sm:$0xff] %v11600_v3 }
 0x3cb   : > { %7923 = vmatmul.mubr.msk.f32.gmra.mrb[38].mxu0 %vm3319_vm8, %v11465_v55 }
 0x3cc   : > { %7925 = vmatprep.mubr.msk.f32.mxu0 %vm3319_vm8, %v11469_v51 }
 0x3cf   : > { %7926 = vmatmul.mubr.msk.f32.gmra.mrb[40].mxu0 %vm3319_vm8, %v11473_v30 }
 0x3d0   : > { %7928 = vmatprep.mubr.msk.f32.mxu0 %vm3319_vm8, %v11477_v20 }
 0x3d3   : > { %7929 = vmatmul.mubr.msk.f32.gmra.mrb[42].mxu0 %vm3319_vm8, %v11481_v9 }
 0x3d4   : > { %7931 = vmatprep.mubr.msk.f32.mxu0 %vm3319_vm8, %v11485_v33 }
 0x3d7   : > { %7932 = vmatmul.mubr.msk.f32.gmra.mrb[44].mxu0 %vm3319_vm8, %v11489_v56 }
 0x3d8   : > { %7934 = vmatprep.mubr.msk.f32.mxu0 %vm3319_vm8, %v11493_v52 }
 0x3db   : > { %7935 = vmatmul.mubr.msk.f32.gmra.mrb[46].mxu0 %vm3319_vm8, %v11497_v0 }
 0x3dc   : > { %7937 = vmatprep.mubr.msk.f32.mxu0 %vm3319_vm8, %v11501_v40 }
 0x3df   : > { %7938 = vmatmul.mubr.msk.f32.gmra.mrb[48].mxu0 %vm3319_vm8, %v11505_v37 }
 0x3e0   : > { %7940 = vmatprep.mubr.msk.f32.mxu0 %vm3319_vm8, %v11509_v39 }
 0x3e3   : > { %7941 = vmatmul.mubr.msk.f32.gmra.mrb[50].mxu0 %vm3319_vm8, %v11513_v26 }
 0x3e4   : > { %7943 = vmatprep.mubr.msk.f32.mxu0 %vm3319_vm8, %v11517_v62 }
 0x3e7   : > { %7944 = vmatmul.mubr.msk.f32.gmra.mrb[52].mxu0 %vm3319_vm8, %v11521_v44 }
 0x3e8   : > { %7946 = vmatprep.mubr.msk.f32.mxu0 %vm3319_vm8, %v11525_v5 }
 0x3eb   : > { %7947 = vmatmul.mubr.msk.f32.gmra.mrb[54].mxu0 %vm3319_vm8, %v11529_v29 }
 0x3ec   : > { %7949 = vmatprep.mubr.msk.f32.mxu0 %vm3319_vm8, %v11533_v28 }
 0x3ef   : > { %7950 = vmatmul.mubr.msk.f32.gmra.mrb[56].mxu0 %vm3319_vm8, %v11537_v57 }
 0x3f0   : > { %7952 = vmatprep.mubr.msk.f32.mxu0 %vm3319_vm8, %v11541_v11 }
 0x3f3   : > { %7953 = vmatmul.mubr.msk.f32.gmra.mrb[58].mxu0 %vm3319_vm8, %v11545_v22 }
 0x3f4   : > { %7963 = vmatprep.mubr.msk.f32.mxu0 %vm3319_vm8, %v3997_v63  ;;  %v11584_v63 = vld [vmem:[#allocation2 + $0x3a] sm:$0xff] }
 0x3f5   : > { %12328 = vst [vmem:[#allocation3_spill] sm:$0xff] %v11584_v63 }
 0x3f7   : > { %7964 = vmatmul.mubr.msk.f32.vlgmr.msra.gmra.mrb[32].mxu0 %vm3319_vm8, %v3998_v54  ;;  %v11588_v54 = vld [vmem:[#allocation2 + $0x42] sm:$0xff] }
 0x3f8   : > { %7966 = vmatprep.mubr.msk.f32.mxu0 %vm3319_vm8, %v11563_v15  ;;  %8479 = vmatpush3.bf16.msra.mxu0 %v11445_v8  ;;  %v11580_v8 = vld [vmem:[#allocation2 + $0x32] sm:$0xff]  ;;  %12329 = vst [vmem:[#allocation4_spill] sm:$0xff] %v11588_v54 }
 0x3f9   : > { %8481 = vmatprep.subr.bf16.mxu0 %v8480_v60 }
 0x3fb   : > { %7967 = vmatmul.mubr.msk.f32.gmra.mrb[34].mxu0 %vm3319_vm8, %v11568_v12 }
 0x3fc   : > { %7969 = vmatprep.mubr.msk.f32.mxu0 %vm3319_vm8, %v11572_v53  ;;  %8483 = vmatpush3.bf16.msra.mxu0 %v8480_v60  ;;  %v11592_v60 = vld [vmem:[#allocation2 + $0x4a] sm:$0xff] }
 0x3fd   : > { %8485 = vmatprep.subr.bf16.mxu0 %v8484_v13  ;;  %12330 = vst [vmem:[#allocation5_spill] sm:$0xff] %v11592_v60 }
 0x3ff   : > { %7970 = vmatmul.mubr.msk.f32.gmra.mrb[36].mxu0 %vm3319_vm8, %v11576_v47 }
 0x400   : > { %7972 = vmatprep.mubr.msk.f32.mxu0 %vm3319_vm8, %v11580_v8 }
 0x403   : > { %7973 = vmatmul.mubr.msk.f32.gmra.mrb[38].mxu0 %vm3319_vm8, %v11584_v63  ;;  %v7178_v63 = vld [vmem:[%s12196_s4 + $0xa8] sm:$0xff] }
 0x404   : > { %7975 = vmatprep.mubr.msk.f32.mxu0 %vm3319_vm8, %v11588_v54  ;;  %v11608_v54 = vld [vmem:[#allocation2 + $0x6a] sm:$0xff] }
 0x405   : > { %12334 = vst [vmem:[#allocation9_spill] sm:$0xff] %v11608_v54 }
 0x407   : > { %7976 = vmatmul.mubr.msk.f32.gmra.mrb[40].mxu0 %vm3319_vm8, %v11592_v60  ;;  %v11612_v60 = vld [vmem:[#allocation2 + $0x72] sm:$0xff] }
 0x408   : > { %7978 = vmatprep.mubr.msk.f32.mxu0 %vm3319_vm8, %v11596_v2  ;;  %12335 = vst [vmem:[#allocation10_spill] sm:$0xff] %v11612_v60  ;;  %v11616_v2 = vld [vmem:[#allocation2 + $0x7a] sm:$0xff] }
 0x409   : > { %12336 = vst [vmem:[#allocation11_spill] sm:$0xff] %v11616_v2 }
 0x40b   : > { %7979 = vmatmul.mubr.msk.f32.gmra.mrb[42].mxu0 %vm3319_vm8, %v11600_v3  ;;  %v11620_v3 = vld [vmem:[#allocation2 + $0x82] sm:$0xff] }
 0x40c   : > { %7981 = vmatprep.mubr.msk.f32.mxu0 %vm3319_vm8, %v11604_v32  ;;  %12337 = vst [vmem:[#allocation12_spill] sm:$0xff] %v11620_v3  ;;  %v11624_v32 = vld [vmem:[#allocation2 + $0x8a] sm:$0xff] }
 0x40d   : > { %12338 = vst [vmem:[#allocation13_spill] sm:$0xff] %v11624_v32 }
 0x40f   : > { %7982 = vmatmul.mubr.msk.f32.gmra.mrb[44].mxu0 %vm3319_vm8, %v11608_v54  ;;  %v11628_v54 = vld [vmem:[#allocation2 + $0x92] sm:$0xff] }
 0x410   : > { %7984 = vmatprep.mubr.msk.f32.mxu0 %vm3319_vm8, %v11612_v60  ;;  %12339 = vst [vmem:[#allocation14_spill] sm:$0xff] %v11628_v54  ;;  %v11632_v60 = vld [vmem:[#allocation2 + $0x9a] sm:$0xff] }
 0x411   : > { %12340 = vst [vmem:[#allocation15_spill] sm:$0xff] %v11632_v60 }
 0x413   : > { %7985 = vmatmul.mubr.msk.f32.gmra.mrb[46].mxu0 %vm3319_vm8, %v11616_v2  ;;  %v11636_v2 = vld [vmem:[#allocation2 + $0xa2] sm:$0xff] }
 0x414   : > { %7987 = vmatprep.mubr.msk.f32.mxu0 %vm3319_vm8, %v11620_v3  ;;  %12341 = vst [vmem:[#allocation16_spill] sm:$0xff] %v11636_v2  ;;  %v11640_v3 = vld [vmem:[#allocation2 + $0xaa] sm:$0xff] }
 0x415   : > { %12342 = vst [vmem:[#allocation17_spill] sm:$0xff] %v11640_v3 }
 0x417   : > { %7988 = vmatmul.mubr.msk.f32.gmra.mrb[48].mxu0 %vm3319_vm8, %v11624_v32  ;;  %v11644_v32 = vld [vmem:[#allocation2 + $0xb2] sm:$0xff] }
 0x418   : > { %7990 = vmatprep.mubr.msk.f32.mxu0 %vm3319_vm8, %v11628_v54  ;;  %12343 = vst [vmem:[#allocation18_spill] sm:$0xff] %v11644_v32  ;;  %v11648_v54 = vld [vmem:[#allocation2 + $0xba] sm:$0xff] }
 0x419   : > { %12344 = vst [vmem:[#allocation19_spill] sm:$0xff] %v11648_v54 }
 0x41b   : > { %7991 = vmatmul.mubr.msk.f32.gmra.mrb[50].mxu0 %vm3319_vm8, %v11632_v60  ;;  %v11652_v60 = vld [vmem:[#allocation2 + $0xc2] sm:$0xff] }
 0x41c   : > { %7993 = vmatprep.mubr.msk.f32.mxu0 %vm3319_vm8, %v11636_v2  ;;  %12345 = vst [vmem:[#allocation20_spill] sm:$0xff] %v11652_v60  ;;  %v11656_v2 = vld [vmem:[#allocation2 + $0xca] sm:$0xff] }
 0x41d   : > { %12346 = vst [vmem:[#allocation21_spill] sm:$0xff] %v11656_v2 }
 0x41f   : > { %7994 = vmatmul.mubr.msk.f32.gmra.mrb[52].mxu0 %vm3319_vm8, %v11640_v3  ;;  %v11660_v3 = vld [vmem:[#allocation2 + $0xd2] sm:$0xff] }
 0x420   : > { %7996 = vmatprep.mubr.msk.f32.mxu0 %vm3319_vm8, %v11644_v32  ;;  %12347 = vst [vmem:[#allocation22_spill] sm:$0xff] %v11660_v3  ;;  %v11664_v32 = vld [vmem:[#allocation2 + $0xda] sm:$0xff] }
 0x421   : > { %12348 = vst [vmem:[#allocation23_spill] sm:$0xff] %v11664_v32 }
 0x423   : > { %7997 = vmatmul.mubr.msk.f32.gmra.mrb[54].mxu0 %vm3319_vm8, %v11648_v54  ;;  %v7147_v54 = vld [vmem:[%s12196_s4 + $0x90] sm:$0xff] }
 0x424   : > { %7999 = vmatprep.mubr.msk.f32.mxu0 %vm3319_vm8, %v11652_v60  ;;  %v7148_v60 = vld [vmem:[%s12196_s4 + $0x98] sm:$0xff] }
 0x427   : > { %8000 = vmatmul.mubr.msk.f32.gmra.mrb[56].mxu0 %vm3319_vm8, %v11656_v2  ;;  %v8488_v2 = vpack.c.bf16 %v7148_v60, %v7147_v54  ;;  %v7209_v60 = vld [vmem:[%s12196_s4 + $0xc0] sm:$0xff] }
 0x428   : > { %8002 = vmatprep.mubr.msk.f32.mxu0 %vm3319_vm8, %v11660_v3  ;;  %v7177_v3 = vld [vmem:[%s12196_s4 + $0xa0] sm:$0xff] }
 0x42b   : > { %8003 = vmatmul.mubr.msk.f32.gmra.mrb[58].mxu0 %vm3319_vm8, %v11664_v32  ;;  %v8492_v32 = vpack.c.bf16 %v7178_v63, %v7177_v3  ;;  %v7180_v63 = vld [vmem:[%s12196_s4 + $0xb8] sm:$0xff] }
 0x42c   : > { %8013 = vmatprep.mubr.msk.f32.mxu0 %vm3319_vm8, %v11440_v18  ;;  %v11732_v18 = vld [vmem:[#allocation2 + $0xe0] sm:$0xff] }
 0x42f   : > { %8014 = vmatmul.mubr.msk.f32.vlgmr.msra.gmra.mrb[32].mxu0 %vm3319_vm8, %v11447_v50  ;;  %v11736_v50 = vld [vmem:[#allocation2 + $0xe8] sm:$0xff] }
 0x430   : > { %8016 = vmatprep.mubr.msk.f32.mxu0 %vm3319_vm8, %v11452_v61  ;;  %8487 = vmatpush3.bf16.msra.mxu0 %v8484_v13  ;;  %v7179_v13 = vld [vmem:[%s12196_s4 + $0xb0] sm:$0xff] }
 0x431   : > { %8489 = vmatprep.subr.bf16.mxu0 %v8488_v2  ;;  %v8496_v54 = vpack.c.bf16 %v7180_v63, %v7179_v13  ;;  %v12353_v13 = vld [vmem:[#allocation7_spill] sm:$0xff]  ;;  %v12354_v63 = vld [vmem:[#allocation8_spill] sm:$0xff] }
 0x433   : > { %8017 = vmatmul.mubr.msk.f32.gmra.mrb[34].mxu0 %vm3319_vm8, %v11457_v34 }
 0x434   : > { %8019 = vmatprep.mubr.msk.f32.mxu0 %vm3319_vm8, %v11461_v1  ;;  %8491 = vmatpush3.bf16.msra.mxu0 %v8488_v2  ;;  %v7210_v2 = vld [vmem:[%s12196_s4 + $0xc8] sm:$0xff] }
 0x435   : > { %8493 = vmatprep.subr.bf16.mxu0 %v8492_v32  ;;  %v8500_v3 = vpack.c.bf16 %v7210_v2, %v7209_v60  ;;  %v12356_v60 = vld [vmem:[#allocation10_spill] sm:$0xff]  ;;  %v12357_v2 = vld [vmem:[#allocation11_spill] sm:$0xff] }
 0x437   : > { %8020 = vmatmul.mubr.msk.f32.gmra.mrb[36].mxu0 %vm3319_vm8, %v11465_v55 }
 0x438   : > { %8022 = vmatprep.mubr.msk.f32.mxu0 %vm3319_vm8, %v11469_v51 }
 0x43b   : > { %8023 = vmatmul.mubr.msk.f32.gmra.mrb[38].mxu0 %vm3319_vm8, %v11473_v30 }
 0x43c   : > { %8025 = vmatprep.mubr.msk.f32.mxu0 %vm3319_vm8, %v11477_v20 }
 0x43f   : > { %8026 = vmatmul.mubr.msk.f32.gmra.mrb[40].mxu0 %vm3319_vm8, %v11481_v9 }
 0x440   : > { %8028 = vmatprep.mubr.msk.f32.mxu0 %vm3319_vm8, %v11485_v33 }
 0x443   : > { %8029 = vmatmul.mubr.msk.f32.gmra.mrb[42].mxu0 %vm3319_vm8, %v11489_v56 }
 0x444   : > { %8031 = vmatprep.mubr.msk.f32.mxu0 %vm3319_vm8, %v11493_v52 }
 0x447   : > { %8032 = vmatmul.mubr.msk.f32.gmra.mrb[44].mxu0 %vm3319_vm8, %v11497_v0 }
 0x448   : > { %8034 = vmatprep.mubr.msk.f32.mxu0 %vm3319_vm8, %v11501_v40 }
 0x44b   : > { %8035 = vmatmul.mubr.msk.f32.gmra.mrb[46].mxu0 %vm3319_vm8, %v11505_v37 }
 0x44c   : > { %8037 = vmatprep.mubr.msk.f32.mxu0 %vm3319_vm8, %v11509_v39 }
 0x44f   : > { %8038 = vmatmul.mubr.msk.f32.gmra.mrb[48].mxu0 %vm3319_vm8, %v11513_v26 }
 0x450   : > { %8040 = vmatprep.mubr.msk.f32.mxu0 %vm3319_vm8, %v11517_v62 }
 0x453   : > { %8041 = vmatmul.mubr.msk.f32.gmra.mrb[50].mxu0 %vm3319_vm8, %v11521_v44 }
 0x454   : > { %8043 = vmatprep.mubr.msk.f32.mxu0 %vm3319_vm8, %v11525_v5 }
 0x457   : > { %8044 = vmatmul.mubr.msk.f32.gmra.mrb[52].mxu0 %vm3319_vm8, %v11529_v29 }
 0x458   : > { %8046 = vmatprep.mubr.msk.f32.mxu0 %vm3319_vm8, %v11533_v28 }
 0x45b   : > { %8047 = vmatmul.mubr.msk.f32.gmra.mrb[54].mxu0 %vm3319_vm8, %v11537_v57 }
 0x45c   : > { %8049 = vmatprep.mubr.msk.f32.mxu0 %vm3319_vm8, %v11541_v11 }
 0x45f   : > { %8050 = vmatmul.mubr.msk.f32.gmra.mrb[56].mxu0 %vm3319_vm8, %v11545_v22 }
 0x460   : > { %8052 = vmatprep.mubr.msk.f32.mxu0 %vm3319_vm8, %v11732_v18 }
 0x463   : > { %8053 = vmatmul.mubr.msk.f32.gmra.mrb[58].mxu0 %vm3319_vm8, %v11736_v50 }
 0x464   : > { %8063 = vmatprep.mubr.msk.f32.mxu0 %vm3319_vm8, %v11286_v14  ;;  %v11808_v14 = vld [vmem:[#allocation2 + $0xe9] sm:$0xff] }
 0x467   : > { %8064 = vmatmul.mubr.msk.f32.vlgmr.msra.gmra.mrb[32].mxu0 %vm3319_vm8, %v11291_v6  ;;  %v7211_v6 = vld [vmem:[%s12196_s4 + $0xd0] sm:$0xff] }
 0x468   : > { %8066 = vmatprep.mubr.msk.f32.mxu0 %vm3319_vm8, %v11296_v41  ;;  %8495 = vmatpush3.bf16.msra.mxu0 %v8492_v32  ;;  %v11804_v32 = vld [vmem:[#allocation2 + $0xe1] sm:$0xff]  ;;  %v7212_v41 = vld [vmem:[%s12196_s4 + $0xd8] sm:$0xff] }
 0x469   : > { %8497 = vmatprep.subr.bf16.mxu0 %v8496_v54 }
 0x46b   : > { %8067 = vmatmul.mubr.msk.f32.gmra.mrb[34].mxu0 %vm3319_vm8, %v11301_v58  ;;  %v8504_v58 = vpack.c.bf16 %v7212_v41, %v7211_v6  ;;  %v12359_v6 = vld [vmem:[#allocation13_spill] sm:$0xff]  ;;  %v12360_v41 = vld [vmem:[#allocation14_spill] sm:$0xff] }
 0x46c   : > { %8069 = vmatprep.mubr.msk.f32.mxu0 %vm3319_vm8, %v11306_v43  ;;  %8499 = vmatpush3.bf16.msra.mxu0 %v8496_v54  ;;  %v7241_v43 = vld [vmem:[%s12196_s4 + $0xe0] sm:$0xff] }
 0x46d   : > { %8501 = vmatprep.subr.bf16.mxu0 %v8500_v3  ;;  %v12355_v54 = vld [vmem:[#allocation9_spill] sm:$0xff] }
 0x46f   : > { %8070 = vmatmul.mubr.msk.f32.gmra.mrb[36].mxu0 %vm3319_vm8, %v11311_v4  ;;  %v7242_v4 = vld [vmem:[%s12196_s4 + $0xe8] sm:$0xff] }
 0x470   : > { %8072 = vmatprep.mubr.msk.f32.mxu0 %vm3319_vm8, %v11316_v36  ;;  %v8508_v36 = vpack.c.bf16 %v7242_v4, %v7241_v43  ;;  %v12362_v43 = vld [vmem:[#allocation16_spill] sm:$0xff]  ;;  %v12363_v4 = vld [vmem:[#allocation17_spill] sm:$0xff] }
 0x473   : > { %8073 = vmatmul.mubr.msk.f32.gmra.mrb[38].mxu0 %vm3319_vm8, %v11329_v38  ;;  %v12349_v38 = vld [vmem:[#allocation3_spill] sm:$0xff] }
 0x474   : > { %8075 = vmatprep.mubr.msk.f32.mxu0 %vm3319_vm8, %v11335_v24  ;;  %v12350_v24 = vld [vmem:[#allocation4_spill] sm:$0xff] }
 0x477   : > { %8076 = vmatmul.mubr.msk.f32.gmra.mrb[40].mxu0 %vm3319_vm8, %v11340_v59 }
 0x478   : > { %8078 = vmatprep.mubr.msk.f32.mxu0 %vm3319_vm8, %v11345_v23 }
 0x47b   : > { %8079 = vmatmul.mubr.msk.f32.gmra.mrb[42].mxu0 %vm3319_vm8, %v11350_v25 }
 0x47c   : > { %8081 = vmatprep.mubr.msk.f32.mxu0 %vm3319_vm8, %v11355_v10 }
 0x47f   : > { %8082 = vmatmul.mubr.msk.f32.gmra.mrb[44].mxu0 %vm3319_vm8, %v11360_v21 }
 0x480   : > { %8084 = vmatprep.mubr.msk.f32.mxu0 %vm3319_vm8, %v11365_v42 }
 0x483   : > { %8085 = vmatmul.mubr.msk.f32.gmra.mrb[46].mxu0 %vm3319_vm8, %v11370_v16 }
 0x484   : > { %8087 = vmatprep.mubr.msk.f32.mxu0 %vm3319_vm8, %v11375_v35 }
 0x487   : > { %8088 = vmatmul.mubr.msk.f32.gmra.mrb[48].mxu0 %vm3319_vm8, %v11380_v49 }
 0x488   : > { %8090 = vmatprep.mubr.msk.f32.mxu0 %vm3319_vm8, %v11385_v31 }
 0x48b   : > { %8091 = vmatmul.mubr.msk.f32.gmra.mrb[50].mxu0 %vm3319_vm8, %v11390_v48 }
 0x48c   : > { %8093 = vmatprep.mubr.msk.f32.mxu0 %vm3319_vm8, %v11395_v17 }
 0x48f   : > { %8094 = vmatmul.mubr.msk.f32.gmra.mrb[52].mxu0 %vm3319_vm8, %v11400_v27 }
 0x490   : > { %8096 = vmatprep.mubr.msk.f32.mxu0 %vm3319_vm8, %v11405_v19 }
 0x493   : > { %8097 = vmatmul.mubr.msk.f32.gmra.mrb[54].mxu0 %vm3319_vm8, %v11410_v46 }
 0x494   : > { %8099 = vmatprep.mubr.msk.f32.mxu0 %vm3319_vm8, %v11415_v45 }
 0x497   : > { %8100 = vmatmul.mubr.msk.f32.gmra.mrb[56].mxu0 %vm3319_vm8, %v11420_v7 }
 0x498   : > { %8102 = vmatprep.mubr.msk.f32.mxu0 %vm3319_vm8, %v11804_v32 }
 0x49b   : > { %8103 = vmatmul.mubr.msk.f32.gmra.mrb[58].mxu0 %vm3319_vm8, %v11808_v14 }
 0x49c   : > { %8113 = vmatprep.mubr.msk.f32.mxu0 %vm3319_vm8, %v11563_v15  ;;  %v12351_v15 = vld [vmem:[#allocation5_spill] sm:$0xff] }
 0x49f   : > { %8114 = vmatmul.mubr.msk.f32.vlgmr.msra.gmra.mrb[32].mxu0 %vm3319_vm8, %v11568_v12  ;;  %v12352_v12 = vld [vmem:[#allocation6_spill] sm:$0xff] }
 0x4a0   : > { %8116 = vmatprep.mubr.msk.f32.mxu0 %vm3319_vm8, %v11572_v53  ;;  %8503 = vmatpush3.bf16.msra.mxu0 %v8500_v3  ;;  %v12358_v3 = vld [vmem:[#allocation12_spill] sm:$0xff] }
 0x4a1   : > { %8505 = vmatprep.subr.bf16.mxu0 %v8504_v58 }
 0x4a3   : > { %8117 = vmatmul.mubr.msk.f32.gmra.mrb[34].mxu0 %vm3319_vm8, %v11576_v47 }
 0x4a4   : > { %8119 = vmatprep.mubr.msk.f32.mxu0 %vm3319_vm8, %v11580_v8  ;;  %8507 = vmatpush3.bf16.msra.mxu0 %v8504_v58  ;;  %v12361_v58 = vld [vmem:[#allocation15_spill] sm:$0xff] }
 0x4a5   : > { %8509 = vmatprep.subr.bf16.mxu0 %v8508_v36 }
 0x4a7   : > { %8120 = vmatmul.mubr.msk.f32.gmra.mrb[36].mxu0 %vm3319_vm8, %v12349_v38 }
 0x4a8   : > { %8122 = vmatprep.mubr.msk.f32.mxu0 %vm3319_vm8, %v12350_v24 }
 0x4ab   : > { %8123 = vmatmul.mubr.msk.f32.gmra.mrb[38].mxu0 %vm3319_vm8, %v12351_v15 }
 0x4ac   : > { %8125 = vmatprep.mubr.msk.f32.mxu0 %vm3319_vm8, %v12352_v12 }
 0x4af   : > { %8126 = vmatmul.mubr.msk.f32.gmra.mrb[40].mxu0 %vm3319_vm8, %v12353_v13 }
 0x4b0   : > { %8128 = vmatprep.mubr.msk.f32.mxu0 %vm3319_vm8, %v12354_v63 }
 0x4b3   : > { %8129 = vmatmul.mubr.msk.f32.gmra.mrb[42].mxu0 %vm3319_vm8, %v12355_v54 }
 0x4b4   : > { %8131 = vmatprep.mubr.msk.f32.mxu0 %vm3319_vm8, %v12356_v60  ;;  %v12364_v60 = vld [vmem:[#allocation18_spill] sm:$0xff] }
 0x4b7   : > { %8132 = vmatmul.mubr.msk.f32.gmra.mrb[44].mxu0 %vm3319_vm8, %v12357_v2  ;;  %v12365_v2 = vld [vmem:[#allocation19_spill] sm:$0xff] }
 0x4b8   : > { %8134 = vmatprep.mubr.msk.f32.mxu0 %vm3319_vm8, %v12358_v3  ;;  %v12366_v3 = vld [vmem:[#allocation20_spill] sm:$0xff] }
 0x4bb   : > { %8135 = vmatmul.mubr.msk.f32.gmra.mrb[46].mxu0 %vm3319_vm8, %v12359_v6  ;;  %v12367_v6 = vld [vmem:[#allocation21_spill] sm:$0xff] }
 0x4bc   : > { %8137 = vmatprep.mubr.msk.f32.mxu0 %vm3319_vm8, %v12360_v41  ;;  %v12368_v41 = vld [vmem:[#allocation22_spill] sm:$0xff] }
 0x4bf   : > { %8138 = vmatmul.mubr.msk.f32.gmra.mrb[48].mxu0 %vm3319_vm8, %v12361_v58  ;;  %v12369_v58 = vld [vmem:[#allocation23_spill] sm:$0xff] }
 0x4c0   : > { %8140 = vmatprep.mubr.msk.f32.mxu0 %vm3319_vm8, %v12362_v43  ;;  %v11876_v43 = vld [vmem:[#allocation2 + $0xe2] sm:$0xff] }
 0x4c1   : > { %12370 = vst [vmem:[#allocation3_spill] sm:$0xff] %v11876_v43 }
 0x4c3   : > { %8141 = vmatmul.mubr.msk.f32.gmra.mrb[50].mxu0 %vm3319_vm8, %v12363_v4 }
 0x4c4   : > { %8143 = vmatprep.mubr.msk.f32.mxu0 %vm3319_vm8, %v12364_v60  ;;  %v11880_v60 = vld [vmem:[#allocation2 + $0xea] sm:$0xff] }
 0x4c5   : > { %12371 = vst [vmem:[#allocation4_spill] sm:$0xff] %v11880_v60 }
 0x4c7   : > { %8144 = vmatmul.mubr.msk.f32.gmra.mrb[52].mxu0 %vm3319_vm8, %v12365_v2 }
 0x4c8   : > { %8146 = vmatprep.mubr.msk.f32.mxu0 %vm3319_vm8, %v12366_v3  ;;  %v7243_v3 = vld [vmem:[%s12196_s4 + $0xf0] sm:$0xff] }
 0x4cb   : > { %8147 = vmatmul.mubr.msk.f32.gmra.mrb[54].mxu0 %vm3319_vm8, %v12367_v6  ;;  %v7244_v6 = vld [vmem:[%s12196_s4 + $0xf8] sm:$0xff] }
 0x4cc   : > { %8149 = vmatprep.mubr.msk.f32.mxu0 %vm3319_vm8, %v12368_v41  ;;  %v7274_v41 = vld [vmem:[%s12196_s4 + $0x108] sm:$0xff] }
 0x4cf   : > { %8150 = vmatmul.mubr.msk.f32.gmra.mrb[56].mxu0 %vm3319_vm8, %v12369_v58  ;;  %v8512_v58 = vpack.c.bf16 %v7244_v6, %v7243_v3 }
 0x4d0   : > { %8152 = vmatprep.mubr.msk.f32.mxu0 %vm3319_vm8, %v11876_v43  ;;  %v7273_v43 = vld [vmem:[%s12196_s4 + $0x100] sm:$0xff] }
 0x4d3   : > { %8153 = vmatmul.mubr.msk.f32.gmra.mrb[58].mxu0 %vm3319_vm8, %v11880_v60  ;;  %v8516_v60 = vpack.c.bf16 %v7274_v41, %v7273_v43 }
 0x4d4   : > { %8163 = vmatprep.mubr.msk.f32.mxu0 %vm3319_vm8, %v11452_v61  ;;  %v5423_v61 = vld [vmem:[#allocation2 + $0xf0] sm:$0xff] }
 0x4d7   : > { %8164 = vmatmul.mubr.msk.f32.vlgmr.msra.gmra.mrb[32].mxu0 %vm3319_vm8, %v11457_v34  ;;  %v5424_v34 = vld [vmem:[#allocation2 + $0xf8] sm:$0xff] }
 0x4d8   : > { %8166 = vmatprep.mubr.msk.f32.mxu0 %vm3319_vm8, %v11461_v1  ;;  %8511 = vmatpush3.bf16.msra.mxu0 %v8508_v36  ;;  %v7275_v1 = vld [vmem:[%s12196_s4 + $0x110] sm:$0xff] }
 0x4d9   : > { %8513 = vmatprep.subr.bf16.mxu0 %v8512_v58 }
 0x4db   : > { %8167 = vmatmul.mubr.msk.f32.gmra.mrb[34].mxu0 %vm3319_vm8, %v11465_v55  ;;  %v7276_v55 = vld [vmem:[%s12196_s4 + $0x118] sm:$0xff] }
 0x4dc   : > { %8169 = vmatprep.mubr.msk.f32.mxu0 %vm3319_vm8, %v11469_v51  ;;  %8515 = vmatpush3.bf16.msra.mxu0 %v8512_v58  ;;  %v5747_v51 = vld [vmem:[#allocation2 + $0x21] sm:$0xff] }
 0x4dd   : > { %8517 = vmatprep.subr.bf16.mxu0 %v8516_v60 }
 0x4df   : > { %8170 = vmatmul.mubr.msk.f32.gmra.mrb[36].mxu0 %vm3319_vm8, %v11473_v30  ;;  %v8520_v30 = vpack.c.bf16 %v7276_v55, %v7275_v1 }
 0x4e0   : > { %8172 = vmatprep.mubr.msk.f32.mxu0 %vm3319_vm8, %v11477_v20  ;;  %v5748_v20 = vld [vmem:[#allocation2 + $0x29] sm:$0xff] }
 0x4e3   : > { %8173 = vmatmul.mubr.msk.f32.gmra.mrb[38].mxu0 %vm3319_vm8, %v11481_v9  ;;  %v5749_v9 = vld [vmem:[#allocation2 + $0x31] sm:$0xff] }
 0x4e4   : > { %8175 = vmatprep.mubr.msk.f32.mxu0 %vm3319_vm8, %v11485_v33  ;;  %v5750_v33 = vld [vmem:[#allocation2 + $0x39] sm:$0xff] }
 0x4e7   : > { %8176 = vmatmul.mubr.msk.f32.gmra.mrb[40].mxu0 %vm3319_vm8, %v11489_v56  ;;  %v5751_v56 = vld [vmem:[#allocation2 + $0x41] sm:$0xff] }
 0x4e8   : > { %8178 = vmatprep.mubr.msk.f32.mxu0 %vm3319_vm8, %v11493_v52  ;;  %v5752_v52 = vld [vmem:[#allocation2 + $0x49] sm:$0xff] }
 0x4eb   : > { %8179 = vmatmul.mubr.msk.f32.gmra.mrb[42].mxu0 %vm3319_vm8, %v11497_v0  ;;  %v5753_v0 = vld [vmem:[#allocation2 + $0x51] sm:$0xff] }
 0x4ec   : > { %8181 = vmatprep.mubr.msk.f32.mxu0 %vm3319_vm8, %v11501_v40  ;;  %v6124_v40 = vld [vmem:[#allocation2 + $0xfa] sm:$0xff] }
 0x4ef   : > { %8182 = vmatmul.mubr.msk.f32.gmra.mrb[44].mxu0 %vm3319_vm8, %v11505_v37  ;;  %v6676_v37 = vld [vmem:[%s12198_s6 + $0x8] sm:$0xff] }
 0x4f0   : > { %8184 = vmatprep.mubr.msk.f32.mxu0 %vm3319_vm8, %v11509_v39  ;;  %7307 = vmatprep.mubr.msk.f32.mxu1 %vm6689_vm9, %v6676_v37  ;;  %v12064_v39 = vld [vmem:[%s12197_s5] ss:$0 sm:$0xff] }
 0x4f3   : > { %8185 = vmatmul.mubr.msk.f32.gmra.mrb[46].mxu0 %vm3319_vm8, %v11513_v26 }
 0x4f4   : > { %8187 = vmatprep.mubr.msk.f32.mxu0 %vm3319_vm8, %v11517_v62 }
 0x4f7   : > { %8188 = vmatmul.mubr.msk.f32.gmra.mrb[48].mxu0 %vm3319_vm8, %v11521_v44 }
 0x4f8   : > { %8190 = vmatprep.mubr.msk.f32.mxu0 %vm3319_vm8, %v11525_v5 }
 0x4fb   : > { %8191 = vmatmul.mubr.msk.f32.gmra.mrb[50].mxu0 %vm3319_vm8, %v11529_v29 }
 0x4fc   : > { %8193 = vmatprep.mubr.msk.f32.mxu0 %vm3319_vm8, %v11533_v28 }
 0x4ff   : > { %8194 = vmatmul.mubr.msk.f32.gmra.mrb[52].mxu0 %vm3319_vm8, %v11537_v57 }
 0x500   : > { %8196 = vmatprep.mubr.msk.f32.mxu0 %vm3319_vm8, %v11541_v11 }
 0x503   : > { %8197 = vmatmul.mubr.msk.f32.gmra.mrb[54].mxu0 %vm3319_vm8, %v11545_v22 }
 0x504   : > { %8199 = vmatprep.mubr.msk.f32.mxu0 %vm3319_vm8, %v11732_v18 }
 0x507   : > { %8200 = vmatmul.mubr.msk.f32.gmra.mrb[56].mxu0 %vm3319_vm8, %v11736_v50 }
 0x508   : > { %8202 = vmatprep.mubr.msk.f32.mxu0 %vm3319_vm8, %v5423_v61 }
 0x50b   : > { %8203 = vmatmul.mubr.msk.f32.gmra.mrb[58].mxu0 %vm3319_vm8, %v5424_v34 }
 0x50c   : > { %8213 = vmatprep.mubr.msk.f32.mxu0 %vm3319_vm8, %v5747_v51 }
 0x50f   : > { %8214 = vmatmul.mubr.msk.f32.vlgmr.msra.gmra.mrb[32].mxu0 %vm3319_vm8, %v5748_v20 }
 0x510   : > { %8216 = vmatprep.mubr.msk.f32.mxu0 %vm3319_vm8, %v5749_v9  ;;  %8519 = vmatpush3.bf16.msra.mxu0 %v8516_v60 }
 0x511   : > { %8521 = vmatprep.subr.bf16.mxu0 %v8520_v30 }
 0x513   : > { %8217 = vmatmul.mubr.msk.f32.gmra.mrb[34].mxu0 %vm3319_vm8, %v5750_v33 }
 0x514   : > { %8219 = vmatprep.mubr.msk.f32.mxu0 %vm3319_vm8, %v5751_v56  ;;  %8523 = vmatpush3.bf16.msra.mxu0 %v8520_v30 }
 0x517   : > { %8220 = vmatmul.mubr.msk.f32.gmra.mrb[36].mxu0 %vm3319_vm8, %v5752_v52 }
 0x518   : > { %8222 = vmatprep.mubr.msk.f32.mxu0 %vm3319_vm8, %v5753_v0 }
 0x51b   : > { %8223 = vmatmul.mubr.msk.f32.gmra.mrb[38].mxu0 %vm3319_vm8, %v11340_v59  ;;  %v5773_v59 = vld [vmem:[#allocation2 + $0xf1] sm:$0xff] }
 0x51c   : > { %8225 = vmatprep.mubr.msk.f32.mxu0 %vm3319_vm8, %v11345_v23  ;;  %v5774_v23 = vld [vmem:[#allocation2 + $0xf9] sm:$0xff] }
 0x51f   : > { %8226 = vmatmul.mubr.msk.f32.gmra.mrb[40].mxu0 %vm3319_vm8, %v11350_v25  ;;  %v12372_v25 = vld [vmem:[#allocation10_spill] sm:$0xff] }
 0x520   : > { %8228 = vmatprep.mubr.msk.f32.mxu0 %vm3319_vm8, %v11355_v10  ;;  %v12373_v10 = vld [vmem:[#allocation11_spill] sm:$0xff] }
 0x523   : > { %8229 = vmatmul.mubr.msk.f32.gmra.mrb[42].mxu0 %vm3319_vm8, %v11360_v21  ;;  %v12374_v21 = vld [vmem:[#allocation12_spill] sm:$0xff] }
 0x524   : > { %8231 = vmatprep.mubr.msk.f32.mxu0 %vm3319_vm8, %v11365_v42  ;;  %v12375_v42 = vld [vmem:[#allocation13_spill] sm:$0xff] }
 0x527   : > { %8232 = vmatmul.mubr.msk.f32.gmra.mrb[44].mxu0 %vm3319_vm8, %v11370_v16  ;;  %v12376_v16 = vld [vmem:[#allocation14_spill] sm:$0xff] }
 0x528   : > { %8234 = vmatprep.mubr.msk.f32.mxu0 %vm3319_vm8, %v11375_v35  ;;  %v12377_v35 = vld [vmem:[#allocation15_spill] sm:$0xff] }
 0x52b   : > { %8235 = vmatmul.mubr.msk.f32.gmra.mrb[46].mxu0 %vm3319_vm8, %v11380_v49  ;;  %v12378_v49 = vld [vmem:[#allocation16_spill] sm:$0xff] }
 0x52c   : > { %8237 = vmatprep.mubr.msk.f32.mxu0 %vm3319_vm8, %v11385_v31  ;;  %v12379_v31 = vld [vmem:[#allocation18_spill] sm:$0xff] }
 0x52f   : > { %8238 = vmatmul.mubr.msk.f32.gmra.mrb[48].mxu0 %vm3319_vm8, %v11390_v48  ;;  %v12380_v48 = vld [vmem:[#allocation20_spill] sm:$0xff] }
 0x530   : > { %8240 = vmatprep.mubr.msk.f32.mxu0 %vm3319_vm8, %v11395_v17  ;;  %v12381_v17 = vld [vmem:[#allocation21_spill] sm:$0xff] }
 0x533   : > { %8241 = vmatmul.mubr.msk.f32.gmra.mrb[50].mxu0 %vm3319_vm8, %v11400_v27  ;;  %v12382_v27 = vld [vmem:[#allocation22_spill] sm:$0xff] }
 0x534   : > { %8243 = vmatprep.mubr.msk.f32.mxu0 %vm3319_vm8, %v11405_v19  ;;  %v12383_v19 = vld [vmem:[#allocation23_spill] sm:$0xff] }
 0x537   : > { %8244 = vmatmul.mubr.msk.f32.gmra.mrb[52].mxu0 %vm3319_vm8, %v11410_v46  ;;  %v12384_v46 = vld [vmem:[#allocation3_spill] sm:$0xff] }
 0x538   : > { %8246 = vmatprep.mubr.msk.f32.mxu0 %vm3319_vm8, %v11415_v45  ;;  %v12385_v45 = vld [vmem:[#allocation4_spill] sm:$0xff] }
 0x53b   : > { %8247 = vmatmul.mubr.msk.f32.gmra.mrb[54].mxu0 %vm3319_vm8, %v11420_v7  ;;  %v6123_v7 = vld [vmem:[#allocation2 + $0xf2] sm:$0xff] }
 0x53c   : > { %8249 = vmatprep.mubr.msk.f32.mxu0 %vm3319_vm8, %v11804_v32 }
 0x53f   : > { %8250 = vmatmul.mubr.msk.f32.gmra.mrb[56].mxu0 %vm3319_vm8, %v11808_v14 }
 0x540   : > { %8252 = vmatprep.mubr.msk.f32.mxu0 %vm3319_vm8, %v5773_v59 }
 0x543   : > { %8253 = vmatmul.mubr.msk.f32.gmra.mrb[58].mxu0 %vm3319_vm8, %v5774_v23 }
 0x544   : > { %8263 = vmatprep.mubr.msk.f32.mxu0 %vm3319_vm8, %v11572_v53 }
 0x547   : > { %8264 = vmatmul.mubr.msk.f32.vlgmr.msra.gmra.mrb[32].mxu0 %vm3319_vm8, %v11576_v47 }
 0x548   : > { %8266 = vmatprep.mubr.msk.f32.mxu0 %vm3319_vm8, %v11580_v8 }
 0x54b   : > { %8267 = vmatmul.mubr.msk.f32.gmra.mrb[34].mxu0 %vm3319_vm8, %v12349_v38 }
 0x54c   : > { %8269 = vmatprep.mubr.msk.f32.mxu0 %vm3319_vm8, %v12350_v24 }
 0x54f   : > { %8270 = vmatmul.mubr.msk.f32.gmra.mrb[36].mxu0 %vm3319_vm8, %v12351_v15 }
 0x550   : > { %8272 = vmatprep.mubr.msk.f32.mxu0 %vm3319_vm8, %v12352_v12 }
 0x553   : > { %8273 = vmatmul.mubr.msk.f32.gmra.mrb[38].mxu0 %vm3319_vm8, %v12353_v13 }
 0x554   : > { %8275 = vmatprep.mubr.msk.f32.mxu0 %vm3319_vm8, %v12354_v63 }
 0x557   : > { %8276 = vmatmul.mubr.msk.f32.gmra.mrb[40].mxu0 %vm3319_vm8, %v12355_v54 }
 0x558   : > { %8278 = vmatprep.mubr.msk.f32.mxu0 %vm3319_vm8, %v12372_v25 }
 0x55b   : > { %8279 = vmatmul.mubr.msk.f32.gmra.mrb[42].mxu0 %vm3319_vm8, %v12373_v10 }
 0x55c   : > { %8281 = vmatprep.mubr.msk.f32.mxu0 %vm3319_vm8, %v12374_v21 }
 0x55f   : > { %8282 = vmatmul.mubr.msk.f32.gmra.mrb[44].mxu0 %vm3319_vm8, %v12375_v42 }
 0x560   : > { %8284 = vmatprep.mubr.msk.f32.mxu0 %vm3319_vm8, %v12376_v16 }
 0x563   : > { %8285 = vmatmul.mubr.msk.f32.gmra.mrb[46].mxu0 %vm3319_vm8, %v12377_v35 }
 0x564   : > { %8287 = vmatprep.mubr.msk.f32.mxu0 %vm3319_vm8, %v12378_v49 }
 0x567   : > { %8288 = vmatmul.mubr.msk.f32.gmra.mrb[48].mxu0 %vm3319_vm8, %v12363_v4 }
 0x568   : > { %8290 = vmatprep.mubr.msk.f32.mxu0 %vm3319_vm8, %v12379_v31 }
 0x56b   : > { %8291 = vmatmul.mubr.msk.f32.gmra.mrb[50].mxu0 %vm3319_vm8, %v12365_v2 }
 0x56c   : > { %8293 = vmatprep.mubr.msk.f32.mxu0 %vm3319_vm8, %v12380_v48 }
 0x56f   : > { %8294 = vmatmul.mubr.msk.f32.gmra.mrb[52].mxu0 %vm3319_vm8, %v12381_v17 }
 0x570   : > { %8296 = vmatprep.mubr.msk.f32.mxu0 %vm3319_vm8, %v12382_v27 }
 0x573   : > { %8297 = vmatmul.mubr.msk.f32.gmra.mrb[54].mxu0 %vm3319_vm8, %v12383_v19 }
 0x574   : > { %8299 = vmatprep.mubr.msk.f32.mxu0 %vm3319_vm8, %v12384_v46 }
 0x577   : > { %8300 = vmatmul.mubr.msk.f32.gmra.mrb[56].mxu0 %vm3319_vm8, %v12385_v45 }
 0x578   : > { %8302 = vmatprep.mubr.msk.f32.mxu0 %vm3319_vm8, %v6123_v7 }
 0x57b   : > { %8303 = vmatmul.mubr.msk.f32.gmra.mrb[58].mxu0 %vm3319_vm8, %v6124_v40 }
 0x61a   : > { %v8265_v26 = vpop.f32.mrb[32].mxu0 }
 0x61b   : > { %v6455_v62 = vadd.f32 %v8265_v26, %v12064_v39  ;;  %v6280_v44 = vpop.f32.mrb[33].mxu0 }
 0x61c   : > { %v6454_v5 = vadd.f32 %v12064_v39, %v6280_v44 }
 0x61d   : > { %v6483_v29 = vmax.f32 %v6455_v62, 0.0 }
 0x61e   : > { %v6482_v28 = vmax.f32 %v6454_v5, 0.0  ;;  %v8268_v57 = vpop.f32.mrb[34].mxu0 }
 0x61f   : > { %v6539_v11 = vrot.slane %v6483_v29, 1  ;;  %v6457_v22 = vadd.f32 %v8268_v57, %v12064_v39  ;;  %v6290_v53 = vpop.f32.mrb[35].mxu0 }
 0x620   : > { %v6538_v47 = vrot.slane %v6482_v28, 1  ;;  %v6456_v8 = vadd.f32 %v12064_v39, %v6290_v53 }
 0x621   : > { %v6485_v18 = vmax.f32 %v6457_v22, 0.0 }
 0x622   : > { %v6540_v50 = vsel %vm1436_vm4, %v6538_v47, %v6539_v11  ;;  %v6484_v32 = vmax.f32 %v6456_v8, 0.0  ;;  %v8271_v14 = vpop.f32.mrb[36].mxu0  ;;  %v12386_v8 = vmov 0.0|0.0  }
 0x623   : > { %v6621_v36 = vmax.f32 %v6482_v28, %v6540_v50  ;;  %v6543_v38 = vrot.slane %v6485_v18, 1  ;;  %v6459_v24 = vadd.f32 %v8271_v14, %v12064_v39  ;;  %v6300_v15 = vpop.f32.mrb[37].mxu0 }
 0x624   : > { %v6541_v12 = vrot.slane %v6484_v32, 1  ;;  %v6458_v13 = vadd.f32 %v12064_v39, %v6300_v15 }
 0x625   : > { %v6487_v63 = vmax.f32 %v6459_v24, 0.0 }
 0x626   : > { %v6542_v54 = vsel %vm1436_vm4, %v6539_v11, %v6541_v12  ;;  %v6544_v60 = vsel %vm1436_vm4, %v6541_v12, %v6543_v38  ;;  %v6486_v2 = vmax.f32 %v6458_v13, 0.0  ;;  %v8274_v3 = vpop.f32.mrb[38].mxu0 }
 0x627   : > { %v6622_v6 = vmax.f32 %v6483_v29, %v6542_v54  ;;  %v6623_v41 = vmax.f32 %v6484_v32, %v6544_v60  ;;  %v6547_v58 = vrot.slane %v6487_v63, 1  ;;  %v6461_v43 = vadd.f32 %v8274_v3, %v12064_v39  ;;  %v6310_v4 = vpop.f32.mrb[39].mxu0 }
 0x628   : > { %v6545_v61 = vrot.slane %v6486_v2, 1  ;;  %v6460_v34 = vadd.f32 %v12064_v39, %v6310_v4 }
 0x629   : > { %v6649_v1 = vmax.f32 %v6621_v36, %v6623_v41  ;;  %v6489_v55 = vmax.f32 %v6461_v43, 0.0 }
 0x62a   : > { %v6546_v51 = vsel %vm1436_vm4, %v6543_v38, %v6545_v61  ;;  %v6548_v30 = vsel %vm1436_vm4, %v6545_v61, %v6547_v58  ;;  %v6488_v20 = vmax.f32 %v6460_v34, 0.0  ;;  %v8277_v9 = vpop.f32.mrb[40].mxu0 }
 0x62b   : > { %v6624_v33 = vmax.f32 %v6485_v18, %v6546_v51  ;;  %v6625_v56 = vmax.f32 %v6486_v2, %v6548_v30  ;;  %v6551_v52 = vrot.slane %v6489_v55, 1  ;;  %v6463_v0 = vadd.f32 %v8277_v9, %v12064_v39  ;;  %v6320_v59 = vpop.f32.mrb[41].mxu0 }
 0x62c   : > { %v6549_v23 = vrot.slane %v6488_v20, 1  ;;  %v6462_v25 = vadd.f32 %v12064_v39, %v6320_v59 }
 0x62d   : > { %v6651_v10 = vmax.f32 %v6623_v41, %v6625_v56  ;;  %v6491_v21 = vmax.f32 %v6463_v0, 0.0  ;;  %v6650_v42 = vmax.f32 %v6622_v6, %v6624_v33 }
 0x62e   : > { %v6550_v16 = vsel %vm1436_vm4, %v6547_v58, %v6549_v23  ;;  %v6552_v35 = vsel %vm1436_vm4, %v6549_v23, %v6551_v52  ;;  %v6490_v49 = vmax.f32 %v6462_v25, 0.0  ;;  %v8280_v31 = vpop.f32.mrb[42].mxu0 }
 0x62f   : > { %v6626_v48 = vmax.f32 %v6487_v63, %v6550_v16  ;;  %v6627_v17 = vmax.f32 %v6488_v20, %v6552_v35  ;;  %v6555_v27 = vrot.slane %v6491_v21, 1  ;;  %v6465_v19 = vadd.f32 %v8280_v31, %v12064_v39  ;;  %v6330_v46 = vpop.f32.mrb[43].mxu0 }
 0x630   : > { %v6553_v45 = vrot.slane %v6490_v49, 1  ;;  %v6464_v7 = vadd.f32 %v12064_v39, %v6330_v46  ;;  %v8525_v40 = vpack.c.bf16 %v6650_v42, %v6649_v1 }
 0x631   : > { %v6653_v37 = vmax.f32 %v6625_v56, %v6627_v17  ;;  %v6493_v26 = vmax.f32 %v6465_v19, 0.0  ;;  %v6652_v62 = vmax.f32 %v6624_v33, %v6626_v48 }
 0x632   : > { %v6554_v44 = vsel %vm1436_vm4, %v6551_v52, %v6553_v45  ;;  %v6556_v5 = vsel %vm1436_vm4, %v6553_v45, %v6555_v27  ;;  %v6492_v29 = vmax.f32 %v6464_v7, 0.0  ;;  %8526 = vmatpush1.bf16.msra.mxu1 %v8525_v40  ;;  %v8283_v28 = vpop.f32.mrb[44].mxu0 }
 0x633   : > { %v6628_v57 = vmax.f32 %v6489_v55, %v6554_v44  ;;  %v6629_v11 = vmax.f32 %v6490_v49, %v6556_v5  ;;  %v6559_v22 = vrot.slane %v6493_v26, 1  ;;  %v6467_v53 = vadd.f32 %v8283_v28, %v12064_v39  ;;  %v6340_v47 = vpop.f32.mrb[45].mxu0  ;;  %8527 = vmatprep.subr.bf16.mxu1 %v12386_v8 }
 0x634   : > { %v6557_v18 = vrot.slane %v6492_v29, 1  ;;  %v6466_v50 = vadd.f32 %v12064_v39, %v6340_v47  ;;  %v8528_v32 = vpack.c.bf16 %v6652_v62, %v6651_v10 }
 0x635   : > { %v6655_v14 = vmax.f32 %v6627_v17, %v6629_v11  ;;  %v6495_v36 = vmax.f32 %v6467_v53, 0.0  ;;  %v6654_v38 = vmax.f32 %v6626_v48, %v6628_v57 }
 0x636   : > { %v6558_v24 = vsel %vm1436_vm4, %v6555_v27, %v6557_v18  ;;  %v6560_v15 = vsel %vm1436_vm4, %v6557_v18, %v6559_v22  ;;  %v6494_v12 = vmax.f32 %v6466_v50, 0.0  ;;  %8529 = vmatpush1.bf16.msra.mxu1 %v8528_v32  ;;  %v8286_v13 = vpop.f32.mrb[46].mxu0 }
 0x637   : > { %v6630_v63 = vmax.f32 %v6491_v21, %v6558_v24  ;;  %v6631_v54 = vmax.f32 %v6492_v29, %v6560_v15  ;;  %v6563_v60 = vrot.slane %v6495_v36, 1  ;;  %v6469_v2 = vadd.f32 %v8286_v13, %v12064_v39  ;;  %v6350_v3 = vpop.f32.mrb[47].mxu0  ;;  %8530 = vmatprep.subr.bf16.mxu1 %v12386_v8 }
 0x638   : > { %v6561_v6 = vrot.slane %v6494_v12, 1  ;;  %v6468_v41 = vadd.f32 %v12064_v39, %v6350_v3  ;;  %v8531_v58 = vpack.c.bf16 %v6654_v38, %v6653_v37 }
 0x639   : > { %v6657_v43 = vmax.f32 %v6629_v11, %v6631_v54  ;;  %v6497_v4 = vmax.f32 %v6469_v2, 0.0  ;;  %v6656_v61 = vmax.f32 %v6628_v57, %v6630_v63 }
 0x63a   : > { %v6562_v34 = vsel %vm1436_vm4, %v6559_v22, %v6561_v6  ;;  %v6564_v1 = vsel %vm1436_vm4, %v6561_v6, %v6563_v60  ;;  %v6496_v55 = vmax.f32 %v6468_v41, 0.0  ;;  %8532 = vmatpush1.bf16.msra.mxu1 %v8531_v58  ;;  %v8289_v51 = vpop.f32.mrb[48].mxu0 }
 0x63b   : > { %v6632_v30 = vmax.f32 %v6493_v26, %v6562_v34  ;;  %v6633_v20 = vmax.f32 %v6494_v12, %v6564_v1  ;;  %v6567_v9 = vrot.slane %v6497_v4, 1  ;;  %v6471_v33 = vadd.f32 %v8289_v51, %v12064_v39  ;;  %v6360_v56 = vpop.f32.mrb[49].mxu0  ;;  %8533 = vmatprep.subr.bf16.mxu1 %v12386_v8 }
 0x63c   : > { %v6565_v52 = vrot.slane %v6496_v55, 1  ;;  %v6470_v0 = vadd.f32 %v12064_v39, %v6360_v56  ;;  %v8534_v59 = vpack.c.bf16 %v6656_v61, %v6655_v14 }
 0x63d   : > { %v6659_v23 = vmax.f32 %v6631_v54, %v6633_v20  ;;  %v6499_v25 = vmax.f32 %v6471_v33, 0.0  ;;  %v6658_v10 = vmax.f32 %v6630_v63, %v6632_v30 }
 0x63e   : > { %v6566_v21 = vsel %vm1436_vm4, %v6563_v60, %v6565_v52  ;;  %v6568_v42 = vsel %vm1436_vm4, %v6565_v52, %v6567_v9  ;;  %v6498_v16 = vmax.f32 %v6470_v0, 0.0  ;;  %8535 = vmatpush1.bf16.msra.mxu1 %v8534_v59  ;;  %v8292_v35 = vpop.f32.mrb[50].mxu0 }
 0x63f   : > { %v6634_v49 = vmax.f32 %v6495_v36, %v6566_v21  ;;  %v6635_v31 = vmax.f32 %v6496_v55, %v6568_v42  ;;  %v6571_v48 = vrot.slane %v6499_v25, 1  ;;  %v6473_v17 = vadd.f32 %v8292_v35, %v12064_v39  ;;  %v6370_v27 = vpop.f32.mrb[51].mxu0  ;;  %8536 = vmatprep.subr.bf16.mxu1 %v12386_v8 }
 0x640   : > { %v6569_v19 = vrot.slane %v6498_v16, 1  ;;  %v6472_v46 = vadd.f32 %v12064_v39, %v6370_v27  ;;  %v8537_v45 = vpack.c.bf16 %v6658_v10, %v6657_v43 }
 0x641   : > { %v6661_v7 = vmax.f32 %v6633_v20, %v6635_v31  ;;  %v6501_v40 = vmax.f32 %v6473_v17, 0.0  ;;  %v6660_v37 = vmax.f32 %v6632_v30, %v6634_v49 }
 0x642   : > { %v6570_v26 = vsel %vm1436_vm4, %v6567_v9, %v6569_v19  ;;  %v6572_v62 = vsel %vm1436_vm4, %v6569_v19, %v6571_v48  ;;  %v6500_v44 = vmax.f32 %v6472_v46, 0.0  ;;  %8538 = vmatpush1.bf16.msra.mxu1 %v8537_v45  ;;  %v8295_v5 = vpop.f32.mrb[52].mxu0 }
 0x643   : > { %v6636_v29 = vmax.f32 %v6497_v4, %v6570_v26  ;;  %v6637_v28 = vmax.f32 %v6498_v16, %v6572_v62  ;;  %v6575_v57 = vrot.slane %v6501_v40, 1  ;;  %v6475_v11 = vadd.f32 %v8295_v5, %v12064_v39  ;;  %v6380_v22 = vpop.f32.mrb[53].mxu0  ;;  %8539 = vmatprep.subr.bf16.mxu1 %v12386_v8 }
 0x644   : > { %v6573_v53 = vrot.slane %v6500_v44, 1  ;;  %v6474_v47 = vadd.f32 %v12064_v39, %v6380_v22  ;;  %v8540_v18 = vpack.c.bf16 %v6660_v37, %v6659_v23 }
 0x645   : > { %v6663_v50 = vmax.f32 %v6635_v31, %v6637_v28  ;;  %v6503_v32 = vmax.f32 %v6475_v11, 0.0  ;;  %v6662_v14 = vmax.f32 %v6634_v49, %v6636_v29 }
 0x646   : > { %v6574_v36 = vsel %vm1436_vm4, %v6571_v48, %v6573_v53  ;;  %v6576_v38 = vsel %vm1436_vm4, %v6573_v53, %v6575_v57  ;;  %v6502_v24 = vmax.f32 %v6474_v47, 0.0  ;;  %8541 = vmatpush1.bf16.msra.mxu1 %v8540_v18  ;;  %v8298_v15 = vpop.f32.mrb[54].mxu0 }
 0x647   : > { %v6638_v12 = vmax.f32 %v6499_v25, %v6574_v36  ;;  %v6639_v13 = vmax.f32 %v6500_v44, %v6576_v38  ;;  %v6579_v63 = vrot.slane %v6503_v32, 1  ;;  %v6477_v54 = vadd.f32 %v8298_v15, %v12064_v39  ;;  %v6390_v60 = vpop.f32.mrb[55].mxu0  ;;  %8542 = vmatprep.subr.bf16.mxu1 %v12386_v8  ;;  %v6675_v15 = vld [vmem:[%s12198_s6] sm:$0xff] }
 0x648   : > { %v6577_v2 = vrot.slane %v6502_v24, 1  ;;  %v6476_v3 = vadd.f32 %v12064_v39, %v6390_v60  ;;  %v8543_v6 = vpack.c.bf16 %v6662_v14, %v6661_v7  ;;  %v6681_v60 = vld [vmem:[%s12198_s6 + $0x30] sm:$0xff] }
 0x649   : > { %v6665_v41 = vmax.f32 %v6637_v28, %v6639_v13  ;;  %v6505_v58 = vmax.f32 %v6477_v54, 0.0  ;;  %v6664_v43 = vmax.f32 %v6636_v29, %v6638_v12  ;;  %v6682_v54 = vld [vmem:[%s12198_s6 + $0x38] sm:$0xff] }
 0x64a   : > { %v6578_v4 = vsel %vm1436_vm4, %v6575_v57, %v6577_v2  ;;  %v6580_v61 = vsel %vm1436_vm4, %v6577_v2, %v6579_v63  ;;  %v6504_v34 = vmax.f32 %v6476_v3, 0.0  ;;  %8544 = vmatpush1.bf16.msra.mxu1 %v8543_v6  ;;  %v8301_v1 = vpop.f32.mrb[56].mxu0  ;;  %v6684_v2 = vld [vmem:[%s12198_s6 + $0x48] sm:$0xff]  ;;  %v6683_v3 = vld [vmem:[%s12198_s6 + $0x40] sm:$0xff]  ;;  %v6686_v6 = vld [vmem:[%s12198_s6 + $0x58] sm:$0xff] }
 0x64b   : > { %v6640_v55 = vmax.f32 %v6501_v40, %v6578_v4  ;;  %v6641_v51 = vmax.f32 %v6502_v24, %v6580_v61  ;;  %v6583_v30 = vrot.slane %v6505_v58, 1  ;;  %v6479_v20 = vadd.f32 %v8301_v1, %v12064_v39  ;;  %v6400_v9 = vpop.f32.mrb[57].mxu0  ;;  %8545 = vmatprep.subr.bf16.mxu1 %v12386_v8 }
 0x64c   : > { %v6581_v33 = vrot.slane %v6504_v34, 1  ;;  %v6478_v56 = vadd.f32 %v12064_v39, %v6400_v9  ;;  %v8546_v52 = vpack.c.bf16 %v6664_v43, %v6663_v50  ;;  %v6687_v43 = vld [vmem:[%s12198_s6 + $0x60] sm:$0x1] }
 0x64d   : > { %v6667_v0 = vmax.f32 %v6639_v13, %v6641_v51  ;;  %v6507_v59 = vmax.f32 %v6479_v20, 0.0  ;;  %v6666_v23 = vmax.f32 %v6638_v12, %v6640_v55  ;;  %v6678_v12 = vld [vmem:[%s12198_s6 + $0x18] sm:$0xff]  ;;  %v6677_v13 = vld [vmem:[%s12198_s6 + $0x10] sm:$0xff] }
 0x64e   : > { %v6582_v25 = vsel %vm1436_vm4, %v6579_v63, %v6581_v33  ;;  %v6584_v10 = vsel %vm1436_vm4, %v6581_v33, %v6583_v30  ;;  %v6506_v21 = vmax.f32 %v6478_v56, 0.0  ;;  %8547 = vmatpush1.bf16.msra.mxu1 %v8546_v52  ;;  %v8304_v42 = vpop.f32.mrb[58].mxu0  ;;  %v6679_v63 = vld [vmem:[%s12198_s6 + $0x20] sm:$0xff] }
 0x64f   : > { %v6642_v16 = vmax.f32 %v6503_v32, %v6582_v25  ;;  %v6643_v35 = vmax.f32 %v6504_v34, %v6584_v10  ;;  %v6587_v49 = vrot.slane %v6507_v59, 1  ;;  %v6481_v31 = vadd.f32 %v8304_v42, %v12064_v39  ;;  %v6410_v48 = vpop.f32.mrb[59].mxu0  ;;  %8548 = vmatprep.subr.bf16.mxu1 %v12386_v8 }
 0x650   : > { %v6585_v17 = vrot.slane %v6506_v21, 1  ;;  %v6480_v27 = vadd.f32 %v12064_v39, %v6410_v48  ;;  %v8549_v19 = vpack.c.bf16 %v6666_v23, %v6665_v41  ;;  %v6685_v41 = vld [vmem:[%s12198_s6 + $0x50] sm:$0xff] }
 0x651   : > { %v6669_v46 = vmax.f32 %v6641_v51, %v6643_v35  ;;  %v6509_v45 = vmax.f32 %v6481_v31, 0.0  ;;  %v6668_v7 = vmax.f32 %v6640_v55, %v6642_v16 }
 0x652   : > { %v6586_v40 = vsel %vm1436_vm4, %v6583_v30, %v6585_v17  ;;  %v6588_v37 = vsel %vm1436_vm4, %v6585_v17, %v6587_v49  ;;  %v6508_v26 = vmax.f32 %v6480_v27, 0.0  ;;  %8550 = vmatpush1.bf16.msra.mxu1 %v8549_v19 }
 0x653   : > { %v6644_v62 = vmax.f32 %v6505_v58, %v6586_v40  ;;  %v6645_v44 = vmax.f32 %v6506_v21, %v6588_v37  ;;  %v6591_v5 = vrot.slane %v6509_v45, 1  ;;  %8551 = vmatprep.subr.bf16.mxu1 %v12386_v8  ;;  %v8552_v29 = vpack.c.bf16 %v6668_v7, %v6667_v0  ;;  %v6688_v58 = vld [vmem:[%s12198_s6 + $0x68] sm:$0x1] }
 0x654   : > { %v6589_v28 = vrot.slane %v6508_v26, 1 }
 0x655   : > { %v6671_v57 = vmax.f32 %v6643_v35, %v6645_v44  ;;  %v6670_v11 = vmax.f32 %v6642_v16, %v6644_v62  ;;  %v6648_v53 = vmax.f32 %v6509_v45, %v6591_v5 }
 0x656   : > { %v6590_v39 = vsel %vm1436_vm4, %v6587_v49, %v6589_v28  ;;  %v6592_v22 = vsel %vm1436_vm4, %v6589_v28, %v6591_v5  ;;  %8553 = vmatpush1.bf16.msra.mxu1 %v8552_v29 }
 0x657   : > { %v6646_v47 = vmax.f32 %v6507_v59, %v6590_v39  ;;  %v6647_v18 = vmax.f32 %v6508_v26, %v6592_v22  ;;  %8554 = vmatprep.subr.bf16.mxu1 %v12386_v8  ;;  %v8555_v50 = vpack.c.bf16 %v6670_v11, %v6669_v46 }
 0x659   : > { %v6673_v32 = vmax.f32 %v6645_v44, %v6647_v18  ;;  %v6674_v14 = vmax.f32 %v6646_v47, %v6648_v53  ;;  %v6672_v36 = vmax.f32 %v6644_v62, %v6646_v47 }
 0x65a   : > { %8556 = vmatpush1.bf16.msra.mxu1 %v8555_v50 }
 0x65b   : > { %v8561_v38 = vpack.c.bf16 %v6674_v14, %v6673_v32  ;;  %8557 = vmatprep.subr.bf16.mxu1 %v12386_v8  ;;  %v8558_v24 = vpack.c.bf16 %v6672_v36, %v6671_v57 }
 0x65e   : > { %8559 = vmatpush1.bf16.msra.mxu1 %v8558_v24 }
 0x65f   : > { %8560 = vmatprep.subr.bf16.mxu1 %v12386_v8  ;;  %v6680_v8 = vld [vmem:[%s12198_s6 + $0x28] sm:$0xff] }
 0x662   : > { %8563 = vmatpush1.bf16.msk.msra.mxu1 %vm8562_vm11, %v8561_v38 }
 0x665   : > { %6780 = vmatmul.mubr.f32.vlgmr.msra.gmra.mrb[134].mxu1 %v6675_v15 }
 0x666   : > { %7308 = vmatprep.mubr.msk.f32.mxu1 %vm6689_vm9, %v6678_v12 }
 0x669   : > { %6785 = vmatmul.mubr.f32.gmra.mrb[136].mxu1 %v6677_v13 }
 0x66a   : > { %7309 = vmatprep.mubr.msk.f32.mxu1 %vm6689_vm9, %v6680_v8 }
 0x66d   : > { %6790 = vmatmul.mubr.f32.gmra.mrb[138].mxu1 %v6679_v63 }
 0x66e   : > { %7310 = vmatprep.mubr.msk.f32.mxu1 %vm6689_vm9, %v6682_v54 }
 0x671   : > { %6795 = vmatmul.mubr.f32.gmra.mrb[140].mxu1 %v6681_v60 }
 0x672   : > { %7311 = vmatprep.mubr.msk.f32.mxu1 %vm6689_vm9, %v6684_v2 }
 0x675   : > { %6800 = vmatmul.mubr.f32.gmra.mrb[142].mxu1 %v6683_v3 }
 0x676   : > { %7312 = vmatprep.mubr.msk.f32.mxu1 %vm6689_vm9, %v6686_v6 }
 0x679   : > { %6805 = vmatmul.mubr.f32.gmra.mrb[144].mxu1 %v6685_v41 }
 0x67a   : > { %7313 = vmatprep.mubr.msk.f32.mxu1 %vm6689_vm9, %v6688_v58 }
 0x67d   : > { %6810 = vmatmul.mubr.f32.gmra.mrb[146].mxu1 %v6687_v43 }
 0x738   : > { %v6781_v4 = vpop.f32.mrb[134].mxu1 }
 0x739   : > { %6816 = vst.msk [vmem:[%s278_s26] sm:$0xff] %vm6815_vm12, %v6781_v4  ;;  %v6783_v61 = vpop.f32.mrb[135].mxu1 }
 0x73c   : > { %v6786_v34 = vpop.f32.mrb[136].mxu1 }
 0x73d   : > { %6817 = vst.msk [vmem:[%s278_s26 + $0x8] sm:$0xff] %vm6815_vm12, %v6786_v34  ;;  %v6788_v1 = vpop.f32.mrb[137].mxu1 }
 0x740   : > { %v6791_v55 = vpop.f32.mrb[138].mxu1 }
 0x741   : > { %6818 = vst.msk [vmem:[%s278_s26 + $0x10] sm:$0xff] %vm6815_vm12, %v6791_v55  ;;  %v6793_v51 = vpop.f32.mrb[139].mxu1 }
 0x744   : > { %v6796_v30 = vpop.f32.mrb[140].mxu1 }
 0x745   : > { %6819 = vst.msk [vmem:[%s278_s26 + $0x18] sm:$0xff] %vm6815_vm12, %v6796_v30  ;;  %v6798_v20 = vpop.f32.mrb[141].mxu1 }
 0x748   : > { %v6801_v9 = vpop.f32.mrb[142].mxu1 }
 0x749   : > { %6820 = vst.msk [vmem:[%s278_s26 + $0x20] sm:$0xff] %vm6815_vm12, %v6801_v9  ;;  %v6803_v33 = vpop.f32.mrb[143].mxu1 }
 0x74c   : > { %v6806_v56 = vpop.f32.mrb[144].mxu1 }
 0x74d   : > { %6821 = vst.msk [vmem:[%s278_s26 + $0x28] sm:$0xff] %vm6815_vm12, %v6806_v56  ;;  %v6808_v52 = vpop.f32.mrb[145].mxu1 }
 0x750   : > { %v6811_v0 = vpop.f32.mrb[146].mxu1 }
 0x751   : > { %6823 = vst.msk [vmem:[%s278_s26 + $0x30] sm:$0x1] %vm6822_vm13, %v6811_v0  ;;  %v6813_v59 = vpop.f32.mrb[147].mxu1 }
 0x752 PF: > { %s17_s24 = sadd.s32 1, %s8946_s24  }
 0x753   : > { %p14_p4 = scmp.ge.s32.totalorder %s17_s24, 4  }
 0x755   :  { %16 = sbr.rel (!%p14_p4) target bundleno = 1 (0x1), region = 86 }

</bundles_post_ra>
